<compile_context>
chip_gen: v5e
topology: v5e:2x2
jax: 0.10.0
libtpu: 0.0.40
codegen_flags: <defaults>
</compile_context>

<pallas_src>
import jax
import jax.numpy as jnp
from jax.experimental import pallas as pl
from jax.experimental.pallas import tpu as pltpu

# Logical layer sizes of MINST_3 and their lane-aligned (padded) counterparts.
DIMS = (784, 200, 100, 60, 30, 10)
PADDED = (784, 256, 128, 128, 128, 128)
OUT_PAD = PADDED[-1]          # 10 -> 128 lane-dense output columns
NEG_BIAS = -1e30              # bias for padded logit columns -> exp() == 0 in f32 softmax


def _round_up(n, m):
    return (n + m - 1) // m * m


def _mlp_kernel(x_ref,
                w1_ref, b1_ref,
                w2_ref, b2_ref,
                w3_ref, b3_ref,
                w4_ref, b4_ref,
                w5_ref, b5_ref,
                o_ref):
    """Whole forward for one batch tile: 5 bf16 MXU matmuls (f32 acc), 4 ReLUs, log_softmax."""

    def dense(h_bf16, w_ref, b_ref):
        # bf16 x bf16 -> f32 accumulate on the MXU; bias add / ReLU stay f32 on the VPU.
        return jnp.dot(h_bf16, w_ref[...], preferred_element_type=jnp.float32) + b_ref[...]

    def relu_bf16(a_f32):
        return jnp.maximum(a_f32, 0.0).astype(jnp.bfloat16)

    x = x_ref[...]                                   # (tile, 784) bf16, straight from HBM
    h = relu_bf16(dense(x, w1_ref, b1_ref))          # Linear(784->200[256]) + ReLU
    h = relu_bf16(dense(h, w2_ref, b2_ref))          # Linear(200->100[128]) + ReLU
    h = relu_bf16(dense(h, w3_ref, b3_ref))          # Linear(100-> 60[128]) + ReLU
    h = relu_bf16(dense(h, w4_ref, b4_ref))          # Linear( 60-> 30[128]) + ReLU
    logits = dense(h, w5_ref, b5_ref)                # Linear( 30->128); cols >= 10 ~ -1e30

    # log_softmax along features, in f32; padded columns contribute exp(~-1e30) == 0.
    m = jnp.max(logits, axis=-1, keepdims=True)
    shifted = logits - m
    lse = jnp.log(jnp.sum(jnp.exp(shifted), axis=-1, keepdims=True))
    o_ref[...] = (shifted - lse).astype(o_ref.dtype)  # lane-dense (tile, 128) f32 store


def prepare_params(params):
    """Cast weights to bf16 and pad in/out dims to the lane-aligned PADDED sizes."""
    prepped = []
    n = len(params)
    for li, (w, b) in enumerate(params):
        w = jnp.asarray(w, jnp.float32)
        b = jnp.asarray(b, jnp.float32).reshape(1, -1)
        in_pad = PADDED[li] - w.shape[0]
        out_pad = PADDED[li + 1] - w.shape[1]
        # Zero rows: padded activation columns from the previous layer are exactly 0
        # (zero weight cols + zero bias + ReLU), so zero rows contribute nothing.
        w = jnp.pad(w, ((0, in_pad), (0, out_pad)))
        if li == n - 1:
            b = jnp.pad(b, ((0, 0), (0, out_pad)), constant_values=NEG_BIAS)  # kill pad logits
        else:
            b = jnp.pad(b, ((0, 0), (0, out_pad)))
        prepped.append((w.astype(jnp.bfloat16), b))
    return prepped


def minst3_forward(x, params, *, batch_tile=2048):
    """x: (B, 784) float. params: list of (W, b), W=(in,out), b=(out,) or (1,out)."""
    B, D = x.shape
    assert D == DIMS[0], f"expected {DIMS[0]} input features, got {D}"

    # Single prep pass over x: cast to bf16 (halves input HBM traffic); no K-pad in HBM.
    x = jnp.asarray(x).astype(jnp.bfloat16)

    # Tile selection: multiples of 128 rows, capped at batch_tile.  For B >= 256 target
    # ceil(B/2) so there are always >= 2 grid steps (keeps both v7x TensorCores busy).
    if B >= 256:
        eff_tile = min(batch_tile, _round_up(-(-B // 2), 128))
    else:
        eff_tile = min(batch_tile, _round_up(B, 128))
    B_pad = _round_up(B, eff_tile)
    if B_pad != B:
        # Padded rows are all-zero bf16 inputs -> finite bias-only logits; cropped below.
        x = jnp.pad(x, ((0, B_pad - B), (0, 0)))

    prepped = prepare_params(params)
    param_specs, flat_params = [], []
    for (w, b) in prepped:
        # Full-array blocks with constant index_map: weights stay resident in VMEM.
        param_specs.append(pl.BlockSpec(w.shape, lambda i: (0, 0)))
        param_specs.append(pl.BlockSpec(b.shape, lambda i: (0, 0)))
        flat_params.extend([w, b])

    # x block's last dim (784) equals the full array dim -> legal without 128-alignment.
    in_specs = [pl.BlockSpec((eff_tile, DIMS[0]), lambda i: (i, 0))] + param_specs
    out_spec = pl.BlockSpec((eff_tile, OUT_PAD), lambda i: (i, 0))

    out = pl.pallas_call(
        _mlp_kernel,
        out_shape=jax.ShapeDtypeStruct((B_pad, OUT_PAD), jnp.float32),
        grid_spec=pltpu.PrefetchScalarGridSpec(
            num_scalar_prefetch=0,
            grid=(B_pad // eff_tile,),
            in_specs=in_specs,
            out_specs=out_spec,
        ),
        compiler_params=pltpu.CompilerParams(
            dimension_semantics=("parallel",)),
    )(x, *flat_params)

    return out[:B, :DIMS[-1]]


def init_params(key):
    """Deterministic synthetic parameters matching MINST_3 layer shapes (f32)."""
    params = []
    for (d_in, d_out) in zip(DIMS[:-1], DIMS[1:]):
        key, kw, kb = jax.random.split(key, 3)
        scale = 1.0 / jnp.sqrt(jnp.float32(d_in))
        w = jax.random.uniform(kw, (d_in, d_out), jnp.float32, -scale, scale)
        b = jax.random.uniform(kb, (1, d_out), jnp.float32, -scale, scale)
        params.append((w, b))
    return params


def _reference(x, params):
    """Pure f32 JAX reference matching the PyTorch module."""
    h = x
    for i, (w, b) in enumerate(params):
        h = h @ w + b
        if i < len(params) - 1:
            h = jnp.maximum(h, 0.0)
    return jax.nn.log_softmax(h, axis=1)


if __name__ == "__main__":
    key = jax.random.PRNGKey(0)
    kx, kp = jax.random.split(key)
    B = 8                                   # small test batch (padded to one 128-row tile)
    x = jax.random.normal(kx, (B, DIMS[0]), jnp.float32)
    params = init_params(kp)

    out = minst3_forward(x, params)
    out = jax.block_until_ready(out)

    ref = _reference(x, params)
    assert out.shape == (B, DIMS[-1]), out.shape
    # bf16 weights/activations on the MXU -> compare with bf16-appropriate tolerance.
    assert jnp.allclose(out, ref, atol=5e-2, rtol=5e-2), (
        "mismatch vs reference, max abs err = "
        f"{float(jnp.max(jnp.abs(out - ref)))}")
    print("KERNEL_OK")
</pallas_src>

<mosaic_0001>
module attributes {stable_mosaic.version = 11 : i64} {
  func.func @_mlp_kernel(%arg0: i32, %arg1: memref<128x784xbf16, #tpu.memory_space<vmem>>, %arg2: memref<784x256xbf16, #tpu.memory_space<vmem>>, %arg3: memref<1x256xf32, #tpu.memory_space<vmem>>, %arg4: memref<256x128xbf16, #tpu.memory_space<vmem>>, %arg5: memref<1x128xf32, #tpu.memory_space<vmem>>, %arg6: memref<128x128xbf16, #tpu.memory_space<vmem>>, %arg7: memref<1x128xf32, #tpu.memory_space<vmem>>, %arg8: memref<128x128xbf16, #tpu.memory_space<vmem>>, %arg9: memref<1x128xf32, #tpu.memory_space<vmem>>, %arg10: memref<128x128xbf16, #tpu.memory_space<vmem>>, %arg11: memref<1x128xf32, #tpu.memory_space<vmem>>, %arg12: memref<128x128xf32, #tpu.memory_space<vmem>>) attributes {dimension_semantics = [#tpu.dimension_semantics<parallel>], iteration_bounds = array<i64: 1>, scalar_prefetch = 0 : i64, scratch_operands = 0 : i64, tpu.core_type = #tpu.core_type<tc>, window_params = [{transform_indices = @transform_0, window_bounds = array<i64: 128, 784>}, {pipeline_mode = #tpu.pipeline_mode<synchronous>, transform_indices = @transform_1, window_bounds = array<i64: 784, 256>}, {pipeline_mode = #tpu.pipeline_mode<synchronous>, transform_indices = @transform_2, window_bounds = array<i64: 1, 256>}, {pipeline_mode = #tpu.pipeline_mode<synchronous>, transform_indices = @transform_3, window_bounds = array<i64: 256, 128>}, {pipeline_mode = #tpu.pipeline_mode<synchronous>, transform_indices = @transform_4, window_bounds = array<i64: 1, 128>}, {pipeline_mode = #tpu.pipeline_mode<synchronous>, transform_indices = @transform_5, window_bounds = array<i64: 128, 128>}, {pipeline_mode = #tpu.pipeline_mode<synchronous>, transform_indices = @transform_6, window_bounds = array<i64: 1, 128>}, {pipeline_mode = #tpu.pipeline_mode<synchronous>, transform_indices = @transform_7, window_bounds = array<i64: 128, 128>}, {pipeline_mode = #tpu.pipeline_mode<synchronous>, transform_indices = @transform_8, window_bounds = array<i64: 1, 128>}, {pipeline_mode = #tpu.pipeline_mode<synchronous>, transform_indices = @transform_9, window_bounds = array<i64: 128, 128>}, {pipeline_mode = #tpu.pipeline_mode<synchronous>, transform_indices = @transform_10, window_bounds = array<i64: 1, 128>}, {transform_indices = @transform_11, window_bounds = array<i64: 128, 128>}]} {
    %c0 = arith.constant 0 : index
    %c0_0 = arith.constant 0 : index
    %0 = vector.load %arg1[%c0, %c0_0] : memref<128x784xbf16, #tpu.memory_space<vmem>>, vector<128x784xbf16>
    %c0_1 = arith.constant 0 : index
    %c0_2 = arith.constant 0 : index
    %1 = vector.load %arg2[%c0_1, %c0_2] : memref<784x256xbf16, #tpu.memory_space<vmem>>, vector<784x256xbf16>
    %cst = arith.constant dense<0.000000e+00> : vector<128x256xf32>
    %2 = tpu.matmul %0, %1, %cst {dimension_numbers = #tpu.dot_dimension_numbers<[1], [0], [0], [1], [0, 0, 1, 1], [], []>} : vector<128x784xbf16>, vector<784x256xbf16>, vector<128x256xf32> -> vector<128x256xf32>
    %c0_3 = arith.constant 0 : index
    %c0_4 = arith.constant 0 : index
    %3 = vector.load %arg3[%c0_3, %c0_4] : memref<1x256xf32, #tpu.memory_space<vmem>>, vector<1x256xf32>
    %4 = vector.broadcast %3 : vector<1x256xf32> to vector<128x256xf32>
    %5 = arith.addf %2, %4 : vector<128x256xf32>
    %cst_5 = arith.constant 0.000000e+00 : f32
    %6 = vector.broadcast %cst_5 : f32 to vector<128x256xf32>
    %7 = arith.maximumf %5, %6 : vector<128x256xf32>
    %8 = arith.truncf %7 : vector<128x256xf32> to vector<128x256xbf16>
    %c0_6 = arith.constant 0 : index
    %c0_7 = arith.constant 0 : index
    %9 = vector.load %arg4[%c0_6, %c0_7] : memref<256x128xbf16, #tpu.memory_space<vmem>>, vector<256x128xbf16>
    %cst_8 = arith.constant dense<0.000000e+00> : vector<128x128xf32>
    %10 = tpu.matmul %8, %9, %cst_8 {dimension_numbers = #tpu.dot_dimension_numbers<[1], [0], [0], [1], [0, 0, 1, 1], [], []>} : vector<128x256xbf16>, vector<256x128xbf16>, vector<128x128xf32> -> vector<128x128xf32>
    %c0_9 = arith.constant 0 : index
    %c0_10 = arith.constant 0 : index
    %11 = vector.load %arg5[%c0_9, %c0_10] : memref<1x128xf32, #tpu.memory_space<vmem>>, vector<1x128xf32>
    %12 = vector.broadcast %11 : vector<1x128xf32> to vector<128x128xf32>
    %13 = arith.addf %10, %12 : vector<128x128xf32>
    %cst_11 = arith.constant 0.000000e+00 : f32
    %14 = vector.broadcast %cst_11 : f32 to vector<128x128xf32>
    %15 = arith.maximumf %13, %14 : vector<128x128xf32>
    %16 = arith.truncf %15 : vector<128x128xf32> to vector<128x128xbf16>
    %c0_12 = arith.constant 0 : index
    %c0_13 = arith.constant 0 : index
    %17 = vector.load %arg6[%c0_12, %c0_13] : memref<128x128xbf16, #tpu.memory_space<vmem>>, vector<128x128xbf16>
    %cst_14 = arith.constant dense<0.000000e+00> : vector<128x128xf32>
    %18 = tpu.matmul %16, %17, %cst_14 {dimension_numbers = #tpu.dot_dimension_numbers<[1], [0], [0], [1], [0, 0, 1, 1], [], []>} : vector<128x128xbf16>, vector<128x128xbf16>, vector<128x128xf32> -> vector<128x128xf32>
    %c0_15 = arith.constant 0 : index
    %c0_16 = arith.constant 0 : index
    %19 = vector.load %arg7[%c0_15, %c0_16] : memref<1x128xf32, #tpu.memory_space<vmem>>, vector<1x128xf32>
    %20 = vector.broadcast %19 : vector<1x128xf32> to vector<128x128xf32>
    %21 = arith.addf %18, %20 : vector<128x128xf32>
    %cst_17 = arith.constant 0.000000e+00 : f32
    %22 = vector.broadcast %cst_17 : f32 to vector<128x128xf32>
    %23 = arith.maximumf %21, %22 : vector<128x128xf32>
    %24 = arith.truncf %23 : vector<128x128xf32> to vector<128x128xbf16>
    %c0_18 = arith.constant 0 : index
    %c0_19 = arith.constant 0 : index
    %25 = vector.load %arg8[%c0_18, %c0_19] : memref<128x128xbf16, #tpu.memory_space<vmem>>, vector<128x128xbf16>
    %cst_20 = arith.constant dense<0.000000e+00> : vector<128x128xf32>
    %26 = tpu.matmul %24, %25, %cst_20 {dimension_numbers = #tpu.dot_dimension_numbers<[1], [0], [0], [1], [0, 0, 1, 1], [], []>} : vector<128x128xbf16>, vector<128x128xbf16>, vector<128x128xf32> -> vector<128x128xf32>
    %c0_21 = arith.constant 0 : index
    %c0_22 = arith.constant 0 : index
    %27 = vector.load %arg9[%c0_21, %c0_22] : memref<1x128xf32, #tpu.memory_space<vmem>>, vector<1x128xf32>
    %28 = vector.broadcast %27 : vector<1x128xf32> to vector<128x128xf32>
    %29 = arith.addf %26, %28 : vector<128x128xf32>
    %cst_23 = arith.constant 0.000000e+00 : f32
    %30 = vector.broadcast %cst_23 : f32 to vector<128x128xf32>
    %31 = arith.maximumf %29, %30 : vector<128x128xf32>
    %32 = arith.truncf %31 : vector<128x128xf32> to vector<128x128xbf16>
    %c0_24 = arith.constant 0 : index
    %c0_25 = arith.constant 0 : index
    %33 = vector.load %arg10[%c0_24, %c0_25] : memref<128x128xbf16, #tpu.memory_space<vmem>>, vector<128x128xbf16>
    %cst_26 = arith.constant dense<0.000000e+00> : vector<128x128xf32>
    %34 = tpu.matmul %32, %33, %cst_26 {dimension_numbers = #tpu.dot_dimension_numbers<[1], [0], [0], [1], [0, 0, 1, 1], [], []>} : vector<128x128xbf16>, vector<128x128xbf16>, vector<128x128xf32> -> vector<128x128xf32>
    %c0_27 = arith.constant 0 : index
    %c0_28 = arith.constant 0 : index
    %35 = vector.load %arg11[%c0_27, %c0_28] : memref<1x128xf32, #tpu.memory_space<vmem>>, vector<1x128xf32>
    %36 = vector.broadcast %35 : vector<1x128xf32> to vector<128x128xf32>
    %37 = arith.addf %34, %36 : vector<128x128xf32>
    %cst_29 = arith.constant dense<0xFF800000> : vector<128xf32>
    %38 = vector.multi_reduction <maximumf>, %37, %cst_29 [1] : vector<128x128xf32> to vector<128xf32>
    %39 = vector.shape_cast %38 : vector<128xf32> to vector<128x1xf32>
    %40 = vector.broadcast %39 : vector<128x1xf32> to vector<128x128xf32>
    %41 = arith.subf %37, %40 : vector<128x128xf32>
    %42 = math.exp %41 : vector<128x128xf32>
    %cst_30 = arith.constant dense<0.000000e+00> : vector<128xf32>
    %43 = vector.multi_reduction <add>, %42, %cst_30 [1] : vector<128x128xf32> to vector<128xf32>
    %44 = vector.shape_cast %43 : vector<128xf32> to vector<128x1xf32>
    %45 = math.log %44 : vector<128x1xf32>
    %46 = vector.broadcast %45 : vector<128x1xf32> to vector<128x128xf32>
    %47 = arith.subf %41, %46 : vector<128x128xf32>
    %c0_31 = arith.constant 0 : index
    %c0_32 = arith.constant 0 : index
    %48 = vector.load %arg12[%c0_31, %c0_32] : memref<128x128xf32, #tpu.memory_space<vmem>>, vector<128x128xf32>
    tpu.vector_store %arg12[%c0_31, %c0_32], %47 {strides = array<i32>} : memref<128x128xf32, #tpu.memory_space<vmem>>, vector<128x128xf32>,
    return
  }
  func.func @transform_0(%arg0: i32) -> (i32, i32) {
    %c0_i32 = arith.constant 0 : i32
    %c0_i32_0 = arith.constant 0 : i32
    return %arg0, %c0_i32 : i32, i32
  }
  func.func @transform_1(%arg0: i32) -> (i32, i32) {
    %c0_i32 = arith.constant 0 : i32
    %c0_i32_0 = arith.constant 0 : i32
    %c0_i32_1 = arith.constant 0 : i32
    return %c0_i32, %c0_i32_0 : i32, i32
  }
  func.func @transform_2(%arg0: i32) -> (i32, i32) {
    %c0_i32 = arith.constant 0 : i32
    %c0_i32_0 = arith.constant 0 : i32
    %c0_i32_1 = arith.constant 0 : i32
    return %c0_i32, %c0_i32_0 : i32, i32
  }
  func.func @transform_3(%arg0: i32) -> (i32, i32) {
    %c0_i32 = arith.constant 0 : i32
    %c0_i32_0 = arith.constant 0 : i32
    %c0_i32_1 = arith.constant 0 : i32
    return %c0_i32, %c0_i32_0 : i32, i32
  }
  func.func @transform_4(%arg0: i32) -> (i32, i32) {
    %c0_i32 = arith.constant 0 : i32
    %c0_i32_0 = arith.constant 0 : i32
    %c0_i32_1 = arith.constant 0 : i32
    return %c0_i32, %c0_i32_0 : i32, i32
  }
  func.func @transform_5(%arg0: i32) -> (i32, i32) {
    %c0_i32 = arith.constant 0 : i32
    %c0_i32_0 = arith.constant 0 : i32
    %c0_i32_1 = arith.constant 0 : i32
    return %c0_i32, %c0_i32_0 : i32, i32
  }
  func.func @transform_6(%arg0: i32) -> (i32, i32) {
    %c0_i32 = arith.constant 0 : i32
    %c0_i32_0 = arith.constant 0 : i32
    %c0_i32_1 = arith.constant 0 : i32
    return %c0_i32, %c0_i32_0 : i32, i32
  }
  func.func @transform_7(%arg0: i32) -> (i32, i32) {
    %c0_i32 = arith.constant 0 : i32
    %c0_i32_0 = arith.constant 0 : i32
    %c0_i32_1 = arith.constant 0 : i32
    return %c0_i32, %c0_i32_0 : i32, i32
  }
  func.func @transform_8(%arg0: i32) -> (i32, i32) {
    %c0_i32 = arith.constant 0 : i32
    %c0_i32_0 = arith.constant 0 : i32
    %c0_i32_1 = arith.constant 0 : i32
    return %c0_i32, %c0_i32_0 : i32, i32
  }
  func.func @transform_9(%arg0: i32) -> (i32, i32) {
    %c0_i32 = arith.constant 0 : i32
    %c0_i32_0 = arith.constant 0 : i32
    %c0_i32_1 = arith.constant 0 : i32
    return %c0_i32, %c0_i32_0 : i32, i32
  }
  func.func @transform_10(%arg0: i32) -> (i32, i32) {
    %c0_i32 = arith.constant 0 : i32
    %c0_i32_0 = arith.constant 0 : i32
    %c0_i32_1 = arith.constant 0 : i32
    return %c0_i32, %c0_i32_0 : i32, i32
  }
  func.func @transform_11(%arg0: i32) -> (i32, i32) {
    %c0_i32 = arith.constant 0 : i32
    %c0_i32_0 = arith.constant 0 : i32
    return %arg0, %c0_i32 : i32, i32
  }
}

</mosaic_0001>

<bundles_post_ra>
// kernel: tpu_custom_call.1
= control target key start
LH: loop header
LB: loop body
LE: loop exit
PB: predicated region body
PF: predicated region fallthrough
CT: control target
= control target key end

     0   :  { %16 = vsyncpa [#allocation3], 0  ;;  %s5720_s0 = inlined_call_operand.vmem [shape: bf16[128,784], index: 0, kind: input, shape index: {}]   ;;  %s5721_s1 = inlined_call_operand.vmem [shape: bf16[784,256], index: 1, kind: input, shape index: {}]   ;;  %s5722_s2 = inlined_call_operand.hbm [shape: f32[1,256], index: 2, kind: input, shape index: {}]   ;;  %s5723_s3 = inlined_call_operand.hbm [shape: bf16[256,128], index: 3, kind: input, shape index: {}]   ;;  %s5724_s4 = inlined_call_operand.hbm [shape: f32[1,128], index: 4, kind: input, shape index: {}]   ;;  %s5725_s5 = inlined_call_operand.hbm [shape: bf16[128,128], index: 5, kind: input, shape index: {}]   ;;  %s5726_s6 = inlined_call_operand.hbm [shape: f32[1,128], index: 6, kind: input, shape index: {}]   ;;  %s5727_s7 = inlined_call_operand.hbm [shape: bf16[128,128], index: 7, kind: input, shape index: {}]   ;;  %s5728_s8 = inlined_call_operand.hbm [shape: f32[1,128], index: 8, kind: input, shape index: {}]   ;;  %s5729_s9 = inlined_call_operand.vmem [shape: bf16[128,128], index: 9, kind: input, shape index: {}]   ;;  %s5730_s10 = inlined_call_operand.hbm [shape: f32[1,128], index: 10, kind: input, shape index: {}]   ;;  %s5731_s11 = inlined_call_operand.hbm [shape: f32[128,128], index: 11, kind: output, shape index: {}]  }
   0x1   :  { %17 = vsyncpa [#allocation6], 0 }
   0x2   :  { %18 = vsyncpa [#allocation9], 0 }
   0x3   :  { %19 = vsyncpa [#allocation12], 0 }
   0x4   :  { %20 = vsyncpa [#allocation15], 0  ;;  %s41_s19 = sshll.u32 %s5723_s3, 4  ;;  %s42_s19 = int_to_ptr.hbm [resolvable:$true] %s41_s19 }
   0x5   :  { %21 = vsyncpa [#allocation4], 0  ;;  %s4024_s20 = smov [#allocation5]   ;;  %s65_s24 = sshll.u32 %s5725_s5, 4  ;;  %s66_s24 = int_to_ptr.hbm [resolvable:$true] %s65_s24 }
   0x6   :  { %s43_s21 = sshll.u32 %s4024_s20, 4  ;;  %s4025_s25 = smov 64   ;;  %s44_s21 = int_to_ptr.vmem [resolvable:$true] %s43_s21 }
   0x7   :  { %s4026_s26 = smov 4   ;;  %s4027_s27 = smov [#allocation8]  }
   0x8   :  { %49 = dma.hbm_to_vmem [thread:$0]  %s42_s19, 2048, %s44_s21, [#allocation6], %s4025_s25, %s4025_s25, %s4026_s26  }
   0x9   :  { %s67_s28 = sshll.u32 %s4027_s27, 4  ;;  %s89_s12 = sshll.u32 %s5727_s7, 4  ;;  %s68_s28 = int_to_ptr.vmem [resolvable:$true] %s67_s28  ;;  %s90_s12 = int_to_ptr.hbm [resolvable:$true] %s89_s12 }
   0xa   :  { %73 = dma.hbm_to_vmem [thread:$0]  %s66_s24, 1024, %s68_s28, [#allocation9], %s4025_s25, %s4025_s25, %s4026_s26  }
   0xb   :  { %s31_s14 = sshll.u32 %s5722_s2, 4  ;;  %s4028_s15 = smov [#allocation11]   ;;  %s32_s14 = int_to_ptr.hbm [resolvable:$true] %s31_s14 }
   0xc   :  { %s91_s16 = sshll.u32 %s4028_s15, 4  ;;  %s4029_s5 = smov [#allocation2]   ;;  %s92_s16 = int_to_ptr.vmem [resolvable:$true] %s91_s16 }
   0xd   :  { %97 = dma.hbm_to_vmem [thread:$0]  %s90_s12, 1024, %s92_s16, [#allocation12], %s4025_s25, %s4025_s25, %s4026_s26  }
   0xe   :  { %s33_s17 = sshll.u32 %s4029_s5, 4  ;;  %s55_s20 = sshll.u32 %s5724_s4, 4  ;;  %s34_s17 = int_to_ptr.vmem [resolvable:$true] %s33_s17  ;;  %s56_s20 = int_to_ptr.hbm [resolvable:$true] %s55_s20 }
   0xf   :  { %36 = dma.hbm_to_vmem [thread:$0]  %s32_s14, 32, %s34_s17, [#allocation3]  }
  0x10   :  { %s79_s22 = sshll.u32 %s5726_s6, 4  ;;  %s4030_s23 = smov [#allocation7]   ;;  %s80_s22 = int_to_ptr.hbm [resolvable:$true] %s79_s22 }
  0x11   :  { %s57_s2 = sshll.u32 %s4030_s23, 4  ;;  %s4031_s24 = smov [#allocation10]   ;;  %s58_s2 = int_to_ptr.vmem [resolvable:$true] %s57_s2 }
  0x12   :  { %60 = dma.hbm_to_vmem [thread:$0]  %s56_s20, 16, %s58_s2, [#allocation6]  }
  0x13   :  { %s81_s25 = sshll.u32 %s4031_s24, 4  ;;  %s103_s28 = sshll.u32 %s5728_s8, 4  ;;  %s82_s25 = int_to_ptr.vmem [resolvable:$true] %s81_s25  ;;  %s104_s28 = int_to_ptr.hbm [resolvable:$true] %s103_s28 }
  0x14   :  { %84 = dma.hbm_to_vmem [thread:$0]  %s80_s22, 16, %s82_s25, [#allocation9]  }
  0x15   :  { %s116_s30 = sshll.u32 %s5730_s10, 4  ;;  %s4032_s12 = smov [#allocation13]   ;;  %s117_s30 = int_to_ptr.hbm [resolvable:$true] %s116_s30 }
  0x16   :  { %s105_s6 = sshll.u32 %s4032_s12, 4  ;;  %s4033_s3 = smov [#allocation14]   ;;  %s106_s6 = int_to_ptr.vmem [resolvable:$true] %s105_s6 }
  0x17   :  { %108 = dma.hbm_to_vmem [thread:$0]  %s104_s28, 16, %s106_s6, [#allocation12]  }
  0x18   :  { %s118_s13 = sshll.u32 %s4033_s3, 4  ;;  %s119_s13 = int_to_ptr.vmem [resolvable:$true] %s118_s13 }
  0x19   :  { %121 = dma.hbm_to_vmem [thread:$0]  %s117_s30, 16, %s119_s13, [#allocation15]  }
  0x1a   :  { %4012 = dma.done.wait [#allocation3], 32  }
  0x1b   :  { %4013 = vsyncadd [#allocation3], 4294967264 }
  0x1c   :  { %4014 = dma.done.wait [#allocation6], 2064  }
  0x1d   :  { %4015 = vsyncadd [#allocation6], 4294965232 }
  0x1e   :  { %4016 = dma.done.wait [#allocation9], 1040  }
  0x1f   :  { %4017 = vsyncadd [#allocation9], 4294966256 }
  0x20   :  { %4018 = dma.done.wait [#allocation12], 1040  }
  0x21   :  { %4019 = vsyncadd [#allocation12], 4294966256 }
  0x22   :  { %4020 = dma.done.wait [#allocation15], 16  }
  0x23   :  { %4021 = vsyncadd [#allocation15], 4294967280  ;;  %v2986_v0 = vld [vmem:[%s5721_s1 + $0x70] sm:$0xf]  ;;  %v3567_v1 = vld [vmem:[%s5721_s1 + $0x74] sm:$0xf0] }
  0x24   :  { %v3114_v2 = vld [vmem:[%s5721_s1 + $0x170] sm:$0xf]  ;;  %v2987_v3 = vor.u32 %v3567_v1, %v2986_v0  ;;  %v3599_v4 = vld [vmem:[%s5721_s1 + $0x174] sm:$0xf0]  ;;  %v2978_v9 = vld [vmem:[%s5721_s1 + $0x60] sm:$0xf] }
  0x25   :  { %v3050_v5 = vld [vmem:[%s5721_s1 + $0xf0] sm:$0xf]  ;;  %v3583_v6 = vld [vmem:[%s5721_s1 + $0xf4] sm:$0xf0]  ;;  %v4139_v7 = vor.u32 %v3599_v4, %v3114_v2  ;;  %v3565_v10 = vld [vmem:[%s5721_s1 + $0x64] sm:$0xf0] }
  0x26   :  { %v4141_v8 = vor.u32 %v3583_v6, %v3050_v5  ;;  %v3106_v11 = vld [vmem:[%s5721_s1 + $0x160] sm:$0xf]  ;;  %1118 = vmatpush.bf16.msra.mxu0 %v2987_v3  ;;  %3690 = vmatpush.bf16.msra.mxu3 %v2987_v3  ;;  %v2979_v12 = vor.u32 %v3565_v10, %v2978_v9  ;;  %v3597_v13 = vld [vmem:[%s5721_s1 + $0x164] sm:$0xf0]  ;;  %v2970_v18 = vld [vmem:[%s5721_s1 + $0x50] sm:$0xf] }
  0x27   :  { %v3042_v14 = vld [vmem:[%s5721_s1 + $0xe0] sm:$0xf]  ;;  %v3581_v15 = vld [vmem:[%s5721_s1 + $0xe4] sm:$0xf0]  ;;  %3706 = vmatpush.bf16.msra.mxu2 %v4139_v7  ;;  %v4163_v16 = vor.u32 %v3597_v13, %v3106_v11  ;;  %v3563_v19 = vld [vmem:[%s5721_s1 + $0x54] sm:$0xf0] }
  0x28   :  { %3698 = vmatpush.bf16.msra.mxu1 %v4141_v8  ;;  %v4165_v17 = vor.u32 %v3581_v15, %v3042_v14  ;;  %v3098_v20 = vld [vmem:[%s5721_s1 + $0x150] sm:$0xf]  ;;  %v3595_v21 = vld [vmem:[%s5721_s1 + $0x154] sm:$0xf0]  ;;  %v2971_v24 = vor.u32 %v3563_v19, %v2970_v18  ;;  %v2962_v27 = vld [vmem:[%s5721_s1 + $0x40] sm:$0xf] }
  0x29   :  { %v3034_v22 = vld [vmem:[%s5721_s1 + $0xd0] sm:$0xf]  ;;  %v3579_v23 = vld [vmem:[%s5721_s1 + $0xd4] sm:$0xf0]  ;;  %v4187_v25 = vor.u32 %v3595_v21, %v3098_v20  ;;  %v3561_v28 = vld [vmem:[%s5721_s1 + $0x44] sm:$0xf0] }
  0x2a   :  { %1119 = vmatpush.bf16.msra.mxu0 %v2979_v12  ;;  %3691 = vmatpush.bf16.msra.mxu3 %v2979_v12  ;;  %v4189_v26 = vor.u32 %v3579_v23, %v3034_v22  ;;  %v3090_v29 = vld [vmem:[%s5721_s1 + $0x140] sm:$0xf]  ;;  %v3593_v30 = vld [vmem:[%s5721_s1 + $0x144] sm:$0xf0]  ;;  %v2963_v33 = vor.u32 %v3561_v28, %v2962_v27  ;;  %v2954_v36 = vld [vmem:[%s5721_s1 + $0x30] sm:$0xf] }
  0x2b   :  { %3707 = vmatpush.bf16.msra.mxu2 %v4163_v16  ;;  %v3026_v31 = vld [vmem:[%s5721_s1 + $0xc0] sm:$0xf]  ;;  %v3577_v32 = vld [vmem:[%s5721_s1 + $0xc4] sm:$0xf0]  ;;  %v4211_v34 = vor.u32 %v3593_v30, %v3090_v29  ;;  %v3559_v37 = vld [vmem:[%s5721_s1 + $0x34] sm:$0xf0] }
  0x2c   :  { %3699 = vmatpush.bf16.msra.mxu1 %v4165_v17  ;;  %v4213_v35 = vor.u32 %v3577_v32, %v3026_v31  ;;  %v3082_v38 = vld [vmem:[%s5721_s1 + $0x130] sm:$0xf]  ;;  %v3591_v39 = vld [vmem:[%s5721_s1 + $0x134] sm:$0xf0]  ;;  %v2955_v42 = vor.u32 %v3559_v37, %v2954_v36  ;;  %v2946_v45 = vld [vmem:[%s5721_s1 + $0x20] sm:$0xf] }
  0x2d   :  { %v3018_v40 = vld [vmem:[%s5721_s1 + $0xb0] sm:$0xf]  ;;  %v3575_v41 = vld [vmem:[%s5721_s1 + $0xb4] sm:$0xf0]  ;;  %v4235_v43 = vor.u32 %v3591_v39, %v3082_v38  ;;  %v3557_v46 = vld [vmem:[%s5721_s1 + $0x24] sm:$0xf0] }
  0x2e   :  { %1120 = vmatpush.bf16.msra.mxu0 %v2971_v24  ;;  %3692 = vmatpush.bf16.msra.mxu3 %v2971_v24  ;;  %v4237_v44 = vor.u32 %v3575_v41, %v3018_v40  ;;  %v3074_v47 = vld [vmem:[%s5721_s1 + $0x120] sm:$0xf]  ;;  %v3589_v48 = vld [vmem:[%s5721_s1 + $0x124] sm:$0xf0]  ;;  %v2947_v51 = vor.u32 %v3557_v46, %v2946_v45  ;;  %v2938_v54 = vld [vmem:[%s5721_s1 + $0x10] sm:$0xf] }
  0x2f   :  { %3708 = vmatpush.bf16.msra.mxu2 %v4187_v25  ;;  %v3010_v49 = vld [vmem:[%s5721_s1 + $0xa0] sm:$0xf]  ;;  %v3573_v50 = vld [vmem:[%s5721_s1 + $0xa4] sm:$0xf0]  ;;  %v4259_v52 = vor.u32 %v3589_v48, %v3074_v47  ;;  %v3555_v55 = vld [vmem:[%s5721_s1 + $0x14] sm:$0xf0] }
  0x30   :  { %3700 = vmatpush.bf16.msra.mxu1 %v4189_v26  ;;  %v4261_v53 = vor.u32 %v3573_v50, %v3010_v49  ;;  %v3066_v56 = vld [vmem:[%s5721_s1 + $0x110] sm:$0xf]  ;;  %v3587_v57 = vld [vmem:[%s5721_s1 + $0x114] sm:$0xf0]  ;;  %v2930_v60 = vld [vmem:[%s5721_s1] sm:$0xf]  ;;  %v2939_v61 = vor.u32 %v3555_v55, %v2938_v54 }
  0x31   :  { %v3002_v58 = vld [vmem:[%s5721_s1 + $0x90] sm:$0xf]  ;;  %v3571_v59 = vld [vmem:[%s5721_s1 + $0x94] sm:$0xf0]  ;;  %v3553_v62 = vld [vmem:[%s5721_s1 + $0x4] sm:$0xf0]  ;;  %v4295_v1 = vor.u32 %v3587_v57, %v3066_v56 }
  0x32   :  { %1121 = vmatpush.bf16.msra.mxu0 %v2963_v33  ;;  %3693 = vmatpush.bf16.msra.mxu3 %v2963_v33  ;;  %v3058_v63 = vld [vmem:[%s5721_s1 + $0x100] sm:$0xf]  ;;  %v3585_v0 = vld [vmem:[%s5721_s1 + $0x104] sm:$0xf0]  ;;  %v4297_v2 = vor.u32 %v3571_v59, %v3002_v58  ;;  %v3499_v6 = vld [vmem:[%s5720_s0 + $0x18] sm:$0xf0]  ;;  %v2931_v11 = vor.u32 %v3553_v62, %v2930_v60 }
  0x33   :  { %3709 = vmatpush.bf16.msra.mxu2 %v4211_v34  ;;  %v2994_v3 = vld [vmem:[%s5721_s1 + $0x80] sm:$0xf]  ;;  %v3569_v4 = vld [vmem:[%s5721_s1 + $0x84] sm:$0xf0]  ;;  %v3178_v9 = vld [vmem:[%s5721_s1 + $0x1f0] sm:$0xf]  ;;  %v4328_v15 = vor.u32 %v3585_v0, %v3058_v63 }
  0x34   :  { %3701 = vmatpush.bf16.msra.mxu1 %v4213_v35  ;;  %v2706_v5 = vld [vmem:[%s5720_s0] sm:$0xf]  ;;  %v3615_v10 = vld [vmem:[%s5721_s1 + $0x1f4] sm:$0xf0]  ;;  %v2762_v12 = vld [vmem:[%s5720_s0 + $0x70] sm:$0xf]  ;;  %v4330_v18 = vor.u32 %v3569_v4, %v2994_v3 }
  0x35   :  { %v3513_v13 = vld [vmem:[%s5720_s0 + $0x88] sm:$0xf0]  ;;  %v2770_v14 = vld [vmem:[%s5720_s0 + $0x78] sm:$0xf]  ;;  %v3514_v19 = vld [vmem:[%s5720_s0 + $0x90] sm:$0xf0]  ;;  %v3179_v22 = vor.u32 %v3615_v10, %v3178_v9  ;;  %v4347_v27 = vor.u32 %v3499_v6, %v2706_v5 }
  0x36   :  { %1122 = vmatpush.bf16.msra.mxu0 %v2955_v42  ;;  %3694 = vmatpush.bf16.msra.mxu3 %v2955_v42  ;;  %v3510_v20 = vld [vmem:[%s5720_s0 + $0x74] sm:$0xf]  ;;  %v2764_v21 = vld [vmem:[%s5720_s0 + $0x8c] sm:$0xf0]  ;;  %v3647_v24 = vld [vmem:[%s5721_s1 + $0x2f4] sm:$0xf0]  ;;  %v4349_v28 = vor.u32 %v3513_v13, %v2762_v12  ;;  %v4357_v31 = vor.u32 %v3514_v19, %v2770_v14 }
  0x37   :  { %3710 = vmatpush.bf16.msra.mxu2 %v4235_v43  ;;  %v3306_v23 = vld [vmem:[%s5721_s1 + $0x2f0] sm:$0xf]  ;;  %v3170_v29 = vld [vmem:[%s5721_s1 + $0x1e0] sm:$0xf]  ;;  %v3613_v30 = vld [vmem:[%s5721_s1 + $0x1e4] sm:$0xf0]  ;;  %v4359_v32 = vor.u32 %v3510_v20, %v2764_v21 }
  0x38   :  { %3702 = vmatpush.bf16.msra.mxu1 %v4237_v44  ;;  %v3307_v33 = vor.u32 %v3647_v24, %v3306_v23  ;;  %v3171_v36 = vor.u32 %v3613_v30, %v3170_v29  ;;  %v3298_v37 = vld [vmem:[%s5721_s1 + $0x2e0] sm:$0xf]  ;;  %v3645_v38 = vld [vmem:[%s5721_s1 + $0x2e4] sm:$0xf0]  ;;  %v3162_v39 = vld [vmem:[%s5721_s1 + $0x1d0] sm:$0xf] }
  0x39   :  { %v3299_v40 = vor.u32 %v3645_v38, %v3298_v37  ;;  %v3290_v42 = vld [vmem:[%s5721_s1 + $0x2d0] sm:$0xf]  ;;  %v3643_v45 = vld [vmem:[%s5721_s1 + $0x2d4] sm:$0xf0]  ;;  %v3154_v46 = vld [vmem:[%s5721_s1 + $0x1c0] sm:$0xf] }
  0x3a   :  { %1123 = vmatpush.bf16.msra.mxu0 %v2947_v51  ;;  %3695 = vmatpush.bf16.msra.mxu3 %v2947_v51  ;;  %v3609_v47 = vld [vmem:[%s5721_s1 + $0x1c4] sm:$0xf0]  ;;  %v2734_v48 = vld [vmem:[%s5720_s0 + $0x38] sm:$0xf]  ;;  %v3506_v50 = vld [vmem:[%s5720_s0 + $0x50] sm:$0xf0] }
  0x3b   :  { %3711 = vmatpush.bf16.msra.mxu2 %v4259_v52  ;;  %v3155_v49 = vor.u32 %v3609_v47, %v3154_v46  ;;  %v2790_v51 = vld [vmem:[%s5720_s0 + $0xa8] sm:$0xf]  ;;  %v3520_v54 = vld [vmem:[%s5720_s0 + $0xc0] sm:$0xf0]  ;;  %v3521_v55 = vld [vmem:[%s5720_s0 + $0xc8] sm:$0xf0] }
  0x3c   :  { %3703 = vmatpush.bf16.msra.mxu1 %v4261_v53  ;;  %v3517_v56 = vld [vmem:[%s5720_s0 + $0xac] sm:$0xf]  ;;  %v2792_v57 = vld [vmem:[%s5720_s0 + $0xc4] sm:$0xf0]  ;;  %v3282_v58 = vld [vmem:[%s5721_s1 + $0x2c0] sm:$0xf]  ;;  %v4427_v62 = vor.u32 %v3520_v54, %v2790_v51 }
  0x3d   :  { %v3641_v59 = vld [vmem:[%s5721_s1 + $0x2c4] sm:$0xf0]  ;;  %v4431_v0 = vor.u32 %v3517_v56, %v2792_v57  ;;  %v3607_v3 = vld [vmem:[%s5721_s1 + $0x1b4] sm:$0xf0]  ;;  %v3138_v6 = vld [vmem:[%s5721_s1 + $0x1a0] sm:$0xf] }
  0x3e   :  { %1124 = vmatpush.bf16.msra.mxu0 %v2939_v61  ;;  %3696 = vmatpush.bf16.msra.mxu3 %v2939_v61  ;;  %v3283_v60 = vor.u32 %v3641_v59, %v3282_v58  ;;  %v4425_v61 = vor.u32 %v3506_v50, %v2734_v48  ;;  %v3639_v5 = vld [vmem:[%s5721_s1 + $0x2b4] sm:$0xf0]  ;;  %v2818_v10 = vld [vmem:[%s5720_s0 + $0xe0] sm:$0xf]  ;;  %v3496_v13 = vld [vmem:[%s5720_s0 + $0x4] sm:$0xf] }
  0x3f   :  { %3712 = vmatpush.bf16.msra.mxu2 %v4295_v1  ;;  %v2826_v14 = vld [vmem:[%s5720_s0 + $0xe8] sm:$0xf]  ;;  %v3528_v19 = vld [vmem:[%s5720_s0 + $0x100] sm:$0xf0]  ;;  %v2820_v21 = vld [vmem:[%s5720_s0 + $0xfc] sm:$0xf0] }
  0x40   :  { %3704 = vmatpush.bf16.msra.mxu1 %v4297_v2  ;;  %v3524_v20 = vld [vmem:[%s5720_s0 + $0xe4] sm:$0xf]  ;;  %v4488_v24 = vor.u32 %v3528_v19, %v2826_v14  ;;  %v3130_v30 = vld [vmem:[%s5721_s1 + $0x190] sm:$0xf]  ;;  %v3534_v38 = vld [vmem:[%s5720_s0 + $0x130] sm:$0xf0] }
  0x41   :  { %v4490_v29 = vor.u32 %v3524_v20, %v2820_v21  ;;  %v3635_v48 = vld [vmem:[%s5721_s1 + $0x294] sm:$0xf0]  ;;  %v3601_v50 = vld [vmem:[%s5721_s1 + $0x184] sm:$0xf0]  ;;  %v3242_v54 = vld [vmem:[%s5721_s1 + $0x270] sm:$0xf] }
  0x42   :  { %1125 = vmatpush.bf16.msra.mxu0 %v2931_v11  ;;  %3697 = vmatpush.bf16.msra.mxu3 %v2931_v11  ;;  %v3527_v11 = vld [vmem:[%s5720_s0 + $0xf8] sm:$0xf0]  ;;  %v3314_v57 = vld [vmem:[%s5721_s1 + $0x300] sm:$0xf]  ;;  %v3649_v58 = vld [vmem:[%s5721_s1 + $0x304] sm:$0xf0] }
  0x43   :  { %3713 = vmatpush.bf16.msra.mxu2 %v4328_v15  ;;  %v3234_v59 = vld [vmem:[%s5721_s1 + $0x260] sm:$0xf]  ;;  %vm1093_vm0 = vcmask 130048   ;;  %s2687_s7 = sshll.u32 %s5731_s11, 4  ;;  %s4035_s21 = smov 128   ;;  %s2688_s7 = int_to_ptr.hbm [resolvable:$true] %s2687_s7 }
  0x44   :  { %3705 = vmatpush.bf16.msra.mxu1 %v4330_v18  ;;  %v3218_v21 = vld [vmem:[%s5721_s1 + $0x240] sm:$0xf]  ;;  %s4036_s22 = smov 8  }
  0x45   :  { %1126 = vmatmul.bf16.vlgmr.msra.gmra.mxu0 %v4347_v27  ;;  %1136 = vmatmul.bf16.vlgmr.msra.gmra.mxu3 %v4349_v28 }
  0x46   :  { %1265 = vmatpush.bf16.msrb.mxu3 %v3179_v22  ;;  %1167 = vmatpush.bf16.msrb.mxu0 %v4141_v8  ;;  %v3611_v8 = vld [vmem:[%s5721_s1 + $0x1d4] sm:$0xf0]  ;;  %v4483_v22 = vor.u32 %v3527_v11, %v2818_v10  ;;  %v2876_v10 = vld [vmem:[%s5720_s0 + $0x16c] sm:$0xf0] }
  0x47   :  { %1234 = vmatmul.bf16.vlgmr.msra.gmra.mxu2 %v4357_v31  ;;  %1185 = vmatmul.bf16.vlgmr.msra.gmra.mxu1 %v4359_v32  ;;  %v3163_v41 = vor.u32 %v3611_v8, %v3162_v39  ;;  %v3503_v39 = vld [vmem:[%s5720_s0 + $0x3c] sm:$0xf]  ;;  %v2736_v8 = vld [vmem:[%s5720_s0 + $0x54] sm:$0xf0] }
  0x48   :  { %1363 = vmatpush.bf16.msrb.mxu1 %v3307_v33  ;;  %v3603_v33 = vld [vmem:[%s5721_s1 + $0x194] sm:$0xf0]  ;;  %v4537_v46 = vor.u32 %v3503_v39, %v2736_v8  ;;  %v3210_v39 = vld [vmem:[%s5721_s1 + $0x230] sm:$0xf] }
  0x49   :  { %v3131_v37 = vor.u32 %v3603_v33, %v3130_v30  ;;  %v2988_v30 = vld [vmem:[%s5721_s1 + $0x78] sm:$0xf0]  ;;  %v3623_v8 = vld [vmem:[%s5721_s1 + $0x234] sm:$0xf0] }
  0x4a   :  { %1168 = vmatpush.bf16.msrb.mxu0 %v4165_v17  ;;  %1266 = vmatpush.bf16.msrb.mxu3 %v3171_v36  ;;  %v3291_v17 = vor.u32 %v3643_v45, %v3290_v42  ;;  %v2848_v42 = vld [vmem:[%s5720_s0 + $0x134] sm:$0xf0] }
  0x4c   :  { %1364 = vmatpush.bf16.msrb.mxu1 %v3299_v40  ;;  %v3535_v40 = vld [vmem:[%s5720_s0 + $0x138] sm:$0xf0] }
  0x4e   :  { %1169 = vmatpush.bf16.msrb.mxu0 %v4189_v26  ;;  %1267 = vmatpush.bf16.msrb.mxu3 %v3163_v41  ;;  %v2798_v26 = vld [vmem:[%s5720_s0 + $0xb0] sm:$0xf]  ;;  %v3531_v41 = vld [vmem:[%s5720_s0 + $0x11c] sm:$0xf] }
  0x4f   :  { %v4429_v63 = vor.u32 %v3521_v55, %v2798_v26  ;;  %v3631_v26 = vld [vmem:[%s5721_s1 + $0x274] sm:$0xf0]  ;;  %v3541_v55 = vld [vmem:[%s5720_s0 + $0x168] sm:$0xf0] }
  0x50   :  { %1365 = vmatpush.bf16.msrb.mxu1 %v3291_v17  ;;  %v4541_v17 = vor.u32 %v3531_v41, %v2848_v42  ;;  %v3243_v56 = vor.u32 %v3631_v26, %v3242_v54  ;;  %v3548_v41 = vld [vmem:[%s5720_s0 + $0x1a0] sm:$0xf0]  ;;  %v3202_v42 = vld [vmem:[%s5721_s1 + $0x220] sm:$0xf]  ;;  %v2904_v54 = vld [vmem:[%s5720_s0 + $0x1a4] sm:$0xf0] }
  0x52   :  { %1170 = vmatpush.bf16.msrb.mxu0 %v4213_v35  ;;  %1268 = vmatpush.bf16.msrb.mxu3 %v3155_v49  ;;  %v3146_v35 = vld [vmem:[%s5721_s1 + $0x1b0] sm:$0xf] }
  0x53   :  { %v3147_v4 = vor.u32 %v3607_v3, %v3146_v35  ;;  %v3315_v35 = vor.u32 %v3649_v58, %v3314_v57  ;;  %v3633_v3 = vld [vmem:[%s5721_s1 + $0x284] sm:$0xf0]  ;;  %v3619_v57 = vld [vmem:[%s5721_s1 + $0x214] sm:$0xf0] }
  0x54   :  { %1366 = vmatpush.bf16.msrb.mxu1 %v3283_v60  ;;  %v3629_v60 = vld [vmem:[%s5721_s1 + $0x264] sm:$0xf0] }
  0x55   :  { %1131 = vmatmul.bf16.gmra.mxu0 %v4425_v61  ;;  %1141 = vmatmul.bf16.gmra.mxu3 %v4427_v62  ;;  %v3235_v11 = vor.u32 %v3629_v60, %v3234_v59  ;;  %v3186_v60 = vld [vmem:[%s5721_s1 + $0x200] sm:$0xf] }
  0x56   :  { %1171 = vmatpush.bf16.msrb.mxu0 %v4237_v44  ;;  %1269 = vmatpush.bf16.msrb.mxu3 %v3147_v4  ;;  %v3274_v44 = vld [vmem:[%s5721_s1 + $0x2b0] sm:$0xf]  ;;  %v2714_v4 = vld [vmem:[%s5720_s0 + $0x8] sm:$0xf] }
  0x57   :  { %1239 = vmatmul.bf16.gmra.mxu2 %v4429_v63  ;;  %1190 = vmatmul.bf16.gmra.mxu1 %v4431_v0  ;;  %v3275_v9 = vor.u32 %v3639_v5, %v3274_v44  ;;  %v3500_v44 = vld [vmem:[%s5720_s0 + $0x20] sm:$0xf0]  ;;  %v2882_v5 = vld [vmem:[%s5720_s0 + $0x158] sm:$0xf] }
  0x58   :  { %1419 = vmatpush.bf16.msrb.mxu2 %v3315_v35  ;;  %v3617_v35 = vld [vmem:[%s5721_s1 + $0x204] sm:$0xf0] }
  0x59   :  { %1367 = vmatpush.bf16.msrb.mxu1 %v3275_v9  ;;  %v3542_v9 = vld [vmem:[%s5720_s0 + $0x170] sm:$0xf0] }
  0x5a   :  { %1172 = vmatpush.bf16.msrb.mxu0 %v4261_v53  ;;  %v3605_v53 = vld [vmem:[%s5721_s1 + $0x1a4] sm:$0xf0]  ;;  %v4621_v14 = vor.u32 %v3542_v9, %v2882_v5  ;;  %v2980_v5 = vld [vmem:[%s5721_s1 + $0x68] sm:$0xf0]  ;;  %v3596_v9 = vld [vmem:[%s5721_s1 + $0x164] sm:$0xf] }
  0x5b   :  { %v3139_v12 = vor.u32 %v3605_v53, %v3138_v6  ;;  %v3538_v53 = vld [vmem:[%s5720_s0 + $0x154] sm:$0xf] }
  0x5c   :  { %v4623_v19 = vor.u32 %v3538_v53, %v2876_v10  ;;  %v3108_v53 = vld [vmem:[%s5721_s1 + $0x168] sm:$0xf0]  ;;  %v3187_v10 = vor.u32 %v3617_v35, %v3186_v60 }
  0x5d   :  { %1270 = vmatpush.bf16.msrb.mxu3 %v3139_v12  ;;  %v3509_v60 = vld [vmem:[%s5720_s0 + $0x68] sm:$0xf0] }
  0x5e   :  { %1173 = vmatpush.bf16.msrb.mxu0 %v4297_v2  ;;  %v2708_v2 = vld [vmem:[%s5720_s0 + $0x1c] sm:$0xf0]  ;;  %v3505_v35 = vld [vmem:[%s5720_s0 + $0x4c] sm:$0xf] }
  0x5f   :  { %v4485_v23 = vor.u32 %v3496_v13, %v2708_v2  ;;  %v4613_v13 = vor.u32 %v3500_v44, %v2714_v4  ;;  %v3627_v2 = vld [vmem:[%s5721_s1 + $0x254] sm:$0xf0]  ;;  %v3052_v4 = vld [vmem:[%s5721_s1 + $0xf8] sm:$0xf0]  ;;  %v3564_v44 = vld [vmem:[%s5721_s1 + $0x64] sm:$0xf] }
  0x61   :  { %1271 = vmatpush.bf16.msrb.mxu3 %v3131_v37  ;;  %v3116_v37 = vld [vmem:[%s5721_s1 + $0x178] sm:$0xf0] }
  0x62   :  { %1174 = vmatpush.bf16.msrb.mxu0 %v4330_v18  ;;  %v3266_v18 = vld [vmem:[%s5721_s1 + $0x2a0] sm:$0xf] }
  0x65   :  { %1146 = vmatmul.bf16.gmra.mxu3 %v4483_v22  ;;  %1175 = vmatmul.bf16.vlgmr.msrb.gmra.mxu0 %v4485_v23 }
  0x66   :  { %1216 = vmatpush.bf16.msra.mxu0 %v4139_v7  ;;  %v3637_v7 = vld [vmem:[%s5721_s1 + $0x2a4] sm:$0xf0] }
  0x67   :  { %1244 = vmatmul.bf16.gmra.mxu2 %v4488_v24  ;;  %1195 = vmatmul.bf16.gmra.mxu1 %v4490_v29  ;;  %v3267_v36 = vor.u32 %v3637_v7, %v3266_v18  ;;  %v3625_v18 = vld [vmem:[%s5721_s1 + $0x244] sm:$0xf0]  ;;  %v3566_v7 = vld [vmem:[%s5721_s1 + $0x74] sm:$0xf] }
  0x68   :  { %v2991_v33 = vor.u32 %v3566_v7, %v2988_v30  ;;  %v2722_v30 = vld [vmem:[%s5720_s0 + $0x10] sm:$0xf] }
  0x69   :  { %1368 = vmatpush.bf16.msrb.mxu1 %v3267_v36  ;;  %v3598_v36 = vld [vmem:[%s5721_s1 + $0x174] sm:$0xf] }
  0x6a   :  { %1217 = vmatpush.bf16.msra.mxu0 %v4163_v16  ;;  %v2846_v16 = vld [vmem:[%s5720_s0 + $0x118] sm:$0xf] }
  0x6b   :  { %v4535_v45 = vor.u32 %v3534_v38, %v2846_v16  ;;  %v3219_v16 = vor.u32 %v3625_v18, %v3218_v21  ;;  %v3119_v38 = vor.u32 %v3598_v36, %v3116_v37  ;;  %v3497_v21 = vld [vmem:[%s5720_s0 + $0xc] sm:$0xf]  ;;  %v2716_v18 = vld [vmem:[%s5720_s0 + $0x24] sm:$0xf0]  ;;  %v2730_v36 = vld [vmem:[%s5720_s0 + $0x18] sm:$0xf] }
  0x6c   :  { %v3502_v37 = vld [vmem:[%s5720_s0 + $0x30] sm:$0xf0] }
  0x6e   :  { %1218 = vmatpush.bf16.msra.mxu0 %v4187_v25  ;;  %v2854_v25 = vld [vmem:[%s5720_s0 + $0x120] sm:$0xf] }
  0x6f   :  { %v4539_v47 = vor.u32 %v3535_v40, %v2854_v25  ;;  %v2902_v25 = vld [vmem:[%s5720_s0 + $0x188] sm:$0xf]  ;;  %v3211_v40 = vor.u32 %v3623_v8, %v3210_v39  ;;  %v4755_v39 = vor.u32 %v3497_v21, %v2716_v18  ;;  %v3576_v21 = vld [vmem:[%s5721_s1 + $0xc4] sm:$0xf]  ;;  %v3028_v18 = vld [vmem:[%s5721_s1 + $0xc8] sm:$0xf0] }
  0x72   :  { %1219 = vmatpush.bf16.msra.mxu0 %v4211_v34  ;;  %v3258_v34 = vld [vmem:[%s5721_s1 + $0x290] sm:$0xf] }
  0x73   :  { %v3259_v49 = vor.u32 %v3635_v48, %v3258_v34  ;;  %v3621_v34 = vld [vmem:[%s5721_s1 + $0x224] sm:$0xf0]  ;;  %v2742_v48 = vld [vmem:[%s5720_s0 + $0x40] sm:$0xf] }
  0x74   :  { %v3203_v26 = vor.u32 %v3621_v34, %v3202_v42  ;;  %v2972_v42 = vld [vmem:[%s5721_s1 + $0x58] sm:$0xf0] }
  0x75   :  { %1151 = vmatmul.bf16.gmra.mxu3 %v4535_v45  ;;  %1180 = vmatmul.bf16.gmra.mxu0 %v4537_v46 }
  0x76   :  { %1220 = vmatpush.bf16.msra.mxu0 %v4235_v43  ;;  %v3122_v43 = vld [vmem:[%s5721_s1 + $0x180] sm:$0xf]  ;;  %1369 = vmatpush.bf16.msrb.mxu1 %v3259_v49  ;;  %v2910_v49 = vld [vmem:[%s5720_s0 + $0x190] sm:$0xf] }
  0x77   :  { %1249 = vmatmul.bf16.gmra.mxu2 %v4539_v47  ;;  %1200 = vmatmul.bf16.gmra.mxu1 %v4541_v17  ;;  %v3123_v51 = vor.u32 %v3601_v50, %v3122_v43  ;;  %v3507_v43 = vld [vmem:[%s5720_s0 + $0x58] sm:$0xf0]  ;;  %v3549_v50 = vld [vmem:[%s5720_s0 + $0x1a8] sm:$0xf0] }
  0x78   :  { %v4693_v58 = vor.u32 %v3549_v50, %v2910_v49  ;;  %v2750_v49 = vld [vmem:[%s5720_s0 + $0x48] sm:$0xf]  ;;  %v3578_v50 = vld [vmem:[%s5721_s1 + $0xd4] sm:$0xf] }
  0x79   :  { %1272 = vmatpush.bf16.msrb.mxu3 %v3123_v51  ;;  %v3545_v51 = vld [vmem:[%s5720_s0 + $0x18c] sm:$0xf] }
  0x7a   :  { %1221 = vmatpush.bf16.msra.mxu0 %v4259_v52  ;;  %v2874_v52 = vld [vmem:[%s5720_s0 + $0x150] sm:$0xf]  ;;  %5757 = vst [vmem:[#allocation24_spill] sm:$0xff] %v4693_v58 }
  0x7b   :  { %v4611_v12 = vor.u32 %v3541_v55, %v2874_v52  ;;  %v4683_v52 = vor.u32 %v3548_v41, %v2902_v25  ;;  %v4685_v55 = vor.u32 %v3507_v43, %v2742_v48  ;;  %v4759_v25 = vor.u32 %v3502_v37, %v2730_v36  ;;  %v3562_v41 = vld [vmem:[%s5721_s1 + $0x54] sm:$0xf]  ;;  %v3504_v48 = vld [vmem:[%s5720_s0 + $0x44] sm:$0xf]  ;;  %v2744_v43 = vld [vmem:[%s5720_s0 + $0x5c] sm:$0xf0] }
  0x7c   :  { %v2975_v34 = vor.u32 %v3562_v41, %v2972_v42  ;;  %v3031_v36 = vor.u32 %v3576_v21, %v3028_v18  ;;  %v3092_v37 = vld [vmem:[%s5721_s1 + $0x148] sm:$0xf0]  ;;  %v2780_v41 = vld [vmem:[%s5720_s0 + $0x9c] sm:$0xf0]  ;;  %v3574_v21 = vld [vmem:[%s5721_s1 + $0xb4] sm:$0xf] }
  0x7d   :  { %1461 = vmatpush.bf16.msra.mxu3 %v2991_v33  ;;  %5756 = vst [vmem:[#allocation23_spill] sm:$0xff] %v4683_v52  ;;  %v3501_v33 = vld [vmem:[%s5720_s0 + $0x28] sm:$0xf0]  ;;  %v3020_v18 = vld [vmem:[%s5721_s1 + $0xb8] sm:$0xf0] }
  0x7e   :  { %1222 = vmatpush.bf16.msra.mxu0 %v4295_v1  ;;  %v3250_v1 = vld [vmem:[%s5721_s1 + $0x280] sm:$0xf]  ;;  %v4757_v8 = vor.u32 %v3501_v33, %v2722_v30  ;;  %5760 = vst [vmem:[#allocation27_spill] sm:$0xff] %v4759_v25  ;;  %v3515_v30 = vld [vmem:[%s5720_s0 + $0x98] sm:$0xf0] }
  0x7f   :  { %v3251_v6 = vor.u32 %v3633_v3, %v3250_v1  ;;  %v4695_v1 = vor.u32 %v3545_v51, %v2904_v54  ;;  %v3582_v3 = vld [vmem:[%s5721_s1 + $0xf4] sm:$0xf]  ;;  %v3036_v51 = vld [vmem:[%s5721_s1 + $0xd8] sm:$0xf0]  ;;  %v2786_v33 = vld [vmem:[%s5720_s0 + $0x88] sm:$0xf] }
  0x80   :  { %5759 = vst [vmem:[#allocation26_spill] sm:$0xff] %v4757_v8  ;;  %v3594_v54 = vld [vmem:[%s5721_s1 + $0x154] sm:$0xf] }
  0x81   :  { %1370 = vmatpush.bf16.msrb.mxu1 %v3251_v6  ;;  %5758 = vst [vmem:[#allocation25_spill] sm:$0xff] %v4695_v1  ;;  %v2983_v6 = vor.u32 %v3564_v44, %v2980_v5  ;;  %v4810_v44 = vor.u32 %v3504_v48, %v2744_v43  ;;  %v317_v43 = vld [vmem:[#allocation2] sm:$0x3] }
  0x82   :  { %1223 = vmatpush.bf16.msra.mxu0 %v4328_v15  ;;  %v3226_v15 = vld [vmem:[%s5721_s1 + $0x250] sm:$0xf] }
  0x83   :  { %v3227_v20 = vor.u32 %v3627_v2, %v3226_v15  ;;  %v3055_v15 = vor.u32 %v3582_v3, %v3052_v4  ;;  %1462 = vmatpush.bf16.msra.mxu3 %v2983_v6  ;;  %v3580_v2 = vld [vmem:[%s5721_s1 + $0xe4] sm:$0xf]  ;;  %v2752_v3 = vld [vmem:[%s5720_s0 + $0x64] sm:$0xf0] }
  0x85   :  { %1156 = vmatmul.bf16.gmra.mxu3 %v4611_v12  ;;  %1224 = vmatmul.bf16.vlgmr.msra.gmra.mxu0 %v4613_v13 }
  0x86   :  { %1314 = vmatpush.bf16.msrb.mxu0 %v3243_v56  ;;  %1559 = vmatpush.bf16.msra.mxu1 %v3119_v38  ;;  %v3194_v56 = vld [vmem:[%s5721_s1 + $0x210] sm:$0xf] }
  0x87   :  { %1254 = vmatmul.bf16.gmra.mxu2 %v4621_v14  ;;  %1205 = vmatmul.bf16.gmra.mxu1 %v4623_v19  ;;  %v3195_v59 = vor.u32 %v3619_v57, %v3194_v56  ;;  %v2724_v38 = vld [vmem:[%s5720_s0 + $0x2c] sm:$0xf0]  ;;  %v3039_v57 = vor.u32 %v3578_v50, %v3036_v51 }
  0x88   :  { %1463 = vmatpush.bf16.msra.mxu3 %v2975_v34  ;;  %v2758_v56 = vld [vmem:[%s5720_s0 + $0x50] sm:$0xf] }
  0x89   :  { %v4814_v6 = vor.u32 %v3509_v60, %v2758_v56  ;;  %v3558_v56 = vld [vmem:[%s5721_s1 + $0x34] sm:$0xf] }
  0x8a   :  { %1315 = vmatpush.bf16.msrb.mxu0 %v3235_v11  ;;  %v3111_v11 = vor.u32 %v3596_v9, %v3108_v53  ;;  %v4816_v9 = vor.u32 %v3505_v35, %v2752_v3  ;;  %v3560_v53 = vld [vmem:[%s5721_s1 + $0x44] sm:$0xf] }
  0x8b   :  { %5763 = vst [vmem:[#allocation30_spill] sm:$0xff] %v4814_v6 }
  0x8c   :  { %1560 = vmatpush.bf16.msra.mxu1 %v3111_v11  ;;  %5764 = vst [vmem:[#allocation31_spill] sm:$0xff] %v4816_v9 }
  0x8e   :  { %1316 = vmatpush.bf16.msrb.mxu0 %v3227_v20  ;;  %v3044_v20 = vld [vmem:[%s5721_s1 + $0xe8] sm:$0xf0] }
  0x8f   :  { %v3047_v7 = vor.u32 %v3580_v2, %v3044_v20  ;;  %v2772_v2 = vld [vmem:[%s5720_s0 + $0x94] sm:$0xf0]  ;;  %v2778_v20 = vld [vmem:[%s5720_s0 + $0x80] sm:$0xf] }
  0x90   :  { %v4867_v48 = vor.u32 %v3515_v30, %v2778_v20  ;;  %v3522_v30 = vld [vmem:[%s5720_s0 + $0xd0] sm:$0xf0] }
  0x92   :  { %1317 = vmatpush.bf16.msrb.mxu0 %v3219_v16  ;;  %v3498_v16 = vld [vmem:[%s5720_s0 + $0x14] sm:$0xf]  ;;  %5765 = vst [vmem:[#allocation32_spill] sm:$0xff] %v4867_v48 }
  0x95   :  { %1161 = vmatmul.bf16.gmra.mxu3 %v4683_v52  ;;  %1229 = vmatmul.bf16.gmra.mxu0 %v4685_v55 }
  0x96   :  { %1318 = vmatpush.bf16.msrb.mxu0 %v3211_v40  ;;  %v4761_v40 = vor.u32 %v3498_v16, %v2724_v38  ;;  %v3516_v16 = vld [vmem:[%s5720_s0 + $0xa0] sm:$0xf0] }
  0x97   :  { %1259 = vmatmul.bf16.gmra.mxu2 %v4693_v58  ;;  %1210 = vmatmul.bf16.gmra.mxu1 %v4695_v1  ;;  %v3512_v38 = vld [vmem:[%s5720_s0 + $0x84] sm:$0xf]  ;;  %v4871_v50 = vor.u32 %v3516_v16, %v2786_v33  ;;  %v2814_v33 = vld [vmem:[%s5720_s0 + $0xc0] sm:$0xf]  ;;  %v3523_v16 = vld [vmem:[%s5720_s0 + $0xd8] sm:$0xf0] }
  0x98   :  { %5761 = vst [vmem:[#allocation28_spill] sm:$0xff] %v4761_v40  ;;  %v4873_v51 = vor.u32 %v3512_v38, %v2780_v41  ;;  %v3519_v38 = vld [vmem:[%s5720_s0 + $0xbc] sm:$0xf]  ;;  %v2808_v41 = vld [vmem:[%s5720_s0 + $0xd4] sm:$0xf0] }
  0x99   :  { %5766 = vst [vmem:[#allocation33_spill] sm:$0xff] %v4871_v50 }
  0x9a   :  { %1319 = vmatpush.bf16.msrb.mxu0 %v3203_v26  ;;  %v3508_v26 = vld [vmem:[%s5720_s0 + $0x60] sm:$0xf0]  ;;  %5767 = vst [vmem:[#allocation34_spill] sm:$0xff] %v4873_v51 }
  0x9b   :  { %v4812_v5 = vor.u32 %v3508_v26, %v2750_v49  ;;  %v4875_v26 = vperm.slane %v317_v43, 0 }
  0x9d   :  { %5762 = vst [vmem:[#allocation29_spill] sm:$0xff] %v4812_v5 }
  0x9e   :  { %1320 = vmatpush.bf16.msrb.mxu0 %v3195_v59  ;;  %v3100_v59 = vld [vmem:[%s5721_s1 + $0x158] sm:$0xf0] }
  0x9f   :  { %v3103_v4 = vor.u32 %v3594_v54, %v3100_v59 }
  0xa1   :  { %1561 = vmatpush.bf16.msra.mxu1 %v3103_v4 }
  0xa2   :  { %1321 = vmatpush.bf16.msrb.mxu0 %v3187_v10  ;;  %v2964_v10 = vld [vmem:[%s5721_s1 + $0x48] sm:$0xf0] }
  0xa3   :  { %v2967_v11 = vor.u32 %v3560_v53, %v2964_v10 }
  0xa5   :  { %1273 = vmatmul.bf16.vlgmr.msrb.gmra.mxu3 %v4755_v39  ;;  %1322 = vmatmul.bf16.vlgmr.msrb.gmra.mxu0 %v4757_v8 }
  0xa6   :  { %1510 = vmatpush.bf16.msra.mxu0 %v3055_v15  ;;  %1464 = vmatpush.bf16.msra.mxu3 %v2967_v11  ;;  %v3511_v15 = vld [vmem:[%s5720_s0 + $0x7c] sm:$0xf]  ;;  %v3518_v11 = vld [vmem:[%s5720_s0 + $0xb4] sm:$0xf] }
  0xa7   :  { %3320 = vmatmul.msk.bf16.vlgmr.msrb.gmra.mxu2 %vm1093_vm0, %v4759_v25  ;;  %1371 = vmatmul.bf16.vlgmr.msrb.gmra.mxu1 %v4761_v40  ;;  %v4865_v34 = vor.u32 %v3511_v15, %v2772_v2  ;;  %v2800_v15 = vld [vmem:[%s5720_s0 + $0xcc] sm:$0xf0]  ;;  %v2806_v2 = vld [vmem:[%s5720_s0 + $0xb8] sm:$0xf] }
  0xaa   :  { %1511 = vmatpush.bf16.msra.mxu0 %v3047_v7  ;;  %v3592_v7 = vld [vmem:[%s5721_s1 + $0x144] sm:$0xf] }
  0xab   :  { %v3095_v42 = vor.u32 %v3592_v7, %v3092_v37  ;;  %v3590_v7 = vld [vmem:[%s5721_s1 + $0x134] sm:$0xf]  ;;  %v3084_v37 = vld [vmem:[%s5721_s1 + $0x138] sm:$0xf0] }
  0xad   :  { %1562 = vmatpush.bf16.msra.mxu1 %v3095_v42  ;;  %v3087_v42 = vor.u32 %v3590_v7, %v3084_v37 }
  0xae   :  { %1512 = vmatpush.bf16.msra.mxu0 %v3039_v57  ;;  %v2956_v57 = vld [vmem:[%s5721_s1 + $0x38] sm:$0xf0] }
  0xaf   :  { %v2959_v59 = vor.u32 %v3558_v56, %v2956_v57  ;;  %v4930_v57 = vor.u32 %v3518_v11, %v2800_v15  ;;  %v3556_v11 = vld [vmem:[%s5721_s1 + $0x24] sm:$0xf] }
  0xb1   :  { %1465 = vmatpush.bf16.msra.mxu3 %v2959_v59  ;;  %v4932_v59 = vor.u32 %v3522_v30, %v2806_v2  ;;  %1563 = vmatpush.bf16.msra.mxu1 %v3087_v42 }
  0xb2   :  { %1513 = vmatpush.bf16.msra.mxu0 %v3031_v36  ;;  %v3023_v36 = vor.u32 %v3574_v21, %v3020_v18 }
  0xb3   :  { %5768 = vst [vmem:[#allocation35_spill] sm:$0xff] %v4932_v59 }
  0xb5   :  { %1278 = vmatmul.bf16.gmra.mxu3 %v4810_v44  ;;  %1327 = vmatmul.bf16.gmra.mxu0 %v4812_v5 }
  0xb6   :  { %1514 = vmatpush.bf16.msra.mxu0 %v3023_v36 }
  0xb7   :  { %3321 = vmatmul.msk.bf16.gmra.mxu2 %vm1093_vm0, %v4814_v6  ;;  %1376 = vmatmul.bf16.gmra.mxu1 %v4816_v9 }
  0xc2   :  { %v4869_v49 = vpop.f32.mrf.mxu0 }
  0xc4   :  { %v1186_v54 = vpop.f32.mrf.mxu1 }
  0xc5   :  { %1283 = vmatmul.bf16.gmra.mxu3 %v4865_v34  ;;  %1332 = vmatmul.bf16.gmra.mxu0 %v4867_v48 }
  0xc7   :  { %3322 = vmatmul.msk.bf16.gmra.mxu2 %vm1093_vm0, %v4871_v50  ;;  %1381 = vmatmul.bf16.gmra.mxu1 %v4873_v51 }
  0xc8   :  { %v1137_v60 = vpop.f32.mrf.mxu3 }
  0xc9   :  { %v1138_v35 = vadd.f32 %v1137_v60, %v4875_v26 }
  0xca   :  { %v1235_v3 = vpop.f32.mrf.mxu2  ;;  %v4889_v4 = vpop.f32.mrf.mxu0 }
  0xcb   :  { %v1187_v53 = vadd.f32 %v1186_v54, %v1138_v35  ;;  %v4936_v35 = vor.u32 %v3523_v16, %v2814_v33  ;;  %v3525_v16 = vld [vmem:[%s5720_s0 + $0xec] sm:$0xf] }
  0xcc   :  { %v1188_v10 = vpop.f32.mrf.mxu1 }
  0xcd   :  { %v4900_v20 = vadd.f32 %v1235_v3, %v1187_v53  ;;  %5769 = vst [vmem:[#allocation36_spill] sm:$0xff] %v4936_v35  ;;  %v4938_v3 = vor.u32 %v3519_v38, %v2808_v41  ;;  %v2828_v38 = vld [vmem:[%s5720_s0 + $0x104] sm:$0xf0]  ;;  %v2834_v41 = vld [vmem:[%s5720_s0 + $0xf0] sm:$0xf] }
  0xcf   :  { %5770 = vst [vmem:[#allocation37_spill] sm:$0xff] %v4938_v3 }
  0xd0   :  { %v1139_v43 = vpop.f32.mrf.mxu3 }
  0xd1   :  { %v1140_v54 = vadd.f32 %v1139_v43, %v4875_v26  ;;  %v3572_v43 = vld [vmem:[%s5721_s1 + $0xa4] sm:$0xf] }
  0xd2   :  { %v1237_v56 = vpop.f32.mrf.mxu2  ;;  %v4934_v60 = vpop.f32.mrf.mxu0 }
  0xd3   :  { %v1189_v53 = vadd.f32 %v1188_v10, %v1140_v54  ;;  %v2948_v10 = vld [vmem:[%s5721_s1 + $0x28] sm:$0xf0] }
  0xd4   :  { %v1191_v21 = vpop.f32.mrf.mxu1  ;;  %v2951_v15 = vor.u32 %v3556_v11, %v2948_v10  ;;  %v3012_v54 = vld [vmem:[%s5721_s1 + $0xa8] sm:$0xf0] }
  0xd5   :  { %v4940_v18 = vadd.f32 %v1237_v56, %v1189_v53  ;;  %1288 = vmatmul.bf16.gmra.mxu3 %v4930_v57  ;;  %1337 = vmatmul.bf16.gmra.mxu0 %v4932_v59  ;;  %v3588_v56 = vld [vmem:[%s5721_s1 + $0x124] sm:$0xf]  ;;  %v3529_v53 = vld [vmem:[%s5720_s0 + $0x108] sm:$0xf0]  ;;  %v3015_v11 = vor.u32 %v3572_v43, %v3012_v54  ;;  %v1128_v43 = vadd.f32 %v4869_v49, %v4875_v26  ;;  %v3614_v49 = vld [vmem:[%s5721_s1 + $0x1f4] sm:$0xf] }
  0xd6   :  { %1466 = vmatpush.bf16.msra.mxu3 %v2951_v15  ;;  %v3076_v10 = vld [vmem:[%s5721_s1 + $0x128] sm:$0xf0]  ;;  %v3530_v15 = vld [vmem:[%s5720_s0 + $0x110] sm:$0xf0]  ;;  %v4999_v59 = vor.u32 %v3529_v53, %v2834_v41  ;;  %v3612_v41 = vld [vmem:[%s5721_s1 + $0x1e4] sm:$0xf] }
  0xd7   :  { %3323 = vmatmul.msk.bf16.gmra.mxu2 %vm1093_vm0, %v4936_v35  ;;  %1386 = vmatmul.bf16.gmra.mxu1 %v4938_v3  ;;  %v4997_v3 = vor.u32 %v3525_v16, %v2828_v38  ;;  %v3180_v16 = vld [vmem:[%s5721_s1 + $0x1f8] sm:$0xf0]  ;;  %v3172_v53 = vld [vmem:[%s5721_s1 + $0x1e8] sm:$0xf0] }
  0xd8   :  { %v1142_v2 = vpop.f32.mrf.mxu3  ;;  %1515 = vmatpush.bf16.msra.mxu0 %v3015_v11  ;;  %5771 = vst [vmem:[#allocation38_spill] sm:$0xff] %v4999_v59 }
  0xd9   :  { %v1143_v7 = vadd.f32 %v1142_v2, %v4875_v26  ;;  %v3526_v2 = vld [vmem:[%s5720_s0 + $0xf4] sm:$0xf] }
  0xda   :  { %v1240_v30 = vpop.f32.mrf.mxu2  ;;  %v4954_v33 = vpop.f32.mrf.mxu0 }
  0xdb   :  { %v1192_v36 = vadd.f32 %v1191_v21, %v1143_v7  ;;  %v2842_v21 = vld [vmem:[%s5720_s0 + $0xf8] sm:$0xf]  ;;  %v2836_v7 = vld [vmem:[%s5720_s0 + $0x10c] sm:$0xf0] }
  0xdc   :  { %v1193_v37 = vpop.f32.mrf.mxu1  ;;  %v5001_v51 = vor.u32 %v3530_v15, %v2842_v21  ;;  %v5003_v48 = vor.u32 %v3526_v2, %v2836_v7  ;;  %v1130_v21 = vadd.f32 %v4889_v4, %v4875_v26  ;;  %v3175_v7 = vor.u32 %v3612_v41, %v3172_v53  ;;  %v2862_v4 = vld [vmem:[%s5720_s0 + $0x128] sm:$0xf]  ;;  %v3586_v41 = vld [vmem:[%s5721_s1 + $0x114] sm:$0xf]  ;;  %v3536_v53 = vld [vmem:[%s5720_s0 + $0x140] sm:$0xf0] }
  0xdd   :  { %v4965_v42 = vadd.f32 %v1240_v30, %v1192_v36  ;;  %v3079_v30 = vor.u32 %v3588_v56, %v3076_v10 }
  0xde   :  { %5772 = vst [vmem:[#allocation39_spill] sm:$0xff] %v5001_v51 }
  0xdf   :  { %1564 = vmatpush.bf16.msra.mxu1 %v3079_v30  ;;  %5773 = vst [vmem:[#allocation40_spill] sm:$0xff] %v5003_v48 }
  0xe0   :  { %v1144_v36 = vpop.f32.mrf.mxu3 }
  0xe1   :  { %v1145_v54 = vadd.f32 %v1144_v36, %v4875_v26 }
  0xe2   :  { %v1242_v35 = vpop.f32.mrf.mxu2  ;;  %v1176_v50 = vpop.f32.mrf.mxu0 }
  0xe3   :  { %v1194_v6 = vadd.f32 %v1193_v37, %v1145_v54  ;;  %v5005_v56 = vadd.f32 %v1176_v50, %v1128_v43  ;;  %v2940_v50 = vld [vmem:[%s5721_s1 + $0x18] sm:$0xf0] }
  0xe4   :  { %v1196_v11 = vpop.f32.mrf.mxu1 }
  0xe5   :  { %v5007_v10 = vadd.f32 %v1242_v35, %v1194_v6  ;;  %1293 = vmatmul.bf16.gmra.mxu3 %v4997_v3  ;;  %1342 = vmatmul.bf16.gmra.mxu0 %v4999_v59  ;;  %v3554_v6 = vld [vmem:[%s5721_s1 + $0x14] sm:$0xf]  ;;  %v3183_v35 = vor.u32 %v3614_v49, %v3180_v16  ;;  %v3532_v49 = vld [vmem:[%s5720_s0 + $0x124] sm:$0xf]  ;;  %v2856_v16 = vld [vmem:[%s5720_s0 + $0x13c] sm:$0xf0] }
  0xe6   :  { %v2943_v37 = vor.u32 %v3554_v6, %v2940_v50  ;;  %v3164_v6 = vld [vmem:[%s5721_s1 + $0x1d8] sm:$0xf0]  ;;  %v5090_v9 = vor.u32 %v3532_v49, %v2856_v16 }
  0xe7   :  { %3324 = vmatmul.msk.bf16.gmra.mxu2 %vm1093_vm0, %v5001_v51  ;;  %1391 = vmatmul.bf16.gmra.mxu1 %v5003_v48  ;;  %v3156_v51 = vld [vmem:[%s5721_s1 + $0x1c8] sm:$0xf0]  ;;  %v3148_v49 = vld [vmem:[%s5721_s1 + $0x1b8] sm:$0xf0] }
  0xe8   :  { %v1147_v38 = vpop.f32.mrf.mxu3  ;;  %1608 = vmatpush.bf16.msra.mxu2 %v3183_v35  ;;  %1467 = vmatpush.bf16.msra.mxu3 %v2943_v37  ;;  %v3570_v35 = vld [vmem:[%s5721_s1 + $0x94] sm:$0xf]  ;;  %v3004_v37 = vld [vmem:[%s5721_s1 + $0x98] sm:$0xf0] }
  0xe9   :  { %v1148_v15 = vadd.f32 %v1147_v38, %v4875_v26 }
  0xea   :  { %v1245_v2 = vpop.f32.mrf.mxu2  ;;  %v1178_v30 = vpop.f32.mrf.mxu0 }
  0xeb   :  { %v1197_v36 = vadd.f32 %v1196_v11, %v1148_v15  ;;  %v5035_v43 = vadd.f32 %v1178_v30, %v1130_v21  ;;  %v3610_v11 = vld [vmem:[%s5721_s1 + $0x1d4] sm:$0xf]  ;;  %v2870_v21 = vld [vmem:[%s5720_s0 + $0x130] sm:$0xf]  ;;  %v3007_v15 = vor.u32 %v3570_v35, %v3004_v37  ;;  %v3533_v30 = vld [vmem:[%s5720_s0 + $0x12c] sm:$0xf] }
  0xec   :  { %v1198_v54 = vpop.f32.mrf.mxu1  ;;  %1609 = vmatpush.bf16.msra.mxu2 %v3175_v7  ;;  %v3167_v38 = vor.u32 %v3610_v11, %v3164_v6  ;;  %v3537_v7 = vld [vmem:[%s5720_s0 + $0x148] sm:$0xf0]  ;;  %v1133_v6 = vadd.f32 %v4934_v60, %v4875_v26  ;;  %v3608_v37 = vld [vmem:[%s5721_s1 + $0x1c4] sm:$0xf] }
  0xed   :  { %v5052_v50 = vadd.f32 %v1245_v2, %v1197_v36  ;;  %v3068_v2 = vld [vmem:[%s5721_s1 + $0x118] sm:$0xf0]  ;;  %v2864_v36 = vld [vmem:[%s5720_s0 + $0x144] sm:$0xf0]  ;;  %1516 = vmatpush.bf16.msra.mxu0 %v3007_v15  ;;  %v3159_v60 = vor.u32 %v3608_v37, %v3156_v51  ;;  %v5094_v15 = vor.u32 %v3537_v7, %v2870_v21  ;;  %v3606_v51 = vld [vmem:[%s5721_s1 + $0x1b4] sm:$0xf]  ;;  %v1135_v21 = vadd.f32 %v4954_v33, %v4875_v26 }
  0xee   :  { %v3071_v11 = vor.u32 %v3586_v41, %v3068_v2  ;;  %v5092_v41 = vor.u32 %v3536_v53, %v2862_v4  ;;  %v3604_v4 = vld [vmem:[%s5721_s1 + $0x1a4] sm:$0xf]  ;;  %v3140_v53 = vld [vmem:[%s5721_s1 + $0x1a8] sm:$0xf0]  ;;  %v2890_v33 = vld [vmem:[%s5720_s0 + $0x160] sm:$0xf] }
  0xef   :  { %5775 = vst [vmem:[#allocation42_spill] sm:$0xff] %v5094_v15 }
  0xf0   :  { %v1149_v35 = vpop.f32.mrf.mxu3  ;;  %1610 = vmatpush.bf16.msra.mxu2 %v3167_v38  ;;  %5774 = vst [vmem:[#allocation41_spill] sm:$0xff] %v5092_v41  ;;  %1565 = vmatpush.bf16.msra.mxu1 %v3071_v11  ;;  %v5096_v38 = vor.u32 %v3533_v30, %v2864_v36  ;;  %v3143_v36 = vor.u32 %v3604_v4, %v3140_v53  ;;  %v2898_v4 = vld [vmem:[%s5720_s0 + $0x168] sm:$0xf] }
  0xf1   :  { %v1150_v48 = vadd.f32 %v1149_v35, %v4875_v26 }
  0xf2   :  { %v1247_v59 = vpop.f32.mrf.mxu2  ;;  %v1181_v2 = vpop.f32.mrf.mxu0  ;;  %5776 = vst [vmem:[#allocation43_spill] sm:$0xff] %v5096_v38 }
  0xf3   :  { %v1199_v5 = vadd.f32 %v1198_v54, %v1150_v48  ;;  %v5098_v25 = vadd.f32 %v1181_v2, %v1133_v6  ;;  %v2932_v48 = vld [vmem:[%s5721_s1 + $0x8] sm:$0xf0]  ;;  %v2884_v2 = vld [vmem:[%s5720_s0 + $0x174] sm:$0xf0] }
  0xf4   :  { %v1201_v40 = vpop.f32.mrf.mxu1  ;;  %1611 = vmatpush.bf16.msra.mxu2 %v3159_v60  ;;  %v3539_v60 = vld [vmem:[%s5720_s0 + $0x15c] sm:$0xf] }
  0xf5   :  { %v5100_v8 = vadd.f32 %v1247_v59, %v1199_v5  ;;  %1298 = vmatmul.bf16.gmra.mxu3 %v5090_v9  ;;  %1347 = vmatmul.bf16.gmra.mxu0 %v5092_v41  ;;  %v3552_v5 = vld [vmem:[%s5721_s1 + $0x4] sm:$0xf]  ;;  %v3151_v59 = vor.u32 %v3606_v51, %v3148_v49  ;;  %v3132_v51 = vld [vmem:[%s5721_s1 + $0x198] sm:$0xf0] }
  0xf6   :  { %v2935_v54 = vor.u32 %v3552_v5, %v2932_v48  ;;  %v3568_v5 = vld [vmem:[%s5721_s1 + $0x84] sm:$0xf]  ;;  %v2996_v48 = vld [vmem:[%s5721_s1 + $0x88] sm:$0xf0] }
  0xf7   :  { %3325 = vmatmul.msk.bf16.gmra.mxu2 %vm1093_vm0, %v5094_v15  ;;  %1396 = vmatmul.bf16.gmra.mxu1 %v5096_v38  ;;  %v2999_v53 = vor.u32 %v3568_v5, %v2996_v48  ;;  %v5181_v15 = vor.u32 %v3539_v60, %v2884_v2 }
  0xf8   :  { %v1152_v16 = vpop.f32.mrf.mxu3  ;;  %1612 = vmatpush.bf16.msra.mxu2 %v3151_v59  ;;  %1468 = vmatpush.bf16.msra.mxu3 %v2935_v54  ;;  %v3584_v54 = vld [vmem:[%s5721_s1 + $0x104] sm:$0xf] }
  0xf9   :  { %v1153_v7 = vadd.f32 %v1152_v16, %v4875_v26  ;;  %v3543_v16 = vld [vmem:[%s5720_s0 + $0x178] sm:$0xf0]  ;;  %1517 = vmatpush.bf16.msra.mxu0 %v2999_v53 }
  0xfa   :  { %v1250_v30 = vpop.f32.mrf.mxu2  ;;  %v1183_v11 = vpop.f32.mrf.mxu0  ;;  %v5183_v38 = vor.u32 %v3543_v16, %v2890_v33 }
  0xfb   :  { %v1202_v6 = vadd.f32 %v1201_v40, %v1153_v7  ;;  %v5128_v35 = vadd.f32 %v1183_v11, %v1135_v21  ;;  %v3602_v40 = vld [vmem:[%s5721_s1 + $0x194] sm:$0xf]  ;;  %v3060_v21 = vld [vmem:[%s5721_s1 + $0x108] sm:$0xf0]  ;;  %v3544_v7 = vld [vmem:[%s5720_s0 + $0x180] sm:$0xf0] }
  0xfc   :  { %v1203_v37 = vpop.f32.mrf.mxu1  ;;  %1613 = vmatpush.bf16.msra.mxu2 %v3143_v36  ;;  %v3135_v59 = vor.u32 %v3602_v40, %v3132_v51  ;;  %v2892_v36 = vld [vmem:[%s5720_s0 + $0x17c] sm:$0xf0]  ;;  %v3063_v11 = vor.u32 %v3584_v54, %v3060_v21  ;;  %v3600_v40 = vld [vmem:[%s5721_s1 + $0x184] sm:$0xf]  ;;  %v3124_v51 = vld [vmem:[%s5721_s1 + $0x188] sm:$0xf0]  ;;  %v5185_v53 = vor.u32 %v3544_v7, %v2898_v4 }
  0xfd   :  { %v5145_v49 = vadd.f32 %v1250_v30, %v1202_v6  ;;  %v3540_v30 = vld [vmem:[%s5720_s0 + $0x164] sm:$0xf]  ;;  %5777 = vst [vmem:[#allocation44_spill] sm:$0xff] %v5183_v38  ;;  %v3127_v54 = vor.u32 %v3600_v40, %v3124_v51  ;;  %v2918_v40 = vld [vmem:[%s5720_s0 + $0x198] sm:$0xf] }
  0xfe   :  { %1566 = vmatpush.bf16.msra.mxu1 %v3063_v11  ;;  %5778 = vst [vmem:[#allocation45_spill] sm:$0xff] %v5185_v53  ;;  %v3546_v11 = vld [vmem:[%s5720_s0 + $0x194] sm:$0xf]  ;;  %v3551_v51 = vld [vmem:[%s5720_s0 + $0x1b8] sm:$0xf0] }
 0x100   :  { %v1154_v6 = vpop.f32.mrf.mxu3  ;;  %1614 = vmatpush.bf16.msra.mxu2 %v3135_v59  ;;  %v5187_v59 = vor.u32 %v3540_v30, %v2892_v36 }
 0x101   :  { %v1155_v5 = vadd.f32 %v1154_v6, %v4875_v26  ;;  %v2912_v6 = vld [vmem:[%s5720_s0 + $0x1ac] sm:$0xf0] }
 0x102   :  { %v1252_v48 = vpop.f32.mrf.mxu2  ;;  %v1225_v21 = vpop.f32.mrf.mxu0  ;;  %5779 = vst [vmem:[#allocation46_spill] sm:$0xff] %v5187_v59 }
 0x103   :  { %v1204_v41 = vadd.f32 %v1203_v37, %v1155_v5  ;;  %v5190_v58 = vadd.f32 %v1225_v21, %v5005_v56  ;;  %v3630_v37 = vld [vmem:[%s5721_s1 + $0x274] sm:$0xf]  ;;  %v3244_v56 = vld [vmem:[%s5721_s1 + $0x278] sm:$0xf0] }
 0x104   :  { %v1206_v1 = vpop.f32.mrf.mxu1  ;;  %1615 = vmatpush.bf16.msra.mxu2 %v3127_v54  ;;  %v3247_v60 = vor.u32 %v3630_v37, %v3244_v56  ;;  %v3547_v5 = vld [vmem:[%s5720_s0 + $0x19c] sm:$0xf]  ;;  %v5236_v56 = vor.u32 %v3546_v11, %v2912_v6  ;;  %v3316_v6 = vld [vmem:[%s5721_s1 + $0x308] sm:$0xf0] }
 0x105   :  { %v5192_v52 = vadd.f32 %v1252_v48, %v1204_v41  ;;  %1303 = vmatmul.bf16.gmra.mxu3 %v5181_v15  ;;  %1352 = vmatmul.bf16.gmra.mxu0 %v5183_v38  ;;  %v2920_v48 = vld [vmem:[%s5720_s0 + $0x1b4] sm:$0xf0] }
 0x106   :  { %1657 = vmatpush.bf16.msrb.mxu3 %v3247_v60 }
 0x107   :  { %3326 = vmatmul.msk.bf16.gmra.mxu2 %vm1093_vm0, %v5185_v53  ;;  %1401 = vmatmul.bf16.gmra.mxu1 %v5187_v59 }
 0x108   :  { %v1157_v41 = vpop.f32.mrf.mxu3 }
 0x109   :  { %v1158_v2 = vadd.f32 %v1157_v41, %v4875_v26  ;;  %v3646_v41 = vld [vmem:[%s5721_s1 + $0x2f4] sm:$0xf] }
 0x10a   :  { %v1255_v33 = vpop.f32.mrf.mxu2  ;;  %v1227_v16 = vpop.f32.mrf.mxu0 }
 0x10b   :  { %v1207_v4 = vadd.f32 %v1206_v1, %v1158_v2  ;;  %v5207_v7 = vadd.f32 %v1227_v16, %v5035_v43  ;;  %v3550_v1 = vld [vmem:[%s5720_s0 + $0x1b0] sm:$0xf0]  ;;  %v2926_v43 = vld [vmem:[%s5720_s0 + $0x1a0] sm:$0xf]  ;;  %v3308_v2 = vld [vmem:[%s5721_s1 + $0x2f8] sm:$0xf0] }
 0x10c   :  { %v1208_v30 = vpop.f32.mrf.mxu1  ;;  %v5238_v60 = vor.u32 %v3550_v1, %v2918_v40  ;;  %v3311_v11 = vor.u32 %v3646_v41, %v3308_v2  ;;  %v3236_v41 = vld [vmem:[%s5721_s1 + $0x268] sm:$0xf0] }
 0x10d   :  { %v5209_v36 = vadd.f32 %v1255_v33, %v1207_v4  ;;  %v3648_v33 = vld [vmem:[%s5721_s1 + $0x304] sm:$0xf]  ;;  %v5249_v4 = vor.u32 %v3551_v51, %v2926_v43 }
 0x10e   :  { %v3319_v59 = vor.u32 %v3648_v33, %v3316_v6  ;;  %1706 = vmatpush.bf16.msrb.mxu0 %v3311_v11  ;;  %v3300_v11 = vld [vmem:[%s5721_s1 + $0x2e8] sm:$0xf0] }
 0x110   :  { %v1159_v54 = vpop.f32.mrf.mxu3  ;;  %1762 = vmatpush.bf16.msrb.mxu1 %v3319_v59 }
 0x111   :  { %v1160_v21 = vadd.f32 %v1159_v54, %v4875_v26  ;;  %v5251_v54 = vor.u32 %v3547_v5, %v2920_v48 }
 0x112   :  { %v1257_v37 = vpop.f32.mrf.mxu2  ;;  %v1230_v16 = vpop.f32.mrf.mxu0 }
 0x113   :  { %v1209_v40 = vadd.f32 %v1208_v30, %v1160_v21  ;;  %v5257_v1 = vadd.f32 %v1230_v16, %v5098_v25 }
 0x114   :  { %v1211_v53 = vpop.f32.mrf.mxu1 }
 0x115   :  { %v5259_v38 = vadd.f32 %v1257_v37, %v1209_v40  ;;  %1308 = vmatmul.bf16.gmra.mxu3 %v5236_v56  ;;  %1357 = vmatmul.bf16.gmra.mxu0 %v5238_v60  ;;  %v3628_v37 = vld [vmem:[%s5721_s1 + $0x264] sm:$0xf] }
 0x116   :  { %v3239_v2 = vor.u32 %v3628_v37, %v3236_v41  ;;  %v3228_v37 = vld [vmem:[%s5721_s1 + $0x258] sm:$0xf0] }
 0x117   :  { %3327 = vmatmul.msk.bf16.gmra.mxu2 %vm1093_vm0, %v5249_v4  ;;  %1406 = vmatmul.bf16.gmra.mxu1 %v5251_v54 }
 0x118   :  { %v1162_v43 = vpop.f32.mrf.mxu3  ;;  %1658 = vmatpush.bf16.msrb.mxu3 %v3239_v2 }
 0x119   :  { %v1163_v30 = vadd.f32 %v1162_v43, %v4875_v26 }
 0x11a   :  { %v1260_v25 = vpop.f32.mrf.mxu2  ;;  %v1232_v51 = vpop.f32.mrf.mxu0 }
 0x11b   :  { %v1212_v5 = vadd.f32 %v1211_v53, %v1163_v30  ;;  %v5268_v48 = vadd.f32 %v1232_v51, %v5128_v35  ;;  %v3644_v35 = vld [vmem:[%s5721_s1 + $0x2e4] sm:$0xf] }
 0x11c   :  { %v1213_v21 = vpop.f32.mrf.mxu1  ;;  %v3303_v40 = vor.u32 %v3644_v35, %v3300_v11  ;;  %v3292_v35 = vld [vmem:[%s5721_s1 + $0x2d8] sm:$0xf0] }
 0x11d   :  { %v5276_v59 = vadd.f32 %v1260_v25, %v1212_v5 }
 0x11e   :  { %1707 = vmatpush.bf16.msrb.mxu0 %v3303_v40 }
 0x120   :  { %v1164_v33 = vpop.f32.mrf.mxu3 }
 0x121   :  { %v1165_v16 = vadd.f32 %v1164_v33, %v4875_v26 }
 0x122   :  { %v1262_v53 = vpop.f32.mrf.mxu2  ;;  %v1323_v6 = vpop.f32.mrf.mxu0 }
 0x123   :  { %v1214_v43 = vadd.f32 %v1213_v21, %v1165_v16  ;;  %v3626_v21 = vld [vmem:[%s5721_s1 + $0x254] sm:$0xf] }
 0x124   :  { %v1372_v30 = vpop.f32.mrf.mxu1 }
 0x125   :  { %v5285_v25 = vadd.f32 %v1262_v53, %v1214_v43  ;;  %1469 = vmatmul.bf16.vlgmr.msra.gmra.mxu3 %v4347_v27  ;;  %1518 = vmatmul.bf16.vlgmr.msra.gmra.mxu0 %v4485_v23  ;;  %v3231_v27 = vor.u32 %v3626_v21, %v3228_v37  ;;  %v3642_v53 = vld [vmem:[%s5721_s1 + $0x2d4] sm:$0xf] }
 0x126   :  { %v3295_v40 = vor.u32 %v3642_v53, %v3292_v35 }
 0x127   :  { %1616 = vmatmul.bf16.vlgmr.msra.gmra.mxu2 %v4755_v39  ;;  %1567 = vmatmul.bf16.vlgmr.msra.gmra.mxu1 %v4613_v13 }
 0x128   :  { %v1274_v26 = vpop.f32.mrf.mxu3  ;;  %1659 = vmatpush.bf16.msrb.mxu3 %v3231_v27  ;;  %1708 = vmatpush.bf16.msrb.mxu0 %v3295_v40 }
 0x129   :  { %v1275_v51 = vadd.f32 %v1274_v26, %v5190_v58 }
 0x12a   :  { %v1421_v5 = vpop.f32.mrf.mxu2  ;;  %v1325_v41 = vpop.f32.mrf.mxu0 }
 0x12b   :  { %v1324_v2 = vadd.f32 %v1323_v6, %v1275_v51 }
 0x12c   :  { %v1374_v23 = vpop.f32.mrf.mxu1 }
 0x12d   :  { %v1373_v39 = vadd.f32 %v1372_v30, %v1324_v2 }
 0x12f   :  { %v1422_v33 = vadd.f32 %v1421_v5, %v1373_v39 }
 0x130   :  { %v1276_v13 = vpop.f32.mrf.mxu3 }
 0x131   :  { %v1277_v16 = vadd.f32 %v1276_v13, %v5207_v7  ;;  %v1804_v51 = vmax.f32 %v1422_v33, 0.0 }
 0x132   :  { %v1423_v58 = vpop.f32.mrf.mxu2  ;;  %v1328_v11 = vpop.f32.mrf.mxu0 }
 0x133   :  { %v1326_v43 = vadd.f32 %v1325_v41, %v1277_v16  ;;  %v3624_v41 = vld [vmem:[%s5721_s1 + $0x244] sm:$0xf] }
 0x134   :  { %v1377_v6 = vpop.f32.mrf.mxu1  ;;  %v3640_v16 = vld [vmem:[%s5721_s1 + $0x2c4] sm:$0xf] }
 0x135   :  { %v1375_v26 = vadd.f32 %v1374_v23, %v1326_v43  ;;  %1474 = vmatmul.bf16.gmra.mxu3 %v4425_v61  ;;  %1523 = vmatmul.bf16.gmra.mxu0 %v4537_v46  ;;  %v3220_v61 = vld [vmem:[%s5721_s1 + $0x248] sm:$0xf0] }
 0x136   :  { %v3223_v27 = vor.u32 %v3624_v41, %v3220_v61 }
 0x137   :  { %1621 = vmatmul.bf16.gmra.mxu2 %v4810_v44  ;;  %1572 = vmatmul.bf16.gmra.mxu1 %v4685_v55  ;;  %v1424_v7 = vadd.f32 %v1423_v58, %v1375_v26  ;;  %v3284_v58 = vld [vmem:[%s5721_s1 + $0x2c8] sm:$0xf0] }
 0x138   :  { %v1279_v30 = vpop.f32.mrf.mxu3  ;;  %1660 = vmatpush.bf16.msrb.mxu3 %v3223_v27  ;;  %v3287_v35 = vor.u32 %v3640_v16, %v3284_v58 }
 0x139   :  { %v1806_v5 = vmax.f32 %v1424_v7, 0.0  ;;  %v1280_v21 = vadd.f32 %v1279_v30, %v5257_v1 }
 0x13a   :  { %v1426_v37 = vpop.f32.mrf.mxu2  ;;  %v1330_v46 = vpop.f32.mrf.mxu0  ;;  %1709 = vmatpush.bf16.msrb.mxu0 %v3287_v35 }
 0x13b   :  { %v5316_v44 = vpack.c.bf16 %v1806_v5, %v1804_v51  ;;  %v1329_v55 = vadd.f32 %v1328_v11, %v1280_v21  ;;  %v3622_v5 = vld [vmem:[%s5721_s1 + $0x234] sm:$0xf] }
 0x13c   :  { %v1379_v2 = vpop.f32.mrf.mxu1 }
 0x13d   :  { %v1378_v23 = vadd.f32 %v1377_v6, %v1329_v55  ;;  %v3638_v55 = vld [vmem:[%s5721_s1 + $0x2b4] sm:$0xf] }
 0x13f   :  { %v1427_v39 = vadd.f32 %v1426_v37, %v1378_v23 }
 0x140   :  { %v1281_v33 = vpop.f32.mrf.mxu3 }
 0x141   :  { %v1282_v1 = vadd.f32 %v1281_v33, %v5268_v48  ;;  %v1808_v26 = vmax.f32 %v1427_v39, 0.0 }
 0x142   :  { %v1428_v13 = vpop.f32.mrf.mxu2  ;;  %v1333_v53 = vpop.f32.mrf.mxu0 }
 0x143   :  { %v1331_v40 = vadd.f32 %v1330_v46, %v1282_v1 }
 0x144   :  { %v1382_v11 = vpop.f32.mrf.mxu1 }
 0x145   :  { %v1380_v43 = vadd.f32 %v1379_v2, %v1331_v40  ;;  %1479 = vmatmul.bf16.gmra.mxu3 %v4349_v28  ;;  %1528 = vmatmul.bf16.gmra.mxu0 %v4359_v32  ;;  %v3212_v28 = vld [vmem:[%s5721_s1 + $0x238] sm:$0xf0] }
 0x146   :  { %v3215_v21 = vor.u32 %v3622_v5, %v3212_v28  ;;  %v3276_v2 = vld [vmem:[%s5721_s1 + $0x2b8] sm:$0xf0]  ;;  %v3268_v5 = vld [vmem:[%s5721_s1 + $0x2a8] sm:$0xf0] }
 0x147   :  { %1626 = vmatmul.bf16.gmra.mxu2 %v4865_v34  ;;  %1577 = vmatmul.bf16.gmra.mxu1 %v4357_v31  ;;  %v1429_v48 = vadd.f32 %v1428_v13, %v1380_v43  ;;  %v3279_v39 = vor.u32 %v3638_v55, %v3276_v2  ;;  %v3618_v2 = vld [vmem:[%s5721_s1 + $0x214] sm:$0xf] }
 0x148   :  { %v1284_v6 = vpop.f32.mrf.mxu3  ;;  %1661 = vmatpush.bf16.msrb.mxu3 %v3215_v21 }
 0x149   :  { %v1810_v7 = vmax.f32 %v1429_v48, 0.0  ;;  %v1285_v30 = vadd.f32 %v1284_v6, %v4900_v20  ;;  %1710 = vmatpush.bf16.msrb.mxu0 %v3279_v39 }
 0x14a   :  { %v1431_v51 = vpop.f32.mrf.mxu2  ;;  %v1335_v32 = vpop.f32.mrf.mxu0 }
 0x14b   :  { %v1334_v34 = vadd.f32 %v1333_v53, %v1285_v30  ;;  %v5336_v31 = vpack.c.bf16 %v1810_v7, %v1808_v26 }
 0x14c   :  { %v1384_v37 = vpop.f32.mrf.mxu1 }
 0x14d   :  { %v1383_v41 = vadd.f32 %v1382_v11, %v1334_v34  ;;  %v3620_v11 = vld [vmem:[%s5721_s1 + $0x224] sm:$0xf] }
 0x14f   :  { %v1432_v61 = vadd.f32 %v1431_v51, %v1383_v41  ;;  %v3636_v51 = vld [vmem:[%s5721_s1 + $0x2a4] sm:$0xf] }
 0x150   :  { %v1286_v46 = vpop.f32.mrf.mxu3 }
 0x151   :  { %v1287_v20 = vadd.f32 %v1286_v46, %v4940_v18  ;;  %v1812_v58 = vmax.f32 %v1432_v61, 0.0 }
 0x152   :  { %v1433_v27 = vpop.f32.mrf.mxu2  ;;  %v1338_v23 = vpop.f32.mrf.mxu0 }
 0x153   :  { %v1336_v33 = vadd.f32 %v1335_v32, %v1287_v20  ;;  %v3271_v32 = vor.u32 %v3636_v51, %v3268_v5  ;;  %v3616_v51 = vld [vmem:[%s5721_s1 + $0x204] sm:$0xf] }
 0x154   :  { %v1387_v1 = vpop.f32.mrf.mxu1 }
 0x155   :  { %v1385_v13 = vadd.f32 %v1384_v37, %v1336_v33  ;;  %1484 = vmatmul.bf16.gmra.mxu3 %v4427_v62  ;;  %1533 = vmatmul.bf16.gmra.mxu0 %v4431_v0  ;;  %v3204_v62 = vld [vmem:[%s5721_s1 + $0x228] sm:$0xf0] }
 0x156   :  { %v3207_v43 = vor.u32 %v3620_v11, %v3204_v62  ;;  %1711 = vmatpush.bf16.msrb.mxu0 %v3271_v32 }
 0x157   :  { %1631 = vmatmul.bf16.gmra.mxu2 %v4930_v57  ;;  %1582 = vmatmul.bf16.gmra.mxu1 %v4429_v63  ;;  %v1434_v18 = vadd.f32 %v1433_v27, %v1385_v13 }
 0x158   :  { %v1289_v16 = vpop.f32.mrf.mxu3  ;;  %1662 = vmatpush.bf16.msrb.mxu3 %v3207_v43 }
 0x159   :  { %v1814_v53 = vmax.f32 %v1434_v18, 0.0  ;;  %v1290_v35 = vadd.f32 %v1289_v16, %v4965_v42 }
 0x15a   :  { %v1436_v40 = vpop.f32.mrf.mxu2  ;;  %v1340_v0 = vpop.f32.mrf.mxu0 }
 0x15b   :  { %v1339_v57 = vadd.f32 %v1338_v23, %v1290_v35  ;;  %v5356_v63 = vpack.c.bf16 %v1814_v53, %v1812_v58  ;;  %v3634_v53 = vld [vmem:[%s5721_s1 + $0x294] sm:$0xf]  ;;  %v3260_v35 = vld [vmem:[%s5721_s1 + $0x298] sm:$0xf0] }
 0x15c   :  { %v1389_v48 = vpop.f32.mrf.mxu1  ;;  %v3263_v62 = vor.u32 %v3634_v53, %v3260_v35 }
 0x15d   :  { %v1388_v6 = vadd.f32 %v1387_v1, %v1339_v57 }
 0x15e   :  { %1712 = vmatpush.bf16.msrb.mxu0 %v3263_v62  ;;  %v5780_v62 = vld [vmem:[#allocation23_spill] sm:$0xff] }
 0x15f   :  { %v1437_v26 = vadd.f32 %v1436_v40, %v1388_v6  ;;  %v3654_v40 = vld [vmem:[#allocation5 + $0x20] sm:$0xff] }
 0x160   :  { %v1291_v7 = vpop.f32.mrf.mxu3 }
 0x161   :  { %v1292_v42 = vadd.f32 %v1291_v7, %v5007_v10  ;;  %v3657_v10 = vld [vmem:[#allocation5 + $0x38] sm:$0xff]  ;;  %v1816_v61 = vmax.f32 %v1437_v26, 0.0 }
 0x162   :  { %v1438_v30 = vpop.f32.mrf.mxu2  ;;  %v1343_v28 = vpop.f32.mrf.mxu0  ;;  %1984 = vmatpush.bf16.msrb.mxu2 %v3657_v10  ;;  %v3632_v10 = vld [vmem:[%s5721_s1 + $0x284] sm:$0xf] }
 0x163   :  { %v1341_v21 = vadd.f32 %v1340_v0, %v1292_v42 }
 0x164   :  { %v1392_v34 = vpop.f32.mrf.mxu1 }
 0x165   :  { %v1390_v37 = vadd.f32 %v1389_v48, %v1341_v21  ;;  %1489 = vmatmul.bf16.gmra.mxu3 %v4483_v22  ;;  %1538 = vmatmul.bf16.gmra.mxu0 %v4490_v29  ;;  %v3196_v22 = vld [vmem:[%s5721_s1 + $0x218] sm:$0xf0]  ;;  %v3656_v29 = vld [vmem:[#allocation5 + $0x30] sm:$0xff] }
 0x166   :  { %v3199_v23 = vor.u32 %v3618_v2, %v3196_v22  ;;  %1985 = vmatpush.bf16.msrb.mxu2 %v3656_v29 }
 0x167   :  { %1636 = vmatmul.bf16.gmra.mxu2 %v4997_v3  ;;  %1587 = vmatmul.bf16.gmra.mxu1 %v4488_v24  ;;  %v1439_v41 = vadd.f32 %v1438_v30, %v1390_v37 }
 0x168   :  { %v1294_v46 = vpop.f32.mrf.mxu3  ;;  %1663 = vmatpush.bf16.msrb.mxu3 %v3199_v23 }
 0x169   :  { %v1818_v20 = vmax.f32 %v1439_v41, 0.0  ;;  %v1295_v27 = vadd.f32 %v1294_v46, %v5052_v50  ;;  %v3655_v50 = vld [vmem:[#allocation5 + $0x28] sm:$0xff] }
 0x16a   :  { %v1441_v55 = vpop.f32.mrf.mxu2  ;;  %v1345_v3 = vpop.f32.mrf.mxu0  ;;  %1986 = vmatpush.bf16.msrb.mxu2 %v3655_v50  ;;  %v3252_v41 = vld [vmem:[%s5721_s1 + $0x288] sm:$0xf0] }
 0x16b   :  { %v1344_v24 = vadd.f32 %v1343_v28, %v1295_v27  ;;  %v5376_v33 = vpack.c.bf16 %v1818_v20, %v1816_v61  ;;  %v3255_v20 = vor.u32 %v3632_v10, %v3252_v41  ;;  %v3650_v27 = vld [vmem:[#allocation5] sm:$0xff]  ;;  %v5785_v41 = vld [vmem:[#allocation27_spill] sm:$0xff] }
 0x16c   :  { %v1394_v39 = vpop.f32.mrf.mxu1 }
 0x16d   :  { %v1393_v1 = vadd.f32 %v1392_v34, %v1344_v24  ;;  %1713 = vmatpush.bf16.msrb.mxu0 %v3255_v20 }
 0x16e   :  { %1987 = vmatpush.bf16.msrb.mxu2 %v3654_v40 }
 0x16f   :  { %v1442_v13 = vadd.f32 %v1441_v55, %v1393_v1 }
 0x170   :  { %v1296_v18 = vpop.f32.mrf.mxu3 }
 0x171   :  { %v1297_v16 = vadd.f32 %v1296_v18, %v5100_v8  ;;  %v3653_v8 = vld [vmem:[#allocation5 + $0x18] sm:$0xff]  ;;  %v1820_v6 = vmax.f32 %v1442_v13, 0.0 }
 0x172   :  { %v1443_v58 = vpop.f32.mrf.mxu2  ;;  %v1348_v11 = vpop.f32.mrf.mxu0  ;;  %1988 = vmatpush.bf16.msrb.mxu2 %v3653_v8 }
 0x173   :  { %v1346_v0 = vadd.f32 %v1345_v3, %v1297_v16 }
 0x174   :  { %v1397_v43 = vpop.f32.mrf.mxu1 }
 0x175   :  { %v1395_v57 = vadd.f32 %v1394_v39, %v1346_v0  ;;  %1494 = vmatmul.bf16.gmra.mxu3 %v4535_v45  ;;  %1543 = vmatmul.bf16.gmra.mxu0 %v4541_v17  ;;  %v3188_v45 = vld [vmem:[%s5721_s1 + $0x208] sm:$0xf0]  ;;  %v3652_v17 = vld [vmem:[#allocation5 + $0x10] sm:$0xff]  ;;  %v5781_v0 = vld [vmem:[#allocation25_spill] sm:$0xff] }
 0x176   :  { %v3191_v5 = vor.u32 %v3616_v51, %v3188_v45  ;;  %1989 = vmatpush.bf16.msrb.mxu2 %v3652_v17  ;;  %v3665_v17 = vld [vmem:[#allocation5 + $0x78] sm:$0xff] }
 0x177   :  { %1641 = vmatmul.bf16.gmra.mxu2 %v5090_v9  ;;  %1592 = vmatmul.bf16.gmra.mxu1 %v4539_v47  ;;  %v1444_v48 = vadd.f32 %v1443_v58, %v1395_v57 }
 0x178   :  { %v1299_v26 = vpop.f32.mrf.mxu3  ;;  %1664 = vmatpush.bf16.msrb.mxu3 %v3191_v5 }
 0x179   :  { %v1822_v7 = vmax.f32 %v1444_v48, 0.0  ;;  %v1300_v42 = vadd.f32 %v1299_v26, %v5145_v49  ;;  %v3651_v49 = vld [vmem:[#allocation5 + $0x8] sm:$0xff] }
 0x17a   :  { %v1446_v30 = vpop.f32.mrf.mxu2  ;;  %v1350_v9 = vpop.f32.mrf.mxu0  ;;  %1990 = vmatpush.bf16.msrb.mxu2 %v3651_v49 }
 0x17b   :  { %v1349_v47 = vadd.f32 %v1348_v11, %v1300_v42  ;;  %v5396_v32 = vpack.c.bf16 %v1822_v7, %v1820_v6 }
 0x17c   :  { %v1399_v28 = vpop.f32.mrf.mxu1  ;;  %2033 = vmatpush.bf16.msra.mxu3 %v3665_v17 }
 0x17d   :  { %v1398_v21 = vadd.f32 %v1397_v43, %v1349_v47 }
 0x17e   :  { %1991 = vmatpush.bf16.msrb.mxu2 %v3650_v27 }
 0x17f   :  { %v1447_v34 = vadd.f32 %v1446_v30, %v1398_v21 }
 0x180   :  { %v1301_v37 = vpop.f32.mrf.mxu3 }
 0x181   :  { %v1302_v61 = vadd.f32 %v1301_v37, %v5192_v52  ;;  %v1824_v52 = vmax.f32 %v1447_v34, 0.0  ;;  %v5783_v34 = vld [vmem:[#allocation26_spill] sm:$0xff]  ;;  %v3795_v37 = vld [vmem:[#allocation2] sm:$0x3] }
 0x182   :  { %v1448_v46 = vpop.f32.mrf.mxu2  ;;  %v1353_v55 = vpop.f32.mrf.mxu0  ;;  %v5423_v10 = vperm.slane %v3795_v37, 1 }
 0x183   :  { %v1351_v2 = vadd.f32 %v1350_v9, %v1302_v61 }
 0x184   :  { %v1402_v22 = vpop.f32.mrf.mxu1 }
 0x185   :  { %v1400_v29 = vadd.f32 %v1399_v28, %v1351_v2  ;;  %1499 = vmatmul.bf16.gmra.mxu3 %v4611_v12  ;;  %1548 = vmatmul.bf16.gmra.mxu0 %v4623_v19 }
 0x187   :  { %1646 = vmatmul.bf16.gmra.mxu2 %v5181_v15  ;;  %1597 = vmatmul.bf16.gmra.mxu1 %v4621_v14  ;;  %v1449_v3 = vadd.f32 %v1448_v46, %v1400_v29 }
 0x188   :  { %v1304_v23 = vpop.f32.mrf.mxu3 }
 0x189   :  { %v1826_v24 = vmax.f32 %v1449_v3, 0.0  ;;  %v1305_v39 = vadd.f32 %v1304_v23, %v5209_v36  ;;  %v5782_v36 = vld [vmem:[#allocation24_spill] sm:$0xff] }
 0x18a   :  { %v1451_v1 = vpop.f32.mrf.mxu2  ;;  %v1355_v50 = vpop.f32.mrf.mxu0 }
 0x18b   :  { %v1354_v13 = vadd.f32 %v1353_v55, %v1305_v39  ;;  %v5410_v16 = vpack.c.bf16 %v1826_v24, %v1824_v52  ;;  %v3664_v24 = vld [vmem:[#allocation5 + $0x70] sm:$0xff] }
 0x18c   :  { %v1404_v18 = vpop.f32.mrf.mxu1  ;;  %2034 = vmatpush.bf16.msra.mxu3 %v3664_v24 }
 0x18d   :  { %v1403_v58 = vadd.f32 %v1402_v22, %v1354_v13 }
 0x18f   :  { %v1452_v12 = vadd.f32 %v1451_v1, %v1403_v58 }
 0x190   :  { %v1306_v53 = vpop.f32.mrf.mxu3 }
 0x191   :  { %v1307_v19 = vadd.f32 %v1306_v53, %v5259_v38  ;;  %v1828_v8 = vmax.f32 %v1452_v12, 0.0  ;;  %v5786_v12 = vld [vmem:[#allocation29_spill] sm:$0xff]  ;;  %v5787_v53 = vld [vmem:[#allocation31_spill] sm:$0xff] }
 0x192   :  { %v1453_v15 = vpop.f32.mrf.mxu2  ;;  %v1358_v35 = vpop.f32.mrf.mxu0 }
 0x193   :  { %v1356_v14 = vadd.f32 %v1355_v50, %v1307_v19  ;;  %v5788_v19 = vld [vmem:[#allocation30_spill] sm:$0xff] }
 0x194   :  { %v1407_v40 = vpop.f32.mrf.mxu1 }
 0x195   :  { %v1405_v11 = vadd.f32 %v1404_v18, %v1356_v14  ;;  %1504 = vmatmul.bf16.gmra.mxu3 %v5780_v62  ;;  %1553 = vmatmul.bf16.gmra.mxu0 %v5781_v0 }
 0x197   :  { %1651 = vmatmul.bf16.gmra.mxu2 %v5236_v56  ;;  %1602 = vmatmul.bf16.gmra.mxu1 %v5782_v36  ;;  %v1454_v43 = vadd.f32 %v1453_v15, %v1405_v11 }
 0x198   :  { %v1309_v57 = vpop.f32.mrf.mxu3 }
 0x199   :  { %v1830_v48 = vmax.f32 %v1454_v43, 0.0  ;;  %v1310_v6 = vadd.f32 %v1309_v57, %v5276_v59  ;;  %v5784_v59 = vld [vmem:[#allocation28_spill] sm:$0xff]  ;;  %v3663_v57 = vld [vmem:[#allocation5 + $0x68] sm:$0xff] }
 0x19a   :  { %v1456_v38 = vpop.f32.mrf.mxu2  ;;  %v1360_v26 = vpop.f32.mrf.mxu0  ;;  %2035 = vmatpush.bf16.msra.mxu3 %v3663_v57 }
 0x19b   :  { %v1359_v7 = vadd.f32 %v1358_v35, %v1310_v6  ;;  %v5418_v30 = vpack.c.bf16 %v1830_v48, %v1828_v8 }
 0x19c   :  { %v1409_v42 = vpop.f32.mrf.mxu1 }
 0x19d   :  { %v1408_v51 = vadd.f32 %v1407_v40, %v1359_v7 }
 0x19f   :  { %v1457_v45 = vadd.f32 %v1456_v38, %v1408_v51  ;;  %v5790_v51 = vld [vmem:[#allocation34_spill] sm:$0xff] }
 0x1a0   :  { %v1311_v9 = vpop.f32.mrf.mxu3 }
 0x1a1   :  { %v1312_v56 = vadd.f32 %v1311_v9, %v5285_v25  ;;  %v1832_v46 = vmax.f32 %v1457_v45, 0.0  ;;  %v5791_v45 = vld [vmem:[#allocation33_spill] sm:$0xff] }
 0x1a2   :  { %v1458_v5 = vpop.f32.mrf.mxu2  ;;  %v1519_v47 = vpop.f32.mrf.mxu0 }
 0x1a3   :  { %v1361_v28 = vadd.f32 %v1360_v26, %v1312_v56 }
 0x1a4   :  { %v1568_v21 = vpop.f32.mrf.mxu1 }
 0x1a5   :  { %v1410_v49 = vadd.f32 %v1409_v42, %v1361_v28  ;;  %1665 = vmatmul.bf16.vlgmr.msrb.gmra.mxu3 %v5783_v34  ;;  %1714 = vmatmul.bf16.vlgmr.msrb.gmra.mxu0 %v5784_v59  ;;  %v5789_v42 = vld [vmem:[#allocation32_spill] sm:$0xff]  ;;  %v3662_v59 = vld [vmem:[#allocation5 + $0x60] sm:$0xff] }
 0x1a6   :  { %2036 = vmatpush.bf16.msra.mxu3 %v3662_v59 }
 0x1a7   :  { %1992 = vmatmul.bf16.vlgmr.msrb.gmra.mxu2 %v5316_v44  ;;  %3328 = vmatmul.msk.bf16.vlgmr.msrb.gmra.mxu1 %vm1093_vm0, %v5785_v41  ;;  %v1459_v61 = vadd.f32 %v1458_v5, %v1410_v49 }
 0x1a8   :  { %v1470_v25 = vpop.f32.mrf.mxu3 }
 0x1a9   :  { %v1834_v20 = vmax.f32 %v1459_v61, 0.0  ;;  %v1471_v27 = vadd.f32 %v1470_v25, %v5423_v10 }
 0x1aa   :  { %v1617_v55 = vpop.f32.mrf.mxu2  ;;  %v1521_v2 = vpop.f32.mrf.mxu0 }
 0x1ab   :  { %v1520_v22 = vadd.f32 %v1519_v47, %v1471_v27  ;;  %v5429_v3 = vpack.c.bf16 %v1834_v20, %v1832_v46  ;;  %v5792_v27 = vld [vmem:[#allocation35_spill] sm:$0xff] }
 0x1ac   :  { %v1570_v29 = vpop.f32.mrf.mxu1 }
 0x1ad   :  { %v1569_v23 = vadd.f32 %v1568_v21, %v1520_v22 }
 0x1af   :  { %v5431_v52 = vadd.f32 %v1617_v55, %v1569_v23  ;;  %v5793_v55 = vld [vmem:[#allocation37_spill] sm:$0xff] }
 0x1b0   :  { %v1472_v44 = vpop.f32.mrf.mxu3 }
 0x1b1   :  { %v1473_v39 = vadd.f32 %v1472_v44, %v5423_v10 }
 0x1b2   :  { %v1619_v1 = vpop.f32.mrf.mxu2  ;;  %v1524_v50 = vpop.f32.mrf.mxu0 }
 0x1b3   :  { %v1522_v13 = vadd.f32 %v1521_v2, %v1473_v39  ;;  %v5794_v2 = vld [vmem:[#allocation36_spill] sm:$0xff] }
 0x1b4   :  { %v1573_v18 = vpop.f32.mrf.mxu1 }
 0x1b5   :  { %v1571_v58 = vadd.f32 %v1570_v29, %v1522_v13  ;;  %1670 = vmatmul.bf16.gmra.mxu3 %v5786_v12  ;;  %1719 = vmatmul.bf16.gmra.mxu0 %v5787_v53 }
 0x1b7   :  { %1997 = vmatmul.bf16.gmra.mxu2 %v5336_v31  ;;  %3329 = vmatmul.msk.bf16.gmra.mxu1 %vm1093_vm0, %v5788_v19  ;;  %v5439_v15 = vadd.f32 %v1619_v1, %v1571_v58 }
 0x1b8   :  { %v1475_v35 = vpop.f32.mrf.mxu3 }
 0x1b9   :  { %v1476_v14 = vadd.f32 %v1475_v35, %v5423_v10 }
 0x1ba   :  { %v1622_v40 = vpop.f32.mrf.mxu2  ;;  %v1526_v11 = vpop.f32.mrf.mxu0 }
 0x1bb   :  { %v1525_v62 = vadd.f32 %v1524_v50, %v1476_v14  ;;  %v5795_v14 = vld [vmem:[#allocation38_spill] sm:$0xff] }
 0x1bc   :  { %v1575_v0 = vpop.f32.mrf.mxu1 }
 0x1bd   :  { %v1574_v36 = vadd.f32 %v1573_v18, %v1525_v62  ;;  %v3661_v18 = vld [vmem:[#allocation5 + $0x58] sm:$0xff]  ;;  %v5797_v62 = vld [vmem:[#allocation39_spill] sm:$0xff] }
 0x1be   :  { %2037 = vmatpush.bf16.msra.mxu3 %v3661_v18 }
 0x1bf   :  { %v5442_v43 = vadd.f32 %v1622_v40, %v1574_v36  ;;  %v5796_v40 = vld [vmem:[#allocation40_spill] sm:$0xff] }
 0x1c0   :  { %v1477_v8 = vpop.f32.mrf.mxu3 }
 0x1c1   :  { %v1478_v48 = vadd.f32 %v1477_v8, %v5423_v10 }
 0x1c2   :  { %v1624_v31 = vpop.f32.mrf.mxu2  ;;  %v1529_v6 = vpop.f32.mrf.mxu0 }
 0x1c3   :  { %v1527_v38 = vadd.f32 %v1526_v11, %v1478_v48 }
 0x1c4   :  { %v1578_v26 = vpop.f32.mrf.mxu1 }
 0x1c5   :  { %v1576_v7 = vadd.f32 %v1575_v0, %v1527_v38  ;;  %1675 = vmatmul.bf16.gmra.mxu3 %v5789_v42  ;;  %1724 = vmatmul.bf16.gmra.mxu0 %v5790_v51  ;;  %v3660_v38 = vld [vmem:[#allocation5 + $0x50] sm:$0xff]  ;;  %v5798_v42 = vld [vmem:[#allocation41_spill] sm:$0xff]  ;;  %v5799_v51 = vld [vmem:[#allocation43_spill] sm:$0xff] }
 0x1c6   :  { %2038 = vmatpush.bf16.msra.mxu3 %v3660_v38 }
 0x1c7   :  { %2002 = vmatmul.bf16.gmra.mxu2 %v5356_v63  ;;  %3330 = vmatmul.msk.bf16.gmra.mxu1 %vm1093_vm0, %v5791_v45  ;;  %v5450_v17 = vadd.f32 %v1624_v31, %v1576_v7  ;;  %v5800_v45 = vld [vmem:[#allocation42_spill] sm:$0xff] }
 0x1c8   :  { %v1480_v9 = vpop.f32.mrf.mxu3 }
 0x1c9   :  { %v1481_v56 = vadd.f32 %v1480_v9, %v5423_v10 }
 0x1ca   :  { %v1627_v5 = vpop.f32.mrf.mxu2  ;;  %v1531_v47 = vpop.f32.mrf.mxu0 }
 0x1cb   :  { %v1530_v28 = vadd.f32 %v1529_v6, %v1481_v56 }
 0x1cc   :  { %v1580_v21 = vpop.f32.mrf.mxu1 }
 0x1cd   :  { %v1579_v49 = vadd.f32 %v1578_v26, %v1530_v28 }
 0x1cf   :  { %v5453_v34 = vadd.f32 %v1627_v5, %v1579_v49  ;;  %v3659_v49 = vld [vmem:[#allocation5 + $0x48] sm:$0xff] }
 0x1d0   :  { %v1482_v37 = vpop.f32.mrf.mxu3  ;;  %2039 = vmatpush.bf16.msra.mxu3 %v3659_v49 }
 0x1d1   :  { %v1483_v41 = vadd.f32 %v1482_v37, %v5423_v10 }
 0x1d2   :  { %v1629_v63 = vpop.f32.mrf.mxu2  ;;  %v1534_v61 = vpop.f32.mrf.mxu0 }
 0x1d3   :  { %v1532_v25 = vadd.f32 %v1531_v47, %v1483_v41 }
 0x1d4   :  { %v1583_v46 = vpop.f32.mrf.mxu1 }
 0x1d5   :  { %v1581_v20 = vadd.f32 %v1580_v21, %v1532_v25  ;;  %1680 = vmatmul.bf16.gmra.mxu3 %v5792_v27  ;;  %1729 = vmatmul.bf16.gmra.mxu0 %v5793_v55 }
 0x1d7   :  { %2007 = vmatmul.bf16.gmra.mxu2 %v5376_v33  ;;  %3331 = vmatmul.msk.bf16.gmra.mxu1 %vm1093_vm0, %v5794_v2  ;;  %v5461_v22 = vadd.f32 %v1629_v63, %v1581_v20  ;;  %v5802_v63 = vld [vmem:[#allocation46_spill] sm:$0xff] }
 0x1d8   :  { %v1485_v29 = vpop.f32.mrf.mxu3 }
 0x1d9   :  { %v1486_v23 = vadd.f32 %v1485_v29, %v5423_v10  ;;  %v3658_v29 = vld [vmem:[#allocation5 + $0x40] sm:$0xff] }
 0x1da   :  { %v1536_v24 = vpop.f32.mrf.mxu0  ;;  %v1632_v1 = vpop.f32.mrf.mxu2  ;;  %2040 = vmatpush.bf16.msra.mxu3 %v3658_v29 }
 0x1db   :  { %v1535_v44 = vadd.f32 %v1534_v61, %v1486_v23  ;;  %v5803_v61 = vld [vmem:[#allocation45_spill] sm:$0xff] }
 0x1dc   :  { %v1585_v39 = vpop.f32.mrf.mxu1 }
 0x1dd   :  { %v1584_v50 = vadd.f32 %v1583_v46, %v1535_v44 }
 0x1df   :  { %v5464_v13 = vadd.f32 %v1632_v1, %v1584_v50 }
 0x1e0   :  { %v1487_v58 = vpop.f32.mrf.mxu3 }
 0x1e1   :  { %v1488_v12 = vadd.f32 %v1487_v58, %v5423_v10 }
 0x1e2   :  { %v1539_v33 = vpop.f32.mrf.mxu0  ;;  %v1634_v11 = vpop.f32.mrf.mxu2 }
 0x1e3   :  { %v1537_v53 = vadd.f32 %v1536_v24, %v1488_v12 }
 0x1e4   :  { %v1588_v19 = vpop.f32.mrf.mxu1 }
 0x1e5   :  { %v1586_v35 = vadd.f32 %v1585_v39, %v1537_v53  ;;  %1685 = vmatmul.bf16.gmra.mxu3 %v5795_v14  ;;  %1734 = vmatmul.bf16.gmra.mxu0 %v5796_v40 }
 0x1e7   :  { %2012 = vmatmul.bf16.gmra.mxu2 %v5396_v32  ;;  %3332 = vmatmul.msk.bf16.gmra.mxu1 %vm1093_vm0, %v5797_v62  ;;  %v5472_v0 = vadd.f32 %v1634_v11, %v1586_v35  ;;  %v3673_v35 = vld [vmem:[#allocation8 + $0x38] sm:$0xff] }
 0x1e8   :  { %v1490_v36 = vpop.f32.mrf.mxu3  ;;  %2174 = vmatpush.bf16.msra.mxu0 %v3673_v35 }
 0x1e9   :  { %v1491_v57 = vadd.f32 %v1490_v36, %v5423_v10 }
 0x1ea   :  { %v5475_v8 = vpop.f32.mrf.mxu0 }
 0x1eb   :  { %v1540_v48 = vadd.f32 %v1539_v33, %v1491_v57 }
 0x1ec   :  { %v5477_v31 = vpop.f32.mrf.mxu1 }
 0x1ed   :  { %v5479_v6 = vadd.f32 %v1588_v19, %v1540_v48 }
 0x1f0   :  { %v5481_v26 = vpop.f32.mrf.mxu3 }
 0x1f2   :  { %v1544_v32 = vpop.f32.mrf.mxu0 }
 0x1f4   :  { %v1593_v7 = vpop.f32.mrf.mxu1 }
 0x1f5   :  { %1690 = vmatmul.bf16.gmra.mxu3 %v5798_v42  ;;  %1739 = vmatmul.bf16.gmra.mxu0 %v5799_v51 }
 0x1f7   :  { %2017 = vmatmul.bf16.gmra.mxu2 %v5410_v16  ;;  %3333 = vmatmul.msk.bf16.gmra.mxu1 %vm1093_vm0, %v5800_v45  ;;  %v5801_v16 = vld [vmem:[#allocation44_spill] sm:$0xff] }
 0x1f8   :  { %v1495_v9 = vpop.f32.mrf.mxu3 }
 0x1f9   :  { %v1496_v56 = vadd.f32 %v1495_v9, %v5423_v10 }
 0x1fa   :  { %v5489_v5 = vpop.f32.mrf.mxu0 }
 0x1fb   :  { %v1545_v47 = vadd.f32 %v1544_v32, %v1496_v56  ;;  %v3672_v56 = vld [vmem:[#allocation8 + $0x30] sm:$0xff] }
 0x1fc   :  { %v5491_v28 = vpop.f32.mrf.mxu1  ;;  %2175 = vmatpush.bf16.msra.mxu0 %v3672_v56 }
 0x1fd   :  { %v5493_v21 = vadd.f32 %v1593_v7, %v1545_v47 }
 0x200   :  { %v5495_v59 = vpop.f32.mrf.mxu3 }
 0x202   :  { %v1549_v37 = vpop.f32.mrf.mxu0 }
 0x204   :  { %v1598_v41 = vpop.f32.mrf.mxu1 }
 0x205   :  { %1695 = vmatmul.bf16.gmra.mxu3 %v5801_v16  ;;  %1744 = vmatmul.bf16.gmra.mxu0 %v5802_v63 }
 0x207   :  { %2022 = vmatmul.bf16.gmra.mxu2 %v5418_v30  ;;  %3334 = vmatmul.msk.bf16.gmra.mxu1 %vm1093_vm0, %v5803_v61 }
 0x208   :  { %v1500_v25 = vpop.f32.mrf.mxu3 }
 0x209   :  { %v1501_v46 = vadd.f32 %v1500_v25, %v5423_v10 }
 0x20a   :  { %v5503_v20 = vpop.f32.mrf.mxu0 }
 0x20b   :  { %v1550_v27 = vadd.f32 %v1549_v37, %v1501_v46 }
 0x20c   :  { %v5505_v55 = vpop.f32.mrf.mxu1 }
 0x20d   :  { %v5507_v2 = vadd.f32 %v1598_v41, %v1550_v27 }
 0x210   :  { %v5509_v23 = vpop.f32.mrf.mxu3 }
 0x212   :  { %v1554_v24 = vpop.f32.mrf.mxu0 }
 0x214   :  { %v1603_v44 = vpop.f32.mrf.mxu1 }
 0x215   :  { %1700 = vmatmul.bf16.gmra.mxu3 %v5238_v60  ;;  %1749 = vmatmul.bf16.gmra.mxu0 %v5251_v54 }
 0x217   :  { %2027 = vmatmul.bf16.gmra.mxu2 %v5429_v3  ;;  %3335 = vmatmul.msk.bf16.gmra.mxu1 %vm1093_vm0, %v5249_v4 }
 0x218   :  { %v1505_v30 = vpop.f32.mrf.mxu3 }
 0x219   :  { %v1506_v39 = vadd.f32 %v1505_v30, %v5423_v10 }
 0x21a   :  { %v5517_v1 = vpop.f32.mrf.mxu0 }
 0x21b   :  { %v1555_v50 = vadd.f32 %v1554_v24, %v1506_v39  ;;  %v3671_v39 = vld [vmem:[#allocation8 + $0x28] sm:$0xff] }
 0x21c   :  { %v5519_v18 = vpop.f32.mrf.mxu1  ;;  %2176 = vmatpush.bf16.msra.mxu0 %v3671_v39 }
 0x21d   :  { %v5521_v58 = vadd.f32 %v1603_v44, %v1555_v50  ;;  %v1637_v44 = vpop.f32.mrf.mxu2 }
 0x220   :  { %v5523_v12 = vpop.f32.mrf.mxu3 }
 0x222   :  { %v1715_v60 = vpop.f32.mrf.mxu0 }
 0x224   :  { %v1764_v33 = vpop.f32.mrf.mxu1 }
 0x228   :  { %v1666_v54 = vpop.f32.mrf.mxu3 }
 0x229   :  { %v1667_v3 = vadd.f32 %v1666_v54, %v5431_v52 }
 0x22a   :  { %v1717_v53 = vpop.f32.mrf.mxu0 }
 0x22b   :  { %v1716_v4 = vadd.f32 %v1715_v60, %v1667_v3 }
 0x22c   :  { %v1766_v19 = vpop.f32.mrf.mxu1 }
 0x22d   :  { %v1765_v62 = vadd.f32 %v1764_v33, %v1716_v4 }
 0x22f   :  { %v1805_v38 = vmax.f32 %v1765_v62, 0.0 }
 0x230   :  { %v1668_v14 = vpop.f32.mrf.mxu3 }
 0x231   :  { %v1669_v40 = vadd.f32 %v1668_v14, %v5439_v15 }
 0x232   :  { %v1720_v11 = vpop.f32.mrf.mxu0 }
 0x233   :  { %v1718_v36 = vadd.f32 %v1717_v53, %v1669_v40 }
 0x234   :  { %v1769_v57 = vpop.f32.mrf.mxu1 }
 0x235   :  { %v1767_v48 = vadd.f32 %v1766_v19, %v1718_v36  ;;  %v1639_v19 = vpop.f32.mrf.mxu2 }
 0x237   :  { %v1807_v32 = vmax.f32 %v1767_v48, 0.0 }
 0x238   :  { %v1671_v7 = vpop.f32.mrf.mxu3 }
 0x239   :  { %v1837_v42 = vpack.c.bf16 %v1807_v32, %v1805_v38  ;;  %v1672_v45 = vadd.f32 %v1671_v7, %v5442_v43  ;;  %v1493_v7 = vadd.f32 %v5481_v26, %v5423_v10 }
 0x23a   :  { %v1722_v51 = vpop.f32.mrf.mxu0 }
 0x23b   :  { %2041 = vmatmul.bf16.vlgmr.msra.gmra.mxu3 %v1837_v42  ;;  %v1721_v9 = vadd.f32 %v1720_v11, %v1672_v45 }
 0x23c   :  { %v1771_v52 = vpop.f32.mrf.mxu1 }
 0x23d   :  { %v1770_v37 = vadd.f32 %v1769_v57, %v1721_v9  ;;  %v3670_v57 = vld [vmem:[#allocation8 + $0x20] sm:$0xff]  ;;  %v1642_v48 = vpop.f32.mrf.mxu2  ;;  %v1542_v9 = vadd.f32 %v5475_v8, %v1493_v7 }
 0x23e   :  { %2177 = vmatpush.bf16.msra.mxu0 %v3670_v57 }
 0x23f   :  { %v1809_v61 = vmax.f32 %v1770_v37, 0.0 }
 0x240   :  { %v1673_v47 = vpop.f32.mrf.mxu3 }
 0x241   :  { %v1674_v15 = vadd.f32 %v1673_v47, %v5450_v17 }
 0x242   :  { %v1725_v49 = vpop.f32.mrf.mxu0 }
 0x243   :  { %v1723_v41 = vadd.f32 %v1722_v51, %v1674_v15  ;;  %v1638_v15 = vadd.f32 %v1637_v44, %v5479_v6 }
 0x244   :  { %v1774_v16 = vpop.f32.mrf.mxu1 }
 0x245   :  { %v1772_v63 = vadd.f32 %v1771_v52, %v1723_v41  ;;  %v1644_v37 = vpop.f32.mrf.mxu2 }
 0x247   :  { %v1811_v25 = vmax.f32 %v1772_v63, 0.0 }
 0x248   :  { %v1676_v46 = vpop.f32.mrf.mxu3 }
 0x249   :  { %v1839_v27 = vpack.c.bf16 %v1811_v25, %v1809_v61  ;;  %v1677_v43 = vadd.f32 %v1676_v46, %v5453_v34  ;;  %v3669_v25 = vld [vmem:[#allocation8 + $0x18] sm:$0xff] }
 0x24a   :  { %v1727_v29 = vpop.f32.mrf.mxu0  ;;  %2178 = vmatpush.bf16.msra.mxu0 %v3669_v25 }
 0x24b   :  { %2046 = vmatmul.bf16.gmra.mxu3 %v1839_v27  ;;  %v1726_v30 = vadd.f32 %v1725_v49, %v1677_v43 }
 0x24c   :  { %v1776_v24 = vpop.f32.mrf.mxu1 }
 0x24d   :  { %v1775_v33 = vadd.f32 %v1774_v16, %v1726_v30  ;;  %v1647_v44 = vpop.f32.mrf.mxu2 }
 0x24e   :  { %v1648_v7 = vadd.f32 %v1647_v44, %v5507_v2 }
 0x24f   :  { %v1813_v4 = vmax.f32 %v1775_v33, 0.0 }
 0x250   :  { %v1678_v50 = vpop.f32.mrf.mxu3 }
 0x251   :  { %v1679_v17 = vadd.f32 %v1678_v50, %v5461_v22 }
 0x252   :  { %v1730_v60 = vpop.f32.mrf.mxu0 }
 0x253   :  { %v1728_v54 = vadd.f32 %v1727_v29, %v1679_v17  ;;  %v1498_v29 = vadd.f32 %v5495_v59, %v5423_v10 }
 0x254   :  { %v1779_v53 = vpop.f32.mrf.mxu1 }
 0x255   :  { %v1777_v3 = vadd.f32 %v1776_v24, %v1728_v54  ;;  %v1649_v59 = vpop.f32.mrf.mxu2 }
 0x257   :  { %v1815_v35 = vmax.f32 %v1777_v3, 0.0 }
 0x258   :  { %v1681_v14 = vpop.f32.mrf.mxu3 }
 0x259   :  { %v1841_v40 = vpack.c.bf16 %v1815_v35, %v1813_v4  ;;  %v1682_v11 = vadd.f32 %v1681_v14, %v5464_v13  ;;  %v3668_v14 = vld [vmem:[#allocation8 + $0x10] sm:$0xff] }
 0x25a   :  { %v1732_v34 = vpop.f32.mrf.mxu0  ;;  %2179 = vmatpush.bf16.msra.mxu0 %v3668_v14 }
 0x25b   :  { %2051 = vmatmul.bf16.gmra.mxu3 %v1841_v40  ;;  %v1731_v36 = vadd.f32 %v1730_v60, %v1682_v11  ;;  %v1643_v60 = vadd.f32 %v1642_v48, %v5493_v21 }
 0x25c   :  { %v1781_v62 = vpop.f32.mrf.mxu1 }
 0x25d   :  { %v1780_v42 = vadd.f32 %v1779_v53, %v1731_v36 }
 0x25f   :  { %v1817_v13 = vmax.f32 %v1780_v42, 0.0 }
 0x260   :  { %v1683_v22 = vpop.f32.mrf.mxu3 }
 0x261   :  { %v1684_v38 = vadd.f32 %v1683_v22, %v5472_v0  ;;  %v1591_v0 = vadd.f32 %v5477_v31, %v1542_v9  ;;  %v1547_v31 = vadd.f32 %v5489_v5, %v1498_v29  ;;  %v1503_v5 = vadd.f32 %v5509_v23, %v5423_v10  ;;  %v3666_v23 = vld [vmem:[#allocation8] sm:$0xff] }
 0x262   :  { %v1735_v32 = vpop.f32.mrf.mxu0 }
 0x263   :  { %v1733_v51 = vadd.f32 %v1732_v34, %v1684_v38  ;;  %v1640_v26 = vadd.f32 %v1639_v19, %v1591_v0  ;;  %v1596_v53 = vadd.f32 %v5491_v28, %v1547_v31  ;;  %v1552_v28 = vadd.f32 %v5503_v20, %v1503_v5  ;;  %v1652_v38 = vpop.f32.mrf.mxu2 }
 0x264   :  { %v1784_v45 = vpop.f32.mrf.mxu1  ;;  %v1653_v25 = vadd.f32 %v1652_v38, %v5521_v58 }
 0x265   :  { %v1782_v52 = vadd.f32 %v1781_v62, %v1733_v51  ;;  %v1645_v4 = vadd.f32 %v1644_v37, %v1596_v53  ;;  %v1601_v51 = vadd.f32 %v5505_v55, %v1552_v28  ;;  %v1508_v37 = vadd.f32 %v5523_v12, %v5423_v10 }
 0x267   :  { %v1819_v56 = vmax.f32 %v1782_v52, 0.0  ;;  %v3667_v52 = vld [vmem:[#allocation8 + $0x8] sm:$0xff]  ;;  %v1557_v55 = vadd.f32 %v5517_v1, %v1508_v37 }
 0x268   :  { %v1686_v47 = vpop.f32.mrf.mxu3  ;;  %2180 = vmatpush.bf16.msra.mxu0 %v3667_v52 }
 0x269   :  { %v1843_v49 = vpack.c.bf16 %v1819_v56, %v1817_v13  ;;  %v1687_v16 = vadd.f32 %v1686_v47, %v1638_v15  ;;  %v1650_v13 = vadd.f32 %v1649_v59, %v1601_v51 }
 0x26a   :  { %v1737_v41 = vpop.f32.mrf.mxu0 }
 0x26b   :  { %2056 = vmatmul.bf16.gmra.mxu3 %v1843_v49  ;;  %v1736_v61 = vadd.f32 %v1735_v32, %v1687_v16  ;;  %v1654_v49 = vpop.f32.mrf.mxu2 }
 0x26c   :  { %v1786_v63 = vpop.f32.mrf.mxu1  ;;  %2181 = vmatpush.bf16.msra.mxu0 %v3666_v23 }
 0x26d   :  { %v1785_v43 = vadd.f32 %v1784_v45, %v1736_v61 }
 0x26f   :  { %v1821_v39 = vmax.f32 %v1785_v43, 0.0 }
 0x270   :  { %v1688_v46 = vpop.f32.mrf.mxu3 }
 0x271   :  { %v1689_v27 = vadd.f32 %v1688_v46, %v1640_v26 }
 0x272   :  { %v1740_v8 = vpop.f32.mrf.mxu0 }
 0x273   :  { %v1738_v6 = vadd.f32 %v1737_v41, %v1689_v27  ;;  %v1993_v43 = vpop.f32.mrf.mxu2 }
 0x274   :  { %v1789_v24 = vpop.f32.mrf.mxu1 }
 0x275   :  { %v1787_v30 = vadd.f32 %v1786_v63, %v1738_v6 }
 0x277   :  { %v1823_v50 = vmax.f32 %v1787_v30, 0.0 }
 0x278   :  { %v1691_v17 = vpop.f32.mrf.mxu3 }
 0x279   :  { %v1845_v33 = vpack.c.bf16 %v1823_v50, %v1821_v39  ;;  %v1692_v3 = vadd.f32 %v1691_v17, %v1643_v60 }
 0x27a   :  { %v1742_v54 = vpop.f32.mrf.mxu0 }
 0x27b   :  { %2061 = vmatmul.bf16.gmra.mxu3 %v1845_v33  ;;  %v1741_v35 = vadd.f32 %v1740_v8, %v1692_v3  ;;  %v1606_v8 = vadd.f32 %v5519_v18, %v1557_v55  ;;  %v1995_v50 = vpop.f32.mrf.mxu2  ;;  %v3681_v18 = vld [vmem:[#allocation11 + $0x38] sm:$0xff] }
 0x27c   :  { %v1791_v19 = vpop.f32.mrf.mxu1  ;;  %2315 = vmatpush.bf16.msra.mxu1 %v3681_v18  ;;  %v5553_v3 = vld [vmem:[#allocation7] ss:$0 sm:$0xff] }
 0x27d   :  { %v1790_v11 = vadd.f32 %v1789_v24, %v1741_v35  ;;  %v1655_v6 = vadd.f32 %v1654_v49, %v1606_v8 }
 0x27f   :  { %v1825_v48 = vmax.f32 %v1790_v11, 0.0 }
 0x280   :  { %v1693_v40 = vpop.f32.mrf.mxu3 }
 0x281   :  { %v1694_v34 = vadd.f32 %v1693_v40, %v1645_v4  ;;  %v1996_v4 = vadd.f32 %v5553_v3, %v1995_v50 }
 0x282   :  { %v1745_v21 = vpop.f32.mrf.mxu0 }
 0x283   :  { %v1743_v62 = vadd.f32 %v1742_v54, %v1694_v34  ;;  %v1998_v33 = vpop.f32.mrf.mxu2 }
 0x284   :  { %v1794_v57 = vpop.f32.mrf.mxu1 }
 0x285   :  { %v1792_v36 = vadd.f32 %v1791_v19, %v1743_v62  ;;  %v1994_v19 = vadd.f32 %v5553_v3, %v1993_v43  ;;  %v3680_v62 = vld [vmem:[#allocation11 + $0x30] sm:$0xff] }
 0x286   :  { %2316 = vmatpush.bf16.msra.mxu1 %v3680_v62 }
 0x287   :  { %v1827_v22 = vmax.f32 %v1792_v36, 0.0 }
 0x288   :  { %v1696_v32 = vpop.f32.mrf.mxu3 }
 0x289   :  { %v1847_v42 = vpack.c.bf16 %v1827_v22, %v1825_v48  ;;  %v1697_v45 = vadd.f32 %v1696_v32, %v1648_v7 }
 0x28a   :  { %v1747_v9 = vpop.f32.mrf.mxu0 }
 0x28b   :  { %2066 = vmatmul.bf16.gmra.mxu3 %v1847_v42  ;;  %v1746_v56 = vadd.f32 %v1745_v21, %v1697_v45  ;;  %v2000_v54 = vpop.f32.mrf.mxu2  ;;  %v3679_v45 = vld [vmem:[#allocation11 + $0x28] sm:$0xff] }
 0x28c   :  { %v1796_v47 = vpop.f32.mrf.mxu1  ;;  %v2001_v28 = vadd.f32 %v5553_v3, %v2000_v54  ;;  %2317 = vmatpush.bf16.msra.mxu1 %v3679_v45 }
 0x28d   :  { %v1795_v2 = vadd.f32 %v1794_v57, %v1746_v56  ;;  %v1999_v57 = vadd.f32 %v5553_v3, %v1998_v33 }
 0x28f   :  { %v1829_v16 = vmax.f32 %v1795_v2, 0.0  ;;  %v3678_v2 = vld [vmem:[#allocation11 + $0x20] sm:$0xff] }
 0x290   :  { %v1698_v15 = vpop.f32.mrf.mxu3  ;;  %2318 = vmatpush.bf16.msra.mxu1 %v3678_v2 }
 0x291   :  { %v1699_v20 = vadd.f32 %v1698_v15, %v1650_v13 }
 0x292   :  { %v1750_v26 = vpop.f32.mrf.mxu0 }
 0x293   :  { %v1748_v41 = vadd.f32 %v1747_v9, %v1699_v20  ;;  %v2003_v59 = vpop.f32.mrf.mxu2 }
 0x294   :  { %v1799_v27 = vpop.f32.mrf.mxu1  ;;  %v2004_v9 = vadd.f32 %v5553_v3, %v2003_v59 }
 0x295   :  { %v1797_v0 = vadd.f32 %v1796_v47, %v1748_v41 }
 0x297   :  { %v1831_v63 = vmax.f32 %v1797_v0, 0.0 }
 0x298   :  { %v1701_v61 = vpop.f32.mrf.mxu3 }
 0x299   :  { %v1849_v46 = vpack.c.bf16 %v1831_v63, %v1829_v16  ;;  %v1702_v29 = vadd.f32 %v1701_v61, %v1653_v25 }
 0x29a   :  { %v1752_v44 = vpop.f32.mrf.mxu0 }
 0x29b   :  { %2071 = vmatmul.bf16.gmra.mxu3 %v1849_v46  ;;  %v1751_v10 = vadd.f32 %v1750_v26, %v1702_v29  ;;  %v2005_v21 = vpop.f32.mrf.mxu2  ;;  %v3677_v29 = vld [vmem:[#allocation11 + $0x18] sm:$0xff] }
 0x29c   :  { %v1801_v31 = vpop.f32.mrf.mxu1  ;;  %v2006_v13 = vadd.f32 %v5553_v3, %v2005_v21  ;;  %2319 = vmatpush.bf16.msra.mxu1 %v3677_v29 }
 0x29d   :  { %v1800_v30 = vadd.f32 %v1799_v27, %v1751_v10 }
 0x29f   :  { %v1833_v17 = vmax.f32 %v1800_v30, 0.0 }
 0x2a0   :  { %v1703_v12 = vpop.f32.mrf.mxu3 }
 0x2a1   :  { %v1704_v24 = vadd.f32 %v1703_v12, %v1655_v6 }
 0x2a3   :  { %v1753_v1 = vadd.f32 %v1752_v44, %v1704_v24  ;;  %v2008_v32 = vpop.f32.mrf.mxu2 }
 0x2a4   :  { %v2009_v55 = vadd.f32 %v5553_v3, %v2008_v32 }
 0x2a5   :  { %v1802_v39 = vadd.f32 %v1801_v31, %v1753_v1 }
 0x2a7   :  { %v1835_v60 = vmax.f32 %v1802_v39, 0.0 }
 0x2a9   :  { %v1851_v58 = vpack.c.bf16 %v1835_v60, %v1833_v17  ;;  %v3676_v17 = vld [vmem:[#allocation11 + $0x10] sm:$0xff] }
 0x2aa   :  { %2320 = vmatpush.bf16.msra.mxu1 %v3676_v17 }
 0x2ab   :  { %2076 = vmatmul.bf16.gmra.mxu3 %v1851_v58  ;;  %v2010_v23 = vpop.f32.mrf.mxu2 }
 0x2ac   :  { %v2011_v16 = vadd.f32 %v5553_v3, %v2010_v23 }
 0x2b3   :  { %v2013_v41 = vpop.f32.mrf.mxu2 }
 0x2b4   :  { %v2014_v10 = vadd.f32 %v5553_v3, %v2013_v41 }
 0x2bb   :  { %v2015_v26 = vpop.f32.mrf.mxu2 }
 0x2bc   :  { %v2016_v12 = vadd.f32 %v5553_v3, %v2015_v26 }
 0x2be   :  { %v2042_v53 = vpop.f32.mrf.mxu3 }
 0x2bf   :  { %v2043_v35 = vadd.f32 %v2042_v53, %v1994_v19 }
 0x2c1   :  { %v2082_v34 = vmax.f32 %v2043_v35, 0.0 }
 0x2c3   :  { %v2018_v6 = vpop.f32.mrf.mxu2 }
 0x2c4   :  { %v2019_v58 = vadd.f32 %v5553_v3, %v2018_v6 }
 0x2c6   :  { %v2044_v14 = vpop.f32.mrf.mxu3 }
 0x2c7   :  { %v2045_v40 = vadd.f32 %v2044_v14, %v1996_v4  ;;  %v3675_v14 = vld [vmem:[#allocation11 + $0x8] sm:$0xff] }
 0x2c8   :  { %2321 = vmatpush.bf16.msra.mxu1 %v3675_v14  ;;  %v3684_v14 = vld [vmem:[%s5729_s9 + $0x10] sm:$0xff] }
 0x2c9   :  { %v2083_v5 = vmax.f32 %v2045_v40, 0.0  ;;  %v3674_v40 = vld [vmem:[#allocation11] sm:$0xff] }
 0x2cb   :  { %v2098_v11 = vpack.c.bf16 %v2083_v5, %v2082_v34  ;;  %v2020_v39 = vpop.f32.mrf.mxu2 }
 0x2cc   :  { %v2021_v54 = vadd.f32 %v5553_v3, %v2020_v39  ;;  %2322 = vmatpush.bf16.msra.mxu1 %v3674_v40 }
 0x2cd   :  { %2182 = vmatmul.bf16.vlgmr.msra.gmra.mxu0 %v2098_v11 }
 0x2ce   :  { %v2047_v36 = vpop.f32.mrf.mxu3 }
 0x2cf   :  { %v2048_v48 = vadd.f32 %v2047_v36, %v1999_v57 }
 0x2d1   :  { %v2084_v7 = vmax.f32 %v2048_v48, 0.0 }
 0x2d3   :  { %v2023_v33 = vpop.f32.mrf.mxu2 }
 0x2d4   :  { %v2024_v11 = vadd.f32 %v5553_v3, %v2023_v33  ;;  %v3685_v33 = vld [vmem:[%s5729_s9 + $0x18] sm:$0xff] }
 0x2d6   :  { %v2049_v22 = vpop.f32.mrf.mxu3 }
 0x2d7   :  { %v2050_v38 = vadd.f32 %v2049_v22, %v2001_v28 }
 0x2d9   :  { %v2085_v42 = vmax.f32 %v2050_v38, 0.0 }
 0x2db   :  { %v2099_v51 = vpack.c.bf16 %v2085_v42, %v2084_v7  ;;  %v2025_v34 = vpop.f32.mrf.mxu2 }
 0x2dc   :  { %v2026_v62 = vadd.f32 %v5553_v3, %v2025_v34 }
 0x2dd   :  { %2187 = vmatmul.bf16.gmra.mxu0 %v2099_v51 }
 0x2de   :  { %v2052_v52 = vpop.f32.mrf.mxu3 }
 0x2df   :  { %v2053_v56 = vadd.f32 %v2052_v52, %v2004_v9 }
 0x2e1   :  { %v2086_v20 = vmax.f32 %v2053_v56, 0.0 }
 0x2e3   :  { %v2028_v28 = vpop.f32.mrf.mxu2 }
 0x2e4   :  { %v2029_v42 = vadd.f32 %v5553_v3, %v2028_v28  ;;  %v3682_v28 = vld [vmem:[%s5729_s9] sm:$0xff] }
 0x2e6   :  { %v2054_v47 = vpop.f32.mrf.mxu3 }
 0x2e7   :  { %v2055_v15 = vadd.f32 %v2054_v47, %v2006_v13  ;;  %v3689_v47 = vld [vmem:[%s5729_s9 + $0x38] sm:$0xff] }
 0x2e8   :  { %2456 = vmatpush.bf16.msra.mxu2 %v3689_v47 }
 0x2e9   :  { %v2087_v49 = vmax.f32 %v2055_v15, 0.0 }
 0x2eb   :  { %v2100_v37 = vpack.c.bf16 %v2087_v49, %v2086_v20  ;;  %v2030_v7 = vpop.f32.mrf.mxu2  ;;  %v5574_v20 = vld [vmem:[#allocation10] ss:$0 sm:$0xff] }
 0x2ec   :  { %v2031_v51 = vadd.f32 %v5553_v3, %v2030_v7 }
 0x2ed   :  { %2192 = vmatmul.bf16.gmra.mxu0 %v2100_v37 }
 0x2ee   :  { %v2057_v0 = vpop.f32.mrf.mxu3 }
 0x2ef   :  { %v2058_v63 = vadd.f32 %v2057_v0, %v2009_v55  ;;  %v3688_v55 = vld [vmem:[%s5729_s9 + $0x30] sm:$0xff] }
 0x2f0   :  { %2457 = vmatpush.bf16.msra.mxu2 %v3688_v55 }
 0x2f1   :  { %v2088_v46 = vmax.f32 %v2058_v63, 0.0 }
 0x2f6   :  { %v2059_v61 = vpop.f32.mrf.mxu3 }
 0x2f7   :  { %v2060_v25 = vadd.f32 %v2059_v61, %v2011_v16 }
 0x2f9   :  { %v2089_v27 = vmax.f32 %v2060_v25, 0.0 }
 0x2fb   :  { %v2101_v8 = vpack.c.bf16 %v2089_v27, %v2088_v46 }
 0x2fd   :  { %2197 = vmatmul.bf16.gmra.mxu0 %v2101_v8  ;;  %v3687_v8 = vld [vmem:[%s5729_s9 + $0x28] sm:$0xff] }
 0x2fe   :  { %v2062_v43 = vpop.f32.mrf.mxu3  ;;  %2458 = vmatpush.bf16.msra.mxu2 %v3687_v8 }
 0x2ff   :  { %v2063_v24 = vadd.f32 %v2062_v43, %v2014_v10 }
 0x301   :  { %v2090_v1 = vmax.f32 %v2063_v24, 0.0 }
 0x306   :  { %v2064_v44 = vpop.f32.mrf.mxu3 }
 0x307   :  { %v2065_v30 = vadd.f32 %v2064_v44, %v2016_v12 }
 0x309   :  { %v2091_v31 = vmax.f32 %v2065_v30, 0.0  ;;  %v3686_v30 = vld [vmem:[%s5729_s9 + $0x20] sm:$0xff] }
 0x30a   :  { %2459 = vmatpush.bf16.msra.mxu2 %v3686_v30 }
 0x30b   :  { %v2102_v50 = vpack.c.bf16 %v2091_v31, %v2090_v1 }
 0x30d   :  { %2202 = vmatmul.bf16.gmra.mxu0 %v2102_v50 }
 0x30e   :  { %v2067_v60 = vpop.f32.mrf.mxu3  ;;  %2460 = vmatpush.bf16.msra.mxu2 %v3685_v33 }
 0x30f   :  { %v2068_v18 = vadd.f32 %v2067_v60, %v2019_v58 }
 0x311   :  { %v2092_v59 = vmax.f32 %v2068_v18, 0.0 }
 0x312   :  { %2461 = vmatpush.bf16.msra.mxu2 %v3684_v14 }
 0x316   :  { %v2069_v53 = vpop.f32.mrf.mxu3 }
 0x317   :  { %v2070_v19 = vadd.f32 %v2069_v53, %v2021_v54 }
 0x319   :  { %v2093_v4 = vmax.f32 %v2070_v19, 0.0 }
 0x31b   :  { %v2103_v35 = vpack.c.bf16 %v2093_v4, %v2092_v59 }
 0x31d   :  { %2207 = vmatmul.bf16.gmra.mxu0 %v2103_v35 }
 0x31e   :  { %v2072_v5 = vpop.f32.mrf.mxu3 }
 0x31f   :  { %v2073_v21 = vadd.f32 %v2072_v5, %v2024_v11 }
 0x321   :  { %v2094_v48 = vmax.f32 %v2073_v21, 0.0 }
 0x326   :  { %v2074_v36 = vpop.f32.mrf.mxu3 }
 0x327   :  { %v2075_v57 = vadd.f32 %v2074_v36, %v2026_v62 }
 0x329   :  { %v2095_v22 = vmax.f32 %v2075_v57, 0.0  ;;  %v3683_v57 = vld [vmem:[%s5729_s9 + $0x8] sm:$0xff]  ;;  %s4034_s9 = smov [#allocation16]  }
 0x32a   :  { %2462 = vmatpush.bf16.msra.mxu2 %v3683_v57  ;;  %s2685_s18 = sshll.u32 %s4034_s9, 4  ;;  %s2686_s18 = int_to_ptr.vmem [resolvable:$true] %s2685_s18 }
 0x32b   :  { %v2104_v38 = vpack.c.bf16 %v2095_v22, %v2094_v48 }
 0x32d   :  { %2212 = vmatmul.bf16.gmra.mxu0 %v2104_v38 }
 0x32e   :  { %v2077_v32 = vpop.f32.mrf.mxu3  ;;  %2463 = vmatpush.bf16.msra.mxu2 %v3682_v28 }
 0x32f   :  { %v2078_v45 = vadd.f32 %v2077_v32, %v2029_v42 }
 0x331   :  { %v2096_v9 = vmax.f32 %v2078_v45, 0.0 }
 0x336   :  { %v2079_v52 = vpop.f32.mrf.mxu3 }
 0x337   :  { %v2080_v23 = vadd.f32 %v2079_v52, %v2031_v51 }
 0x339   :  { %v2097_v13 = vmax.f32 %v2080_v23, 0.0 }
 0x33b   :  { %v2105_v56 = vpack.c.bf16 %v2097_v13, %v2096_v9 }
 0x33d   :  { %2217 = vmatmul.bf16.gmra.mxu0 %v2105_v56 }
 0x34a   :  { %v2183_v15 = vpop.f32.mrf.mxu0 }
 0x34b   :  { %v2184_v49 = vadd.f32 %v5574_v20, %v2183_v15 }
 0x34d   :  { %v2223_v2 = vmax.f32 %v2184_v49, 0.0  ;;  %v3729_v49 = vld [vmem:[#allocation13] ss:$0 sm:$0xff] }
 0x352   :  { %v2185_v37 = vpop.f32.mrf.mxu0 }
 0x353   :  { %v2186_v3 = vadd.f32 %v5574_v20, %v2185_v37 }
 0x355   :  { %v2224_v41 = vmax.f32 %v2186_v3, 0.0 }
 0x357   :  { %v2239_v0 = vpack.c.bf16 %v2224_v41, %v2223_v2 }
 0x359   :  { %2323 = vmatmul.bf16.vlgmr.msra.gmra.mxu1 %v2239_v0 }
 0x35a   :  { %v2188_v16 = vpop.f32.mrf.mxu0 }
 0x35b   :  { %v2189_v63 = vadd.f32 %v5574_v20, %v2188_v16 }
 0x35d   :  { %v2225_v25 = vmax.f32 %v2189_v63, 0.0 }
 0x362   :  { %v2190_v26 = vpop.f32.mrf.mxu0 }
 0x363   :  { %v2191_v61 = vadd.f32 %v5574_v20, %v2190_v26 }
 0x365   :  { %v2226_v46 = vmax.f32 %v2191_v61, 0.0 }
 0x367   :  { %v2240_v27 = vpack.c.bf16 %v2226_v46, %v2225_v25 }
 0x369   :  { %2328 = vmatmul.bf16.gmra.mxu1 %v2240_v27 }
 0x36a   :  { %v2193_v29 = vpop.f32.mrf.mxu0 }
 0x36b   :  { %v2194_v43 = vadd.f32 %v5574_v20, %v2193_v29 }
 0x36d   :  { %v2227_v12 = vmax.f32 %v2194_v43, 0.0 }
 0x372   :  { %v2195_v6 = vpop.f32.mrf.mxu0 }
 0x373   :  { %v2196_v10 = vadd.f32 %v5574_v20, %v2195_v6 }
 0x375   :  { %v2228_v24 = vmax.f32 %v2196_v10, 0.0 }
 0x377   :  { %v2241_v44 = vpack.c.bf16 %v2228_v24, %v2227_v12 }
 0x379   :  { %2333 = vmatmul.bf16.gmra.mxu1 %v2241_v44 }
 0x37a   :  { %v2198_v1 = vpop.f32.mrf.mxu0 }
 0x37b   :  { %v2199_v31 = vadd.f32 %v5574_v20, %v2198_v1 }
 0x37d   :  { %v2229_v17 = vmax.f32 %v2199_v31, 0.0 }
 0x382   :  { %v2200_v39 = vpop.f32.mrf.mxu0 }
 0x383   :  { %v2201_v50 = vadd.f32 %v5574_v20, %v2200_v39 }
 0x385   :  { %v2230_v60 = vmax.f32 %v2201_v50, 0.0 }
 0x387   :  { %v2242_v58 = vpack.c.bf16 %v2230_v60, %v2229_v17 }
 0x389   :  { %2338 = vmatmul.bf16.gmra.mxu1 %v2242_v58 }
 0x38a   :  { %v2203_v54 = vpop.f32.mrf.mxu0 }
 0x38b   :  { %v2204_v18 = vadd.f32 %v5574_v20, %v2203_v54 }
 0x38d   :  { %v2231_v59 = vmax.f32 %v2204_v18, 0.0 }
 0x392   :  { %v2205_v53 = vpop.f32.mrf.mxu0 }
 0x393   :  { %v2206_v19 = vadd.f32 %v5574_v20, %v2205_v53 }
 0x395   :  { %v2232_v4 = vmax.f32 %v2206_v19, 0.0 }
 0x397   :  { %v2243_v35 = vpack.c.bf16 %v2232_v4, %v2231_v59 }
 0x399   :  { %2343 = vmatmul.bf16.gmra.mxu1 %v2243_v35 }
 0x39a   :  { %v2208_v40 = vpop.f32.mrf.mxu0 }
 0x39b   :  { %v2209_v34 = vadd.f32 %v5574_v20, %v2208_v40 }
 0x39d   :  { %v2233_v62 = vmax.f32 %v2209_v34, 0.0 }
 0x3a2   :  { %v2210_v5 = vpop.f32.mrf.mxu0 }
 0x3a3   :  { %v2211_v11 = vadd.f32 %v5574_v20, %v2210_v5 }
 0x3a5   :  { %v2234_v21 = vmax.f32 %v2211_v11, 0.0 }
 0x3a7   :  { %v2244_v36 = vpack.c.bf16 %v2234_v21, %v2233_v62 }
 0x3a9   :  { %2348 = vmatmul.bf16.gmra.mxu1 %v2244_v36 }
 0x3aa   :  { %v2213_v48 = vpop.f32.mrf.mxu0 }
 0x3ab   :  { %v2214_v22 = vadd.f32 %v5574_v20, %v2213_v48 }
 0x3ad   :  { %v2235_v7 = vmax.f32 %v2214_v22, 0.0 }
 0x3b2   :  { %v2215_v38 = vpop.f32.mrf.mxu0 }
 0x3b3   :  { %v2216_v32 = vadd.f32 %v5574_v20, %v2215_v38 }
 0x3b5   :  { %v2236_v42 = vmax.f32 %v2216_v32, 0.0 }
 0x3b7   :  { %v2245_v51 = vpack.c.bf16 %v2236_v42, %v2235_v7 }
 0x3b9   :  { %2353 = vmatmul.bf16.gmra.mxu1 %v2245_v51 }
 0x3ba   :  { %v2218_v45 = vpop.f32.mrf.mxu0 }
 0x3bb   :  { %v2219_v52 = vadd.f32 %v5574_v20, %v2218_v45  ;;  %v3730_v45 = vld [vmem:[#allocation14] ss:$0 sm:$0xff] }
 0x3bd   :  { %v2237_v13 = vmax.f32 %v2219_v52, 0.0 }
 0x3c2   :  { %v2220_v23 = vpop.f32.mrf.mxu0 }
 0x3c3   :  { %v2221_v9 = vadd.f32 %v5574_v20, %v2220_v23 }
 0x3c5   :  { %v2238_v56 = vmax.f32 %v2221_v9, 0.0 }
 0x3c7   :  { %v2246_v47 = vpack.c.bf16 %v2238_v56, %v2237_v13 }
 0x3c9   :  { %2358 = vmatmul.bf16.gmra.mxu1 %v2246_v47 }
 0x3d6   :  { %v2324_v15 = vpop.f32.mrf.mxu1 }
 0x3d7   :  { %v2325_v37 = vadd.f32 %v3729_v49, %v2324_v15 }
 0x3d9   :  { %v2364_v41 = vmax.f32 %v2325_v37, 0.0 }
 0x3de   :  { %v2326_v3 = vpop.f32.mrf.mxu1 }
 0x3df   :  { %v2327_v2 = vadd.f32 %v3729_v49, %v2326_v3 }
 0x3e1   :  { %v2365_v0 = vmax.f32 %v2327_v2, 0.0 }
 0x3e3   :  { %v2380_v55 = vpack.c.bf16 %v2365_v0, %v2364_v41 }
 0x3e5   :  { %2464 = vmatmul.bf16.vlgmr.msra.gmra.mxu2 %v2380_v55 }
 0x3e6   :  { %v2329_v16 = vpop.f32.mrf.mxu1 }
 0x3e7   :  { %v2330_v63 = vadd.f32 %v3729_v49, %v2329_v16 }
 0x3e9   :  { %v2366_v25 = vmax.f32 %v2330_v63, 0.0 }
 0x3ee   :  { %v2331_v26 = vpop.f32.mrf.mxu1 }
 0x3ef   :  { %v2332_v61 = vadd.f32 %v3729_v49, %v2331_v26 }
 0x3f1   :  { %v2367_v46 = vmax.f32 %v2332_v61, 0.0 }
 0x3f3   :  { %v2381_v20 = vpack.c.bf16 %v2367_v46, %v2366_v25 }
 0x3f5   :  { %2469 = vmatmul.bf16.gmra.mxu2 %v2381_v20 }
 0x3f6   :  { %v2334_v27 = vpop.f32.mrf.mxu1 }
 0x3f7   :  { %v2335_v8 = vadd.f32 %v3729_v49, %v2334_v27 }
 0x3f9   :  { %v2368_v6 = vmax.f32 %v2335_v8, 0.0 }
 0x3fe   :  { %v2336_v29 = vpop.f32.mrf.mxu1 }
 0x3ff   :  { %v2337_v43 = vadd.f32 %v3729_v49, %v2336_v29 }
 0x401   :  { %v2369_v10 = vmax.f32 %v2337_v43, 0.0 }
 0x403   :  { %v2382_v12 = vpack.c.bf16 %v2369_v10, %v2368_v6 }
 0x405   :  { %2474 = vmatmul.bf16.gmra.mxu2 %v2382_v12 }
 0x406   :  { %v2339_v24 = vpop.f32.mrf.mxu1 }
 0x407   :  { %v2340_v44 = vadd.f32 %v3729_v49, %v2339_v24 }
 0x409   :  { %v2370_v31 = vmax.f32 %v2340_v44, 0.0 }
 0x40e   :  { %v2341_v30 = vpop.f32.mrf.mxu1 }
 0x40f   :  { %v2342_v1 = vadd.f32 %v3729_v49, %v2341_v30 }
 0x411   :  { %v2371_v39 = vmax.f32 %v2342_v1, 0.0 }
 0x413   :  { %v2383_v50 = vpack.c.bf16 %v2371_v39, %v2370_v31 }
 0x415   :  { %2479 = vmatmul.bf16.gmra.mxu2 %v2383_v50 }
 0x416   :  { %v2344_v17 = vpop.f32.mrf.mxu1 }
 0x417   :  { %v2345_v60 = vadd.f32 %v3729_v49, %v2344_v17 }
 0x419   :  { %v2372_v54 = vmax.f32 %v2345_v60, 0.0 }
 0x41e   :  { %v2346_v58 = vpop.f32.mrf.mxu1 }
 0x41f   :  { %v2347_v33 = vadd.f32 %v3729_v49, %v2346_v58 }
 0x421   :  { %v2373_v18 = vmax.f32 %v2347_v33, 0.0 }
 0x423   :  { %v2384_v53 = vpack.c.bf16 %v2373_v18, %v2372_v54 }
 0x425   :  { %2484 = vmatmul.bf16.gmra.mxu2 %v2384_v53 }
 0x426   :  { %v2349_v19 = vpop.f32.mrf.mxu1 }
 0x427   :  { %v2350_v59 = vadd.f32 %v3729_v49, %v2349_v19 }
 0x429   :  { %v2374_v14 = vmax.f32 %v2350_v59, 0.0 }
 0x42e   :  { %v2351_v4 = vpop.f32.mrf.mxu1 }
 0x42f   :  { %v2352_v35 = vadd.f32 %v3729_v49, %v2351_v4 }
 0x431   :  { %v2375_v40 = vmax.f32 %v2352_v35, 0.0 }
 0x433   :  { %v2385_v34 = vpack.c.bf16 %v2375_v40, %v2374_v14 }
 0x435   :  { %2489 = vmatmul.bf16.gmra.mxu2 %v2385_v34 }
 0x436   :  { %v2354_v5 = vpop.f32.mrf.mxu1 }
 0x437   :  { %v2355_v11 = vadd.f32 %v3729_v49, %v2354_v5 }
 0x439   :  { %v2376_v36 = vmax.f32 %v2355_v11, 0.0 }
 0x43e   :  { %v2356_v62 = vpop.f32.mrf.mxu1 }
 0x43f   :  { %v2357_v21 = vadd.f32 %v3729_v49, %v2356_v62 }
 0x441   :  { %v2377_v57 = vmax.f32 %v2357_v21, 0.0 }
 0x443   :  { %v2386_v28 = vpack.c.bf16 %v2377_v57, %v2376_v36 }
 0x445   :  { %2494 = vmatmul.bf16.gmra.mxu2 %v2386_v28 }
 0x446   :  { %v2359_v48 = vpop.f32.mrf.mxu1 }
 0x447   :  { %v2360_v22 = vadd.f32 %v3729_v49, %v2359_v48 }
 0x449   :  { %v2378_v7 = vmax.f32 %v2360_v22, 0.0 }
 0x44e   :  { %v2361_v38 = vpop.f32.mrf.mxu1 }
 0x44f   :  { %v2362_v32 = vadd.f32 %v3729_v49, %v2361_v38 }
 0x451   :  { %v2379_v42 = vmax.f32 %v2362_v32, 0.0 }
 0x453   :  { %v2387_v51 = vpack.c.bf16 %v2379_v42, %v2378_v7 }
 0x455   :  { %2499 = vmatmul.bf16.gmra.mxu2 %v2387_v51 }
 0x468   :  { %v2465_v52 = vpop.f32.mrf.mxu2 }
 0x469   :  { %v2466_v23 = vadd.f32 %v3730_v45, %v2465_v52 }
 0x46b   :  { %2505 = vmax.xlane.f32.xlu0 %v2466_v23 }
 0x470   :  { %v2467_v9 = vpop.f32.mrf.mxu2 }
 0x471   :  { %v2468_v13 = vadd.f32 %v3730_v45, %v2467_v9 }
 0x473   :  { %2507 = vmax.xlane.f32.xlu0 %v2468_v13 }
 0x478   :  { %v2470_v56 = vpop.f32.mrf.mxu2 }
 0x479   :  { %v2471_v47 = vadd.f32 %v3730_v45, %v2470_v56 }
 0x47b   :  { %2509 = vmax.xlane.f32.xlu1 %v2471_v47 }
 0x480   :  { %v2472_v15 = vpop.f32.mrf.mxu2 }
 0x481   :  { %v2473_v37 = vadd.f32 %v3730_v45, %v2472_v15 }
 0x483   :  { %2511 = vmax.xlane.f32.xlu1 %v2473_v37 }
 0x488   :  { %v2475_v3 = vpop.f32.mrf.mxu2 }
 0x489   :  { %v2476_v2 = vadd.f32 %v3730_v45, %v2475_v3 }
 0x48b   :  { %2513 = vmax.xlane.f32.xlu2 %v2476_v2 }
 0x490   :  { %v2477_v49 = vpop.f32.mrf.mxu2 }
 0x491   :  { %v2478_v41 = vadd.f32 %v3730_v45, %v2477_v49 }
 0x493   :  { %2515 = vmax.xlane.f32.xlu2 %v2478_v41 }
 0x498   :  { %v2480_v0 = vpop.f32.mrf.mxu2 }
 0x499   :  { %v5613_v55 = vadd.f32 %v3730_v45, %v2480_v0 }
 0x49b   :  { %2517 = vmax.xlane.f32.xlu0 %v5613_v55 }
 0x4a0   :  { %v2482_v16 = vpop.f32.mrf.mxu2 }
 0x4a1   :  { %v5616_v63 = vadd.f32 %v3730_v45, %v2482_v16 }
 0x4a3   :  { %2519 = vmax.xlane.f32.xlu1 %v5616_v63 }
 0x4a8   :  { %v2485_v26 = vpop.f32.mrf.mxu2 }
 0x4a9   :  { %v5619_v61 = vadd.f32 %v3730_v45, %v2485_v26 }
 0x4ab   :  { %2521 = vmax.xlane.f32.xlu2 %v5619_v61 }
 0x4b0   :  { %v2487_v25 = vpop.f32.mrf.mxu2 }
 0x4b1   :  { %v5622_v46 = vadd.f32 %v3730_v45, %v2487_v25 }
 0x4b3   :  { %2523 = vmax.xlane.f32.xlu0 %v5622_v46 }
 0x4b8   :  { %v2490_v20 = vpop.f32.mrf.mxu2 }
 0x4b9   :  { %v5625_v27 = vadd.f32 %v3730_v45, %v2490_v20 }
 0x4bb   :  { %2525 = vmax.xlane.f32.xlu1 %v5625_v27 }
 0x4c0   :  { %v2492_v8 = vpop.f32.mrf.mxu2 }
 0x4c1   :  { %v5628_v29 = vadd.f32 %v3730_v45, %v2492_v8 }
 0x4c3   :  { %2527 = vmax.xlane.f32.xlu2 %v5628_v29 }
 0x4c8   :  { %v2495_v43 = vpop.f32.mrf.mxu2 }
 0x4c9   :  { %v5631_v6 = vadd.f32 %v3730_v45, %v2495_v43 }
 0x4cb   :  { %2529 = vmax.xlane.f32.xlu0 %v5631_v6 }
 0x4d0   :  { %v2497_v10 = vpop.f32.mrf.mxu2 }
 0x4d1   :  { %v5634_v12 = vadd.f32 %v3730_v45, %v2497_v10 }
 0x4d3   :  { %2531 = vmax.xlane.f32.xlu1 %v5634_v12 }
 0x4d8   :  { %v2500_v24 = vpop.f32.mrf.mxu2 }
 0x4d9   :  { %v5637_v44 = vadd.f32 %v3730_v45, %v2500_v24 }
 0x4db   :  { %2533 = vmax.xlane.f32.xlu2 %v5637_v44 }
 0x4de   :  { %v2506_v30 = vpop.xlane.xlu0 %2505 }
 0x4df   :  { %v5640_v1 = vsub.f32 %v2466_v23, %v2506_v30 }
 0x4e0   :  { %v2502_v31 = vpop.f32.mrf.mxu2 }
 0x4e1   :  { %v2553_v39 = vmul.f32 1.442695, %v5640_v1  ;;  %v5643_v50 = vadd.f32 %v3730_v45, %v2502_v31 }
 0x4e3   :  { %3731 = vpow2.f32 %v2553_v39  ;;  %2535 = vmax.xlane.f32.xlu0 %v5643_v50 }
 0x4e6   :  { %v2508_v17 = vpop.xlane.xlu0 %2507 }
 0x4e7   :  { %v5646_v60 = vsub.f32 %v2468_v13, %v2508_v17 }
 0x4e9   :  { %v3732_v58 = vpop.eup %3731  ;;  %v2555_v33 = vmul.f32 1.442695, %v5646_v60 }
 0x4ea   :  { %2585 = vadd.xlane.f32.xlu1 %v3732_v58 }
 0x4eb   :  { %3733 = vpow2.f32 %v2555_v33 }
 0x4ee   :  { %v2510_v54 = vpop.xlane.xlu1 %2509 }
 0x4ef   :  { %v5649_v18 = vsub.f32 %v2471_v47, %v2510_v54 }
 0x4f1   :  { %v3734_v53 = vpop.eup %3733  ;;  %v2557_v19 = vmul.f32 1.442695, %v5649_v18 }
 0x4f2   :  { %2587 = vadd.xlane.f32.xlu2 %v3734_v53 }
 0x4f3   :  { %3735 = vpow2.f32 %v2557_v19 }
 0x4f6   :  { %v2512_v59 = vpop.xlane.xlu1 %2511 }
 0x4f7   :  { %v5652_v4 = vsub.f32 %v2473_v37, %v2512_v59 }
 0x4f9   :  { %v3736_v35 = vpop.eup %3735  ;;  %v2559_v14 = vmul.f32 1.442695, %v5652_v4 }
 0x4fa   :  { %2589 = vadd.xlane.f32.xlu0 %v3736_v35 }
 0x4fb   :  { %3737 = vpow2.f32 %v2559_v14 }
 0x4fe   :  { %v2514_v40 = vpop.xlane.xlu2 %2513 }
 0x4ff   :  { %v5655_v34 = vsub.f32 %v2476_v2, %v2514_v40 }
 0x501   :  { %v3738_v5 = vpop.eup %3737  ;;  %v2561_v11 = vmul.f32 1.442695, %v5655_v34 }
 0x502   :  { %2591 = vadd.xlane.f32.xlu1 %v3738_v5 }
 0x503   :  { %3739 = vpow2.f32 %v2561_v11 }
 0x506   :  { %v2516_v62 = vpop.xlane.xlu2 %2515 }
 0x507   :  { %v5658_v21 = vsub.f32 %v2478_v41, %v2516_v62 }
 0x509   :  { %v3740_v36 = vpop.eup %3739  ;;  %v2563_v57 = vmul.f32 1.442695, %v5658_v21 }
 0x50a   :  { %2593 = vadd.xlane.f32.xlu2 %v3740_v36 }
 0x50b   :  { %3741 = vpow2.f32 %v2563_v57 }
 0x50e   :  { %v2518_v28 = vpop.xlane.xlu0 %2517 }
 0x50f   :  { %v5662_v48 = vsub.f32 %v5613_v55, %v2518_v28 }
 0x511   :  { %v3742_v22 = vpop.eup %3741  ;;  %v2565_v38 = vmul.f32 1.442695, %v5662_v48 }
 0x512   :  { %2595 = vadd.xlane.f32.xlu0 %v3742_v22 }
 0x513   :  { %3743 = vpow2.f32 %v2565_v38 }
 0x516   :  { %v2520_v32 = vpop.xlane.xlu1 %2519 }
 0x517   :  { %v5666_v7 = vsub.f32 %v5616_v63, %v2520_v32 }
 0x519   :  { %v3744_v42 = vpop.eup %3743  ;;  %v2567_v51 = vmul.f32 1.442695, %v5666_v7 }
 0x51a   :  { %2597 = vadd.xlane.f32.xlu1 %v3744_v42 }
 0x51b   :  { %3745 = vpow2.f32 %v2567_v51 }
 0x51e   :  { %v2522_v45 = vpop.xlane.xlu2 %2521 }
 0x51f   :  { %v5670_v52 = vsub.f32 %v5619_v61, %v2522_v45 }
 0x521   :  { %v3746_v23 = vpop.eup %3745  ;;  %v2569_v9 = vmul.f32 1.442695, %v5670_v52 }
 0x522   :  { %2599 = vadd.xlane.f32.xlu2 %v3746_v23 }
 0x523   :  { %3747 = vpow2.f32 %v2569_v9 }
 0x526   :  { %v2524_v13 = vpop.xlane.xlu0 %2523 }
 0x527   :  { %v5674_v56 = vsub.f32 %v5622_v46, %v2524_v13 }
 0x529   :  { %v3748_v47 = vpop.eup %3747  ;;  %v2571_v15 = vmul.f32 1.442695, %v5674_v56 }
 0x52a   :  { %2601 = vadd.xlane.f32.xlu0 %v3748_v47 }
 0x52b   :  { %3749 = vpow2.f32 %v2571_v15 }
 0x52e   :  { %v2526_v37 = vpop.xlane.xlu1 %2525 }
 0x52f   :  { %v5678_v3 = vsub.f32 %v5625_v27, %v2526_v37 }
 0x531   :  { %v3750_v2 = vpop.eup %3749  ;;  %v2573_v49 = vmul.f32 1.442695, %v5678_v3 }
 0x532   :  { %2603 = vadd.xlane.f32.xlu1 %v3750_v2 }
 0x533   :  { %3751 = vpow2.f32 %v2573_v49 }
 0x536   :  { %v2528_v41 = vpop.xlane.xlu2 %2527 }
 0x537   :  { %v5682_v0 = vsub.f32 %v5628_v29, %v2528_v41 }
 0x539   :  { %v3752_v55 = vpop.eup %3751  ;;  %v2575_v16 = vmul.f32 1.442695, %v5682_v0 }
 0x53a   :  { %2605 = vadd.xlane.f32.xlu2 %v3752_v55 }
 0x53b   :  { %3753 = vpow2.f32 %v2575_v16 }
 0x53e   :  { %v2530_v63 = vpop.xlane.xlu0 %2529 }
 0x53f   :  { %v5686_v26 = vsub.f32 %v5631_v6, %v2530_v63 }
 0x541   :  { %v3754_v61 = vpop.eup %3753  ;;  %v2577_v25 = vmul.f32 1.442695, %v5686_v26 }
 0x542   :  { %2607 = vadd.xlane.f32.xlu0 %v3754_v61 }
 0x543   :  { %3755 = vpow2.f32 %v2577_v25 }
 0x546   :  { %v2532_v46 = vpop.xlane.xlu1 %2531 }
 0x547   :  { %v5690_v20 = vsub.f32 %v5634_v12, %v2532_v46 }
 0x549   :  { %v3756_v27 = vpop.eup %3755  ;;  %v2579_v8 = vmul.f32 1.442695, %v5690_v20 }
 0x54a   :  { %2609 = vadd.xlane.f32.xlu1 %v3756_v27 }
 0x54b   :  { %3757 = vpow2.f32 %v2579_v8 }
 0x54e   :  { %v2534_v29 = vpop.xlane.xlu2 %2533 }
 0x54f   :  { %v5694_v43 = vsub.f32 %v5637_v44, %v2534_v29 }
 0x551   :  { %v3758_v6 = vpop.eup %3757  ;;  %v2581_v10 = vmul.f32 1.442695, %v5694_v43 }
 0x552   :  { %2611 = vadd.xlane.f32.xlu2 %v3758_v6 }
 0x553   :  { %3759 = vpow2.f32 %v2581_v10 }
 0x556   :  { %v2536_v24 = vpop.xlane.xlu0 %2535 }
 0x557   :  { %v5698_v30 = vsub.f32 %v5643_v50, %v2536_v24 }
 0x559   :  { %v3760_v12 = vpop.eup %3759  ;;  %v2583_v31 = vmul.f32 1.442695, %v5698_v30 }
 0x55a   :  { %2613 = vadd.xlane.f32.xlu0 %v3760_v12 }
 0x55b   :  { %3761 = vpow2.f32 %v2583_v31 }
 0x55d   :  { %v2586_v39 = vpop.xlane.xlu1 %2585 }
 0x55e   :  { %3763 = vlog2.f32 %v2586_v39 }
 0x561   :  { %v3762_v17 = vpop.eup %3761 }
 0x562   :  { %2615 = vadd.xlane.f32.xlu1 %v3762_v17 }
 0x564   :  { %v3764_v44 = vpop.eup %3763 }
 0x565   :  { %v2618_v58 = vmul.f32 0.6931472, %v3764_v44  ;;  %v2588_v33 = vpop.xlane.xlu2 %2587 }
 0x566   :  { %3765 = vlog2.f32 %v2588_v33 }
 0x567   :  { %v2649_v54 = vsub.f32 %v5640_v1, %v2618_v58 }
 0x569   :  { %2665 = vst [vmem:[#allocation16] sm:$0xff] %v2649_v54 }
 0x56c   :  { %v3766_v53 = vpop.eup %3765 }
 0x56d   :  { %v2620_v19 = vmul.f32 0.6931472, %v3766_v53  ;;  %v2590_v50 = vpop.xlane.xlu0 %2589 }
 0x56e   :  { %3767 = vlog2.f32 %v2590_v50 }
 0x56f   :  { %v2650_v59 = vsub.f32 %v5646_v60, %v2620_v19 }
 0x571   :  { %2666 = vst [vmem:[#allocation16 + $0x8] sm:$0xff] %v2650_v59 }
 0x574   :  { %v3768_v35 = vpop.eup %3767 }
 0x575   :  { %v2622_v14 = vmul.f32 0.6931472, %v3768_v35  ;;  %v2592_v40 = vpop.xlane.xlu1 %2591 }
 0x576   :  { %3769 = vlog2.f32 %v2592_v40 }
 0x577   :  { %v2651_v5 = vsub.f32 %v5649_v18, %v2622_v14 }
 0x579   :  { %2667 = vst [vmem:[#allocation16 + $0x10] sm:$0xff] %v2651_v5 }
 0x57c   :  { %v3770_v11 = vpop.eup %3769 }
 0x57d   :  { %v2624_v62 = vmul.f32 0.6931472, %v3770_v11  ;;  %v2594_v36 = vpop.xlane.xlu2 %2593 }
 0x57e   :  { %3771 = vlog2.f32 %v2594_v36 }
 0x57f   :  { %v2652_v1 = vsub.f32 %v5652_v4, %v2624_v62 }
 0x581   :  { %2668 = vst [vmem:[#allocation16 + $0x18] sm:$0xff] %v2652_v1 }
 0x584   :  { %v3772_v57 = vpop.eup %3771 }
 0x585   :  { %v2626_v28 = vmul.f32 0.6931472, %v3772_v57  ;;  %v2596_v22 = vpop.xlane.xlu0 %2595 }
 0x586   :  { %3773 = vlog2.f32 %v2596_v22 }
 0x587   :  { %v2653_v60 = vsub.f32 %v5655_v34, %v2626_v28 }
 0x589   :  { %2669 = vst [vmem:[#allocation16 + $0x20] sm:$0xff] %v2653_v60 }
 0x58c   :  { %v3774_v38 = vpop.eup %3773 }
 0x58d   :  { %v2628_v32 = vmul.f32 0.6931472, %v3774_v38  ;;  %v2598_v42 = vpop.xlane.xlu1 %2597 }
 0x58e   :  { %3775 = vlog2.f32 %v2598_v42 }
 0x58f   :  { %v2654_v18 = vsub.f32 %v5658_v21, %v2628_v32 }
 0x591   :  { %2670 = vst [vmem:[#allocation16 + $0x28] sm:$0xff] %v2654_v18 }
 0x594   :  { %v3776_v51 = vpop.eup %3775 }
 0x595   :  { %v2630_v45 = vmul.f32 0.6931472, %v3776_v51  ;;  %v2600_v23 = vpop.xlane.xlu2 %2599 }
 0x596   :  { %3777 = vlog2.f32 %v2600_v23 }
 0x597   :  { %v2655_v4 = vsub.f32 %v5662_v48, %v2630_v45 }
 0x599   :  { %2671 = vst [vmem:[#allocation16 + $0x30] sm:$0xff] %v2655_v4 }
 0x59c   :  { %v3778_v9 = vpop.eup %3777 }
 0x59d   :  { %v2632_v13 = vmul.f32 0.6931472, %v3778_v9  ;;  %v2602_v47 = vpop.xlane.xlu0 %2601 }
 0x59e   :  { %3779 = vlog2.f32 %v2602_v47 }
 0x59f   :  { %v2656_v34 = vsub.f32 %v5666_v7, %v2632_v13 }
 0x5a1   :  { %2672 = vst [vmem:[#allocation16 + $0x38] sm:$0xff] %v2656_v34 }
 0x5a4   :  { %v3780_v15 = vpop.eup %3779 }
 0x5a5   :  { %v2634_v37 = vmul.f32 0.6931472, %v3780_v15  ;;  %v2604_v2 = vpop.xlane.xlu1 %2603 }
 0x5a6   :  { %3781 = vlog2.f32 %v2604_v2 }
 0x5a7   :  { %v2657_v21 = vsub.f32 %v5670_v52, %v2634_v37 }
 0x5a9   :  { %2673 = vst [vmem:[#allocation16 + $0x40] sm:$0xff] %v2657_v21 }
 0x5ac   :  { %v3782_v49 = vpop.eup %3781 }
 0x5ad   :  { %v2636_v41 = vmul.f32 0.6931472, %v3782_v49  ;;  %v2606_v55 = vpop.xlane.xlu2 %2605 }
 0x5ae   :  { %3783 = vlog2.f32 %v2606_v55 }
 0x5af   :  { %v2658_v48 = vsub.f32 %v5674_v56, %v2636_v41 }
 0x5b1   :  { %2674 = vst [vmem:[#allocation16 + $0x48] sm:$0xff] %v2658_v48 }
 0x5b4   :  { %v3784_v16 = vpop.eup %3783 }
 0x5b5   :  { %v2638_v63 = vmul.f32 0.6931472, %v3784_v16  ;;  %v2608_v61 = vpop.xlane.xlu0 %2607 }
 0x5b6   :  { %3785 = vlog2.f32 %v2608_v61 }
 0x5b7   :  { %v2659_v7 = vsub.f32 %v5678_v3, %v2638_v63 }
 0x5b9   :  { %2675 = vst [vmem:[#allocation16 + $0x50] sm:$0xff] %v2659_v7 }
 0x5bc   :  { %v3786_v25 = vpop.eup %3785 }
 0x5bd   :  { %v2640_v46 = vmul.f32 0.6931472, %v3786_v25  ;;  %v2610_v27 = vpop.xlane.xlu1 %2609 }
 0x5be   :  { %3787 = vlog2.f32 %v2610_v27 }
 0x5bf   :  { %v2660_v52 = vsub.f32 %v5682_v0, %v2640_v46 }
 0x5c1   :  { %2676 = vst [vmem:[#allocation16 + $0x58] sm:$0xff] %v2660_v52 }
 0x5c4   :  { %v3788_v8 = vpop.eup %3787 }
 0x5c5   :  { %v2642_v29 = vmul.f32 0.6931472, %v3788_v8  ;;  %v2612_v6 = vpop.xlane.xlu2 %2611 }
 0x5c6   :  { %3789 = vlog2.f32 %v2612_v6 }
 0x5c7   :  { %v2661_v56 = vsub.f32 %v5686_v26, %v2642_v29 }
 0x5c9   :  { %2677 = vst [vmem:[#allocation16 + $0x60] sm:$0xff] %v2661_v56 }
 0x5cc   :  { %v3790_v10 = vpop.eup %3789 }
 0x5cd   :  { %v2644_v24 = vmul.f32 0.6931472, %v3790_v10  ;;  %v2614_v12 = vpop.xlane.xlu0 %2613 }
 0x5ce   :  { %3791 = vlog2.f32 %v2614_v12 }
 0x5cf   :  { %v2662_v3 = vsub.f32 %v5690_v20, %v2644_v24 }
 0x5d1   :  { %2678 = vst [vmem:[#allocation16 + $0x68] sm:$0xff] %v2662_v3 }
 0x5d4   :  { %v3792_v31 = vpop.eup %3791 }
 0x5d5   :  { %v2646_v39 = vmul.f32 0.6931472, %v3792_v31  ;;  %v2616_v17 = vpop.xlane.xlu1 %2615 }
 0x5d6   :  { %3793 = vlog2.f32 %v2616_v17 }
 0x5d7   :  { %v2663_v0 = vsub.f32 %v5694_v43, %v2646_v39 }
 0x5d9   :  { %2679 = vst [vmem:[#allocation16 + $0x70] sm:$0xff] %v2663_v0 }
 0x5dc   :  { %v3794_v26 = vpop.eup %3793 }
 0x5dd   :  { %v2648_v44 = vmul.f32 0.6931472, %v3794_v26 }
 0x5df   :  { %v2664_v20 = vsub.f32 %v5698_v30, %v2648_v44 }
 0x5e1   :  { %2680 = vst [vmem:[#allocation16 + $0x78] sm:$0xff] %v2664_v20 }
 0x5e2   :  { %2693 = dma.vmem_to_hbm [thread:$0]  %s2686_s18, 2048, %s2688_s7, [#allocation4], %s4035_s21, %s4035_s21, %s4036_s22  }
 0x5e3   :  { %4022 = dma.done.wait [#allocation4], 2048  }
 0x5e4   :  { %4023 = vsyncadd [#allocation4], 4294965248 }
 0x5e5   :  { %2698 = vsyncpa [#allocation3], 1 }
 0x5e6   :  { %2699 = vsyncpa [#allocation6], 1 }
 0x5e7   :  { %2700 = vsyncpa [#allocation9], 1 }
 0x5e8   :  { %2701 = vsyncpa [#allocation12], 1 }
 0x5e9   :  { %2702 = vsyncpa [#allocation15], 1 }
 0x5ea   :  { %2703 = vsyncpa [#allocation4], 1 }

</bundles_post_ra>
